<compile_context>
chip_gen: v5e
topology: v5e:2x2
jax: 0.10.0
libtpu: 0.0.40
codegen_flags: <defaults>
</compile_context>

<pallas_src>
import functools

import numpy as np
import jax
import jax.numpy as jnp
from jax import lax
from jax.experimental import pallas as pl
from jax.experimental.pallas import tpu as pltpu

# MXU input dtype (accumulation is always f32).
COMPUTE_DTYPE = jnp.bfloat16

# ---------------------------------------------------------------------------
# Layer geometry.
# Activations are stored per image as [C_pad, L] with flat spatial index
# p = h * win + w (win = padded row stride), L padded so every in-kernel slice
# stays in bounds.  Conv output keeps the SAME flat indexing as its input; the
# fused pool then compacts to q = ph * owp + pw (padded to `q` lanes), and the
# padded-output row stride (owp) of layer 1 equals the input row stride (win)
# of layer 2 so the layers chain with no relayout.
#   layer 1: 32x32x3 -> conv 5x5 -> 28x28x6  -> pool -> 14x14x6
#   layer 2: 14x14x6 -> conv 5x5 -> 10x10x16 -> pool -> 5x5x16
_L1 = dict(win=32, cin_p=8, oc_p=8,  lin=1152, pout=896, mw=863, q=256,
           ph=14, pw=14, owp=16)
_L2 = dict(win=16, cin_p=8, oc_p=16, lin=256,  pout=160, mw=143, q=128,
           ph=5,  pw=5,  owp=8)

for _cfg in (_L1, _L2):
    # patch slices x[:, s : s+pout], s <= 4*win+4 must stay in bounds
    assert _cfg["pout"] + 4 * _cfg["win"] + 4 <= _cfg["lin"]
    # pooled-max slices r[:, d : d+mw], d <= win+1 must stay in bounds
    assert _cfg["mw"] == _cfg["pout"] - _cfg["win"] - 1
    # every selected conv position 2*ph*win + 2*pw must be covered by `mw`
    assert _cfg["mw"] > 2 * (_cfg["ph"] - 1) * _cfg["win"] + 2 * (_cfg["pw"] - 1)
    assert _cfg["q"] >= _cfg["ph"] * _cfg["owp"]
# layer-1 output feeds layer-2 input directly
assert _L1["q"] == _L2["lin"] and _L1["oc_p"] == _L2["cin_p"] and _L1["owp"] == _L2["win"]


# ---------------------------------------------------------------------------
# Fused kernel
# ---------------------------------------------------------------------------

def _conv_relu_pool(x, w, b, s, *, win, pout, mw):
    """One image: im2col + conv (MXU) + bias + ReLU + 2x2 maxpool.

    x: [cin_p, lin] bf16   w: [oc_p, 25*cin_p] bf16   b: [oc_p, 1] f32
    s: [mw, q] bf16 (exact 0/1 selection)   -> [oc_p, q] f32
    Padded lanes of x are zero, so out-of-image conv positions are finite and
    the 0/1 selection matrix zeroes every invalid pooled lane.
    """
    pieces = []
    for i in range(5):
        for j in range(5):
            off = i * win + j
            pieces.append(x[:, off:off + pout])            # [cin_p, pout] bf16
    patches = jnp.concatenate(pieces, axis=0)              # [25*cin_p, pout] bf16
    acc = jnp.dot(w, patches, preferred_element_type=jnp.float32)   # [oc_p, pout]
    r = jnp.maximum(acc + b, 0.0)                          # bias + ReLU (f32)
    # 2x2 max pool, step 1: max over the 4 window offsets {0, 1, win, win+1}.
    m = jnp.maximum(jnp.maximum(r[:, 0:mw], r[:, 1:1 + mw]),
                    jnp.maximum(r[:, win:win + mw], r[:, win + 1:win + 1 + mw]))
    # step 2: compact stride-2 positions with an exact 0/1 selection matmul.
    return jnp.dot(m.astype(COMPUTE_DTYPE), s, preferred_element_type=jnp.float32)


def _lenet_kernel(x_ref, c1_w_ref, c1_b_ref, s1_ref, c2_w_ref, c2_b_ref, s2_ref,
                  f1_w_ref, f1_b_ref, f2_w_ref, f2_b_ref, f3_w_ref, f3_b_ref,
                  o_ref, *, batch_tile):
    """Whole network for one batch tile of `batch_tile` images."""
    c1_w = c1_w_ref[...]
    c1_b = c1_b_ref[...]
    s1 = s1_ref[...]
    c2_w = c2_w_ref[...]
    c2_b = c2_b_ref[...]
    s2 = s2_ref[...]

    p2_list = []
    for b in range(batch_tile):
        x = x_ref[b]                                                     # [8, 1152] bf16
        p1 = _conv_relu_pool(x, c1_w, c1_b, s1,
                             win=_L1["win"], pout=_L1["pout"], mw=_L1["mw"])   # [8, 256]
        p2 = _conv_relu_pool(p1.astype(COMPUTE_DTYPE), c2_w, c2_b, s2,
                             win=_L2["win"], pout=_L2["pout"], mw=_L2["mw"])   # [16, 128]
        p2_list.append(p2.astype(COMPUTE_DTYPE))
    a = jnp.stack(p2_list, axis=1)                                       # [16, bt, 128]

    # fc1 as 16 accumulating per-conv2-channel dots (no sublane->lane flatten).
    h = jnp.dot(a[0], f1_w_ref[0], preferred_element_type=jnp.float32)   # [bt, 128]
    for c in range(1, 16):
        h = h + jnp.dot(a[c], f1_w_ref[c], preferred_element_type=jnp.float32)
    h = jnp.maximum(h + f1_b_ref[...], 0.0)
    h = jnp.maximum(jnp.dot(h.astype(COMPUTE_DTYPE), f2_w_ref[...],
                            preferred_element_type=jnp.float32) + f2_b_ref[...], 0.0)
    h = jnp.dot(h.astype(COMPUTE_DTYPE), f3_w_ref[...],
                preferred_element_type=jnp.float32) + f3_b_ref[...]
    o_ref[0] = h                                                         # [bt, 128] f32


# ---------------------------------------------------------------------------
# pallas_call wrapper
# ---------------------------------------------------------------------------

def _batch_tile(n):
    # >=2 grid steps (both v7x TensorCores get work), <=8 images/step (VMEM-safe).
    if n <= 2:
        return 1
    return max(1, min(8, n // 2))


def net_forward(x_nchw, prep):
    """x_nchw: [N, 3, 32, 32] f32 -> logits [N, 10] f32."""
    N = x_nchw.shape[0]
    bt = _batch_tile(N)
    n_tiles = -(-N // bt)
    n_pad = n_tiles * bt

    # One-time layout change at entry: NCHW -> [N_pad, Cin_p, H*W(+pad)] bf16
    # (reshape + zero-pad + cast only; padded lanes/images are exactly zero).
    a0 = x_nchw.astype(jnp.float32).reshape(N, 3, 32 * 32)
    a0 = jnp.pad(a0, ((0, n_pad - N), (0, _L1["cin_p"] - 3), (0, _L1["lin"] - 32 * 32)))
    a0 = a0.astype(COMPUTE_DTYPE)

    kernel = functools.partial(_lenet_kernel, batch_tile=bt)
    out = pl.pallas_call(
        kernel,
        out_shape=jax.ShapeDtypeStruct((n_tiles, bt, 128), jnp.float32),
        grid=(n_tiles,),
        in_specs=[
            pl.BlockSpec((bt, _L1["cin_p"], _L1["lin"]), lambda n: (n, 0, 0)),
            pl.BlockSpec((_L1["oc_p"], 25 * _L1["cin_p"]), lambda n: (0, 0)),
            pl.BlockSpec((_L1["oc_p"], 1), lambda n: (0, 0)),
            pl.BlockSpec((_L1["mw"], _L1["q"]), lambda n: (0, 0)),
            pl.BlockSpec((_L2["oc_p"], 25 * _L2["cin_p"]), lambda n: (0, 0)),
            pl.BlockSpec((_L2["oc_p"], 1), lambda n: (0, 0)),
            pl.BlockSpec((_L2["mw"], _L2["q"]), lambda n: (0, 0)),
            pl.BlockSpec((16, _L2["q"], 128), lambda n: (0, 0, 0)),
            pl.BlockSpec((1, 128), lambda n: (0, 0)),
            pl.BlockSpec((128, 128), lambda n: (0, 0)),
            pl.BlockSpec((1, 128), lambda n: (0, 0)),
            pl.BlockSpec((128, 128), lambda n: (0, 0)),
            pl.BlockSpec((1, 128), lambda n: (0, 0)),
        ],
        out_specs=pl.BlockSpec((1, bt, 128), lambda n: (n, 0, 0)),
        compiler_params=pltpu.CompilerParams(dimension_semantics=("parallel",)),
    )(a0, prep["c1_w"], prep["c1_b"], prep["S1"], prep["c2_w"], prep["c2_b"],
      prep["S2"], prep["f1_w"], prep["f1_b"], prep["f2_w"], prep["f2_b"],
      prep["f3_w"], prep["f3_b"])
    return out.reshape(n_pad, 128)[:N, :10]


# ---------------------------------------------------------------------------
# One-time parameter re-layout (host side)
# ---------------------------------------------------------------------------

def _pool_select(cfg):
    """0/1 matrix S[p, q]: pooled q = ph*owp+pw picks conv position 2*ph*win+2*pw."""
    win, mw, q, ph_n, pw_n, owp = (cfg["win"], cfg["mw"], cfg["q"],
                                   cfg["ph"], cfg["pw"], cfg["owp"])
    qs = np.arange(q)
    ph = qs // owp
    pw = qs % owp
    valid = (ph < ph_n) & (pw < pw_n)
    target = 2 * ph * win + 2 * pw
    p = np.arange(mw)[:, None]
    sel = ((p == target[None, :]) & valid[None, :]).astype(np.float32)
    return jnp.asarray(sel).astype(COMPUTE_DTYPE)          # exact 0/1 in bf16


def prepare_params(params):
    def conv_prep(w, b, oc_p, cin_p):
        oc, cin, kh, kw = w.shape
        wt = jnp.transpose(w, (0, 2, 3, 1))                          # [oc, kh, kw, cin]
        wt = jnp.pad(wt, ((0, oc_p - oc), (0, 0), (0, 0), (0, cin_p - cin)))
        wt = wt.reshape(oc_p, kh * kw * cin_p).astype(COMPUTE_DTYPE)
        bp = jnp.pad(b, (0, oc_p - oc)).reshape(oc_p, 1).astype(jnp.float32)
        return wt, bp

    c1_w, c1_b = conv_prep(params["conv1_w"], params["conv1_b"],
                           _L1["oc_p"], _L1["cin_p"])
    c2_w, c2_b = conv_prep(params["conv2_w"], params["conv2_b"],
                           _L2["oc_p"], _L2["cin_p"])

    # fc1: remap torch flatten order (c*25 + h*5 + w) to per-channel layout
    # [16, 128, 128] with in-kernel lane index q = h*owp + w (owp=8, pad->128).
    owp, q2 = _L2["owp"], _L2["q"]
    f1 = params["fc1_w"].reshape(120, 16, 5, 5)
    f1 = jnp.pad(f1, ((0, 0), (0, 0), (0, 0), (0, owp - 5)))         # [120,16,5,8]
    f1 = f1.reshape(120, 16, 5 * owp)
    f1 = jnp.pad(f1, ((0, 0), (0, 0), (0, q2 - 5 * owp)))            # [120,16,128]
    f1 = jnp.transpose(f1, (1, 2, 0))                                # [16,128,120]
    f1_w = jnp.pad(f1, ((0, 0), (0, 0), (0, 8))).astype(COMPUTE_DTYPE)  # [16,128,128]
    f1_b = jnp.pad(params["fc1_b"], (0, 8)).reshape(1, 128).astype(jnp.float32)

    f2_w = jnp.pad(params["fc2_w"].T, ((0, 8), (0, 44))).astype(COMPUTE_DTYPE)
    f2_b = jnp.pad(params["fc2_b"], (0, 44)).reshape(1, 128).astype(jnp.float32)
    f3_w = jnp.pad(params["fc3_w"].T, ((0, 44), (0, 118))).astype(COMPUTE_DTYPE)
    f3_b = jnp.pad(params["fc3_b"], (0, 118)).reshape(1, 128).astype(jnp.float32)

    return dict(c1_w=c1_w, c1_b=c1_b, S1=_pool_select(_L1),
                c2_w=c2_w, c2_b=c2_b, S2=_pool_select(_L2),
                f1_w=f1_w, f1_b=f1_b, f2_w=f2_w, f2_b=f2_b,
                f3_w=f3_w, f3_b=f3_b)


# ---------------------------------------------------------------------------
# Params / reference / demo
# ---------------------------------------------------------------------------

def init_params(key):
    ks = jax.random.split(key, 10)

    def unif(k, shape, fan_in):
        bound = 1.0 / jnp.sqrt(float(fan_in))
        return jax.random.uniform(k, shape, jnp.float32, -bound, bound)

    return {
        "conv1_w": unif(ks[0], (6, 3, 5, 5), 3 * 5 * 5),
        "conv1_b": unif(ks[1], (6,), 3 * 5 * 5),
        "conv2_w": unif(ks[2], (16, 6, 5, 5), 6 * 5 * 5),
        "conv2_b": unif(ks[3], (16,), 6 * 5 * 5),
        "fc1_w": unif(ks[4], (120, 16 * 5 * 5), 16 * 5 * 5),
        "fc1_b": unif(ks[5], (120,), 16 * 5 * 5),
        "fc2_w": unif(ks[6], (84, 120), 120),
        "fc2_b": unif(ks[7], (84,), 120),
        "fc3_w": unif(ks[8], (10, 84), 84),
        "fc3_b": unif(ks[9], (10,), 84),
    }


def reference_forward(x, params):
    """Pure-JAX f32 reference matching the PyTorch module."""
    def conv(v, w, b):
        out = lax.conv_general_dilated(v, w, (1, 1), "VALID",
                                       dimension_numbers=("NCHW", "OIHW", "NCHW"))
        return out + b[None, :, None, None]

    def pool(v):
        return lax.reduce_window(v, -jnp.inf, lax.max, (1, 1, 2, 2), (1, 1, 2, 2), "VALID")

    a = pool(jax.nn.relu(conv(x, params["conv1_w"], params["conv1_b"])))
    a = pool(jax.nn.relu(conv(a, params["conv2_w"], params["conv2_b"])))
    a = a.reshape(a.shape[0], -1)
    a = jax.nn.relu(a @ params["fc1_w"].T + params["fc1_b"])
    a = jax.nn.relu(a @ params["fc2_w"].T + params["fc2_b"])
    return a @ params["fc3_w"].T + params["fc3_b"]


if __name__ == "__main__":
    key = jax.random.PRNGKey(0)
    k_in, k_p = jax.random.split(key)
    x = jax.random.normal(k_in, (2, 3, 32, 32), jnp.float32)

    params = init_params(k_p)
    prep = prepare_params(params)

    out = jax.jit(net_forward)(x, prep)
    out = jax.block_until_ready(out)
    assert out.shape == (2, 10) and out.dtype == jnp.float32
    assert bool(jnp.all(jnp.isfinite(out)))

    # Correctness vs. pure-JAX f32 reference (loose tol: bf16 MXU inputs).
    ref = reference_forward(x, params)
    assert float(jnp.max(jnp.abs(out - ref))) < 0.1
    print("KERNEL_OK")
</pallas_src>

<mosaic_0001>
module attributes {stable_mosaic.version = 11 : i64} {
  func.func @_lenet_kernel(%arg0: i32, %arg1: memref<1x8x1152xbf16, #tpu.memory_space<vmem>>, %arg2: memref<8x200xbf16, #tpu.memory_space<vmem>>, %arg3: memref<8x1xf32, #tpu.memory_space<vmem>>, %arg4: memref<863x256xbf16, #tpu.memory_space<vmem>>, %arg5: memref<16x200xbf16, #tpu.memory_space<vmem>>, %arg6: memref<16x1xf32, #tpu.memory_space<vmem>>, %arg7: memref<143x128xbf16, #tpu.memory_space<vmem>>, %arg8: memref<16x128x128xbf16, #tpu.memory_space<vmem>>, %arg9: memref<1x128xf32, #tpu.memory_space<vmem>>, %arg10: memref<128x128xbf16, #tpu.memory_space<vmem>>, %arg11: memref<1x128xf32, #tpu.memory_space<vmem>>, %arg12: memref<128x128xbf16, #tpu.memory_space<vmem>>, %arg13: memref<1x128xf32, #tpu.memory_space<vmem>>, %arg14: memref<1x1x128xf32, #tpu.memory_space<vmem>>) attributes {dimension_semantics = [#tpu.dimension_semantics<parallel>], iteration_bounds = array<i64: 2>, scalar_prefetch = 0 : i64, scratch_operands = 0 : i64, tpu.core_type = #tpu.core_type<tc>, window_params = [{transform_indices = @transform_0, window_bounds = array<i64: 1, 8, 1152>}, {pipeline_mode = #tpu.pipeline_mode<synchronous>, transform_indices = @transform_1, window_bounds = array<i64: 8, 200>}, {pipeline_mode = #tpu.pipeline_mode<synchronous>, transform_indices = @transform_2, window_bounds = array<i64: 8, 1>}, {pipeline_mode = #tpu.pipeline_mode<synchronous>, transform_indices = @transform_3, window_bounds = array<i64: 863, 256>}, {pipeline_mode = #tpu.pipeline_mode<synchronous>, transform_indices = @transform_4, window_bounds = array<i64: 16, 200>}, {pipeline_mode = #tpu.pipeline_mode<synchronous>, transform_indices = @transform_5, window_bounds = array<i64: 16, 1>}, {pipeline_mode = #tpu.pipeline_mode<synchronous>, transform_indices = @transform_6, window_bounds = array<i64: 143, 128>}, {pipeline_mode = #tpu.pipeline_mode<synchronous>, transform_indices = @transform_7, window_bounds = array<i64: 16, 128, 128>}, {pipeline_mode = #tpu.pipeline_mode<synchronous>, transform_indices = @transform_8, window_bounds = array<i64: 1, 128>}, {pipeline_mode = #tpu.pipeline_mode<synchronous>, transform_indices = @transform_9, window_bounds = array<i64: 128, 128>}, {pipeline_mode = #tpu.pipeline_mode<synchronous>, transform_indices = @transform_10, window_bounds = array<i64: 1, 128>}, {pipeline_mode = #tpu.pipeline_mode<synchronous>, transform_indices = @transform_11, window_bounds = array<i64: 128, 128>}, {pipeline_mode = #tpu.pipeline_mode<synchronous>, transform_indices = @transform_12, window_bounds = array<i64: 1, 128>}, {transform_indices = @transform_13, window_bounds = array<i64: 1, 1, 128>}]} {
    %c0 = arith.constant 0 : index
    %c0_0 = arith.constant 0 : index
    %0 = vector.load %arg2[%c0, %c0_0] : memref<8x200xbf16, #tpu.memory_space<vmem>>, vector<8x200xbf16>
    %c0_1 = arith.constant 0 : index
    %c0_2 = arith.constant 0 : index
    %1 = vector.load %arg3[%c0_1, %c0_2] : memref<8x1xf32, #tpu.memory_space<vmem>>, vector<8x1xf32>
    %c0_3 = arith.constant 0 : index
    %c0_4 = arith.constant 0 : index
    %2 = vector.load %arg4[%c0_3, %c0_4] : memref<863x256xbf16, #tpu.memory_space<vmem>>, vector<863x256xbf16>
    %c0_5 = arith.constant 0 : index
    %c0_6 = arith.constant 0 : index
    %3 = vector.load %arg5[%c0_5, %c0_6] : memref<16x200xbf16, #tpu.memory_space<vmem>>, vector<16x200xbf16>
    %c0_7 = arith.constant 0 : index
    %c0_8 = arith.constant 0 : index
    %4 = vector.load %arg6[%c0_7, %c0_8] : memref<16x1xf32, #tpu.memory_space<vmem>>, vector<16x1xf32>
    %c0_9 = arith.constant 0 : index
    %c0_10 = arith.constant 0 : index
    %5 = vector.load %arg7[%c0_9, %c0_10] : memref<143x128xbf16, #tpu.memory_space<vmem>>, vector<143x128xbf16>
    %c0_11 = arith.constant 0 : index
    %c0_12 = arith.constant 0 : index
    %c0_13 = arith.constant 0 : index
    %6 = vector.load %arg1[%c0_11, %c0_12, %c0_13] : memref<1x8x1152xbf16, #tpu.memory_space<vmem>>, vector<1x8x1152xbf16>
    %7 = vector.shape_cast %6 : vector<1x8x1152xbf16> to vector<8x1152xbf16>
    %8 = vector.extract_strided_slice %7 {offsets = [0, 0], sizes = [8, 896], strides = [1, 1]} : vector<8x1152xbf16> to vector<8x896xbf16>
    %9 = vector.extract_strided_slice %7 {offsets = [0, 1], sizes = [8, 896], strides = [1, 1]} : vector<8x1152xbf16> to vector<8x896xbf16>
    %10 = vector.extract_strided_slice %7 {offsets = [0, 2], sizes = [8, 896], strides = [1, 1]} : vector<8x1152xbf16> to vector<8x896xbf16>
    %11 = vector.extract_strided_slice %7 {offsets = [0, 3], sizes = [8, 896], strides = [1, 1]} : vector<8x1152xbf16> to vector<8x896xbf16>
    %12 = vector.extract_strided_slice %7 {offsets = [0, 4], sizes = [8, 896], strides = [1, 1]} : vector<8x1152xbf16> to vector<8x896xbf16>
    %13 = vector.extract_strided_slice %7 {offsets = [0, 32], sizes = [8, 896], strides = [1, 1]} : vector<8x1152xbf16> to vector<8x896xbf16>
    %14 = vector.extract_strided_slice %7 {offsets = [0, 33], sizes = [8, 896], strides = [1, 1]} : vector<8x1152xbf16> to vector<8x896xbf16>
    %15 = vector.extract_strided_slice %7 {offsets = [0, 34], sizes = [8, 896], strides = [1, 1]} : vector<8x1152xbf16> to vector<8x896xbf16>
    %16 = vector.extract_strided_slice %7 {offsets = [0, 35], sizes = [8, 896], strides = [1, 1]} : vector<8x1152xbf16> to vector<8x896xbf16>
    %17 = vector.extract_strided_slice %7 {offsets = [0, 36], sizes = [8, 896], strides = [1, 1]} : vector<8x1152xbf16> to vector<8x896xbf16>
    %18 = vector.extract_strided_slice %7 {offsets = [0, 64], sizes = [8, 896], strides = [1, 1]} : vector<8x1152xbf16> to vector<8x896xbf16>
    %19 = vector.extract_strided_slice %7 {offsets = [0, 65], sizes = [8, 896], strides = [1, 1]} : vector<8x1152xbf16> to vector<8x896xbf16>
    %20 = vector.extract_strided_slice %7 {offsets = [0, 66], sizes = [8, 896], strides = [1, 1]} : vector<8x1152xbf16> to vector<8x896xbf16>
    %21 = vector.extract_strided_slice %7 {offsets = [0, 67], sizes = [8, 896], strides = [1, 1]} : vector<8x1152xbf16> to vector<8x896xbf16>
    %22 = vector.extract_strided_slice %7 {offsets = [0, 68], sizes = [8, 896], strides = [1, 1]} : vector<8x1152xbf16> to vector<8x896xbf16>
    %23 = vector.extract_strided_slice %7 {offsets = [0, 96], sizes = [8, 896], strides = [1, 1]} : vector<8x1152xbf16> to vector<8x896xbf16>
    %24 = vector.extract_strided_slice %7 {offsets = [0, 97], sizes = [8, 896], strides = [1, 1]} : vector<8x1152xbf16> to vector<8x896xbf16>
    %25 = vector.extract_strided_slice %7 {offsets = [0, 98], sizes = [8, 896], strides = [1, 1]} : vector<8x1152xbf16> to vector<8x896xbf16>
    %26 = vector.extract_strided_slice %7 {offsets = [0, 99], sizes = [8, 896], strides = [1, 1]} : vector<8x1152xbf16> to vector<8x896xbf16>
    %27 = vector.extract_strided_slice %7 {offsets = [0, 100], sizes = [8, 896], strides = [1, 1]} : vector<8x1152xbf16> to vector<8x896xbf16>
    %28 = vector.extract_strided_slice %7 {offsets = [0, 128], sizes = [8, 896], strides = [1, 1]} : vector<8x1152xbf16> to vector<8x896xbf16>
    %29 = vector.extract_strided_slice %7 {offsets = [0, 129], sizes = [8, 896], strides = [1, 1]} : vector<8x1152xbf16> to vector<8x896xbf16>
    %30 = vector.extract_strided_slice %7 {offsets = [0, 130], sizes = [8, 896], strides = [1, 1]} : vector<8x1152xbf16> to vector<8x896xbf16>
    %31 = vector.extract_strided_slice %7 {offsets = [0, 131], sizes = [8, 896], strides = [1, 1]} : vector<8x1152xbf16> to vector<8x896xbf16>
    %32 = vector.extract_strided_slice %7 {offsets = [0, 132], sizes = [8, 896], strides = [1, 1]} : vector<8x1152xbf16> to vector<8x896xbf16>
    %33 = tpu.concatenate %8, %9, %10, %11, %12, %13, %14, %15, %16, %17, %18, %19, %20, %21, %22, %23 in 0 : vector<8x896xbf16>, vector<8x896xbf16>, vector<8x896xbf16>, vector<8x896xbf16>, vector<8x896xbf16>, vector<8x896xbf16>, vector<8x896xbf16>, vector<8x896xbf16>, vector<8x896xbf16>, vector<8x896xbf16>, vector<8x896xbf16>, vector<8x896xbf16>, vector<8x896xbf16>, vector<8x896xbf16>, vector<8x896xbf16>, vector<8x896xbf16> -> vector<128x896xbf16>
    %34 = tpu.concatenate %24, %25, %26, %27, %28, %29, %30, %31, %32 in 0 : vector<8x896xbf16>, vector<8x896xbf16>, vector<8x896xbf16>, vector<8x896xbf16>, vector<8x896xbf16>, vector<8x896xbf16>, vector<8x896xbf16>, vector<8x896xbf16>, vector<8x896xbf16> -> vector<72x896xbf16>
    %35 = tpu.concatenate %33, %34 in 0 : vector<128x896xbf16>, vector<72x896xbf16> -> vector<200x896xbf16>
    %cst = arith.constant dense<0.000000e+00> : vector<8x896xf32>
    %36 = tpu.matmul %0, %35, %cst {dimension_numbers = #tpu.dot_dimension_numbers<[1], [0], [0], [1], [0, 0, 1, 1], [], []>} : vector<8x200xbf16>, vector<200x896xbf16>, vector<8x896xf32> -> vector<8x896xf32>
    %37 = vector.broadcast %1 : vector<8x1xf32> to vector<8x896xf32>
    %38 = arith.addf %36, %37 : vector<8x896xf32>
    %cst_14 = arith.constant 0.000000e+00 : f32
    %39 = vector.broadcast %cst_14 : f32 to vector<8x896xf32>
    %40 = arith.maximumf %38, %39 : vector<8x896xf32>
    %41 = vector.extract_strided_slice %40 {offsets = [0, 0], sizes = [8, 863], strides = [1, 1]} : vector<8x896xf32> to vector<8x863xf32>
    %42 = vector.extract_strided_slice %40 {offsets = [0, 1], sizes = [8, 863], strides = [1, 1]} : vector<8x896xf32> to vector<8x863xf32>
    %43 = arith.maximumf %41, %42 : vector<8x863xf32>
    %44 = vector.extract_strided_slice %40 {offsets = [0, 32], sizes = [8, 863], strides = [1, 1]} : vector<8x896xf32> to vector<8x863xf32>
    %45 = vector.extract_strided_slice %40 {offsets = [0, 33], sizes = [8, 863], strides = [1, 1]} : vector<8x896xf32> to vector<8x863xf32>
    %46 = arith.maximumf %44, %45 : vector<8x863xf32>
    %47 = arith.maximumf %43, %46 : vector<8x863xf32>
    %48 = arith.truncf %47 : vector<8x863xf32> to vector<8x863xbf16>
    %cst_15 = arith.constant dense<0.000000e+00> : vector<8x256xf32>
    %49 = tpu.matmul %48, %2, %cst_15 {dimension_numbers = #tpu.dot_dimension_numbers<[1], [0], [0], [1], [0, 0, 1, 1], [], []>} : vector<8x863xbf16>, vector<863x256xbf16>, vector<8x256xf32> -> vector<8x256xf32>
    %50 = arith.truncf %49 : vector<8x256xf32> to vector<8x256xbf16>
    %51 = vector.extract_strided_slice %50 {offsets = [0, 0], sizes = [8, 160], strides = [1, 1]} : vector<8x256xbf16> to vector<8x160xbf16>
    %52 = vector.extract_strided_slice %50 {offsets = [0, 1], sizes = [8, 160], strides = [1, 1]} : vector<8x256xbf16> to vector<8x160xbf16>
    %53 = vector.extract_strided_slice %50 {offsets = [0, 2], sizes = [8, 160], strides = [1, 1]} : vector<8x256xbf16> to vector<8x160xbf16>
    %54 = vector.extract_strided_slice %50 {offsets = [0, 3], sizes = [8, 160], strides = [1, 1]} : vector<8x256xbf16> to vector<8x160xbf16>
    %55 = vector.extract_strided_slice %50 {offsets = [0, 4], sizes = [8, 160], strides = [1, 1]} : vector<8x256xbf16> to vector<8x160xbf16>
    %56 = vector.extract_strided_slice %50 {offsets = [0, 16], sizes = [8, 160], strides = [1, 1]} : vector<8x256xbf16> to vector<8x160xbf16>
    %57 = vector.extract_strided_slice %50 {offsets = [0, 17], sizes = [8, 160], strides = [1, 1]} : vector<8x256xbf16> to vector<8x160xbf16>
    %58 = vector.extract_strided_slice %50 {offsets = [0, 18], sizes = [8, 160], strides = [1, 1]} : vector<8x256xbf16> to vector<8x160xbf16>
    %59 = vector.extract_strided_slice %50 {offsets = [0, 19], sizes = [8, 160], strides = [1, 1]} : vector<8x256xbf16> to vector<8x160xbf16>
    %60 = vector.extract_strided_slice %50 {offsets = [0, 20], sizes = [8, 160], strides = [1, 1]} : vector<8x256xbf16> to vector<8x160xbf16>
    %61 = vector.extract_strided_slice %50 {offsets = [0, 32], sizes = [8, 160], strides = [1, 1]} : vector<8x256xbf16> to vector<8x160xbf16>
    %62 = vector.extract_strided_slice %50 {offsets = [0, 33], sizes = [8, 160], strides = [1, 1]} : vector<8x256xbf16> to vector<8x160xbf16>
    %63 = vector.extract_strided_slice %50 {offsets = [0, 34], sizes = [8, 160], strides = [1, 1]} : vector<8x256xbf16> to vector<8x160xbf16>
    %64 = vector.extract_strided_slice %50 {offsets = [0, 35], sizes = [8, 160], strides = [1, 1]} : vector<8x256xbf16> to vector<8x160xbf16>
    %65 = vector.extract_strided_slice %50 {offsets = [0, 36], sizes = [8, 160], strides = [1, 1]} : vector<8x256xbf16> to vector<8x160xbf16>
    %66 = vector.extract_strided_slice %50 {offsets = [0, 48], sizes = [8, 160], strides = [1, 1]} : vector<8x256xbf16> to vector<8x160xbf16>
    %67 = vector.extract_strided_slice %50 {offsets = [0, 49], sizes = [8, 160], strides = [1, 1]} : vector<8x256xbf16> to vector<8x160xbf16>
    %68 = vector.extract_strided_slice %50 {offsets = [0, 50], sizes = [8, 160], strides = [1, 1]} : vector<8x256xbf16> to vector<8x160xbf16>
    %69 = vector.extract_strided_slice %50 {offsets = [0, 51], sizes = [8, 160], strides = [1, 1]} : vector<8x256xbf16> to vector<8x160xbf16>
    %70 = vector.extract_strided_slice %50 {offsets = [0, 52], sizes = [8, 160], strides = [1, 1]} : vector<8x256xbf16> to vector<8x160xbf16>
    %71 = vector.extract_strided_slice %50 {offsets = [0, 64], sizes = [8, 160], strides = [1, 1]} : vector<8x256xbf16> to vector<8x160xbf16>
    %72 = vector.extract_strided_slice %50 {offsets = [0, 65], sizes = [8, 160], strides = [1, 1]} : vector<8x256xbf16> to vector<8x160xbf16>
    %73 = vector.extract_strided_slice %50 {offsets = [0, 66], sizes = [8, 160], strides = [1, 1]} : vector<8x256xbf16> to vector<8x160xbf16>
    %74 = vector.extract_strided_slice %50 {offsets = [0, 67], sizes = [8, 160], strides = [1, 1]} : vector<8x256xbf16> to vector<8x160xbf16>
    %75 = vector.extract_strided_slice %50 {offsets = [0, 68], sizes = [8, 160], strides = [1, 1]} : vector<8x256xbf16> to vector<8x160xbf16>
    %76 = tpu.concatenate %51, %52, %53, %54, %55, %56, %57, %58, %59, %60, %61, %62, %63, %64, %65, %66 in 0 : vector<8x160xbf16>, vector<8x160xbf16>, vector<8x160xbf16>, vector<8x160xbf16>, vector<8x160xbf16>, vector<8x160xbf16>, vector<8x160xbf16>, vector<8x160xbf16>, vector<8x160xbf16>, vector<8x160xbf16>, vector<8x160xbf16>, vector<8x160xbf16>, vector<8x160xbf16>, vector<8x160xbf16>, vector<8x160xbf16>, vector<8x160xbf16> -> vector<128x160xbf16>
    %77 = tpu.concatenate %67, %68, %69, %70, %71, %72, %73, %74, %75 in 0 : vector<8x160xbf16>, vector<8x160xbf16>, vector<8x160xbf16>, vector<8x160xbf16>, vector<8x160xbf16>, vector<8x160xbf16>, vector<8x160xbf16>, vector<8x160xbf16>, vector<8x160xbf16> -> vector<72x160xbf16>
    %78 = tpu.concatenate %76, %77 in 0 : vector<128x160xbf16>, vector<72x160xbf16> -> vector<200x160xbf16>
    %cst_16 = arith.constant dense<0.000000e+00> : vector<16x160xf32>
    %79 = tpu.matmul %3, %78, %cst_16 {dimension_numbers = #tpu.dot_dimension_numbers<[1], [0], [0], [1], [0, 0, 1, 1], [], []>} : vector<16x200xbf16>, vector<200x160xbf16>, vector<16x160xf32> -> vector<16x160xf32>
    %80 = vector.broadcast %4 : vector<16x1xf32> to vector<16x160xf32>
    %81 = arith.addf %79, %80 : vector<16x160xf32>
    %cst_17 = arith.constant 0.000000e+00 : f32
    %82 = vector.broadcast %cst_17 : f32 to vector<16x160xf32>
    %83 = arith.maximumf %81, %82 : vector<16x160xf32>
    %84 = vector.extract_strided_slice %83 {offsets = [0, 0], sizes = [16, 143], strides = [1, 1]} : vector<16x160xf32> to vector<16x143xf32>
    %85 = vector.extract_strided_slice %83 {offsets = [0, 1], sizes = [16, 143], strides = [1, 1]} : vector<16x160xf32> to vector<16x143xf32>
    %86 = arith.maximumf %84, %85 : vector<16x143xf32>
    %87 = vector.extract_strided_slice %83 {offsets = [0, 16], sizes = [16, 143], strides = [1, 1]} : vector<16x160xf32> to vector<16x143xf32>
    %88 = vector.extract_strided_slice %83 {offsets = [0, 17], sizes = [16, 143], strides = [1, 1]} : vector<16x160xf32> to vector<16x143xf32>
    %89 = arith.maximumf %87, %88 : vector<16x143xf32>
    %90 = arith.maximumf %86, %89 : vector<16x143xf32>
    %91 = arith.truncf %90 : vector<16x143xf32> to vector<16x143xbf16>
    %cst_18 = arith.constant dense<0.000000e+00> : vector<16x128xf32>
    %92 = tpu.matmul %91, %5, %cst_18 {dimension_numbers = #tpu.dot_dimension_numbers<[1], [0], [0], [1], [0, 0, 1, 1], [], []>} : vector<16x143xbf16>, vector<143x128xbf16>, vector<16x128xf32> -> vector<16x128xf32>
    %93 = arith.truncf %92 : vector<16x128xf32> to vector<16x128xbf16>
    %94 = vector.shape_cast %93 : vector<16x128xbf16> to vector<16x1x128xbf16>
    %95 = vector.extract_strided_slice %94 {offsets = [0, 0, 0], sizes = [1, 1, 128], strides = [1, 1, 1]} : vector<16x1x128xbf16> to vector<1x1x128xbf16>
    %96 = vector.shape_cast %95 : vector<1x1x128xbf16> to vector<1x128xbf16>
    %c0_19 = arith.constant 0 : index
    %c0_20 = arith.constant 0 : index
    %c0_21 = arith.constant 0 : index
    %97 = vector.load %arg8[%c0_19, %c0_20, %c0_21] : memref<16x128x128xbf16, #tpu.memory_space<vmem>>, vector<1x128x128xbf16>
    %98 = vector.shape_cast %97 : vector<1x128x128xbf16> to vector<128x128xbf16>
    %cst_22 = arith.constant dense<0.000000e+00> : vector<1x128xf32>
    %99 = tpu.matmul %96, %98, %cst_22 {dimension_numbers = #tpu.dot_dimension_numbers<[1], [0], [0], [1], [0, 0, 1, 1], [], []>} : vector<1x128xbf16>, vector<128x128xbf16>, vector<1x128xf32> -> vector<1x128xf32>
    %100 = vector.extract_strided_slice %94 {offsets = [1, 0, 0], sizes = [1, 1, 128], strides = [1, 1, 1]} : vector<16x1x128xbf16> to vector<1x1x128xbf16>
    %101 = vector.shape_cast %100 : vector<1x1x128xbf16> to vector<1x128xbf16>
    %c1 = arith.constant 1 : index
    %c0_23 = arith.constant 0 : index
    %c0_24 = arith.constant 0 : index
    %102 = vector.load %arg8[%c1, %c0_23, %c0_24] : memref<16x128x128xbf16, #tpu.memory_space<vmem>>, vector<1x128x128xbf16>
    %103 = vector.shape_cast %102 : vector<1x128x128xbf16> to vector<128x128xbf16>
    %cst_25 = arith.constant dense<0.000000e+00> : vector<1x128xf32>
    %104 = tpu.matmul %101, %103, %cst_25 {dimension_numbers = #tpu.dot_dimension_numbers<[1], [0], [0], [1], [0, 0, 1, 1], [], []>} : vector<1x128xbf16>, vector<128x128xbf16>, vector<1x128xf32> -> vector<1x128xf32>
    %105 = arith.addf %99, %104 : vector<1x128xf32>
    %106 = vector.extract_strided_slice %94 {offsets = [2, 0, 0], sizes = [1, 1, 128], strides = [1, 1, 1]} : vector<16x1x128xbf16> to vector<1x1x128xbf16>
    %107 = vector.shape_cast %106 : vector<1x1x128xbf16> to vector<1x128xbf16>
    %c2 = arith.constant 2 : index
    %c0_26 = arith.constant 0 : index
    %c0_27 = arith.constant 0 : index
    %108 = vector.load %arg8[%c2, %c0_26, %c0_27] : memref<16x128x128xbf16, #tpu.memory_space<vmem>>, vector<1x128x128xbf16>
    %109 = vector.shape_cast %108 : vector<1x128x128xbf16> to vector<128x128xbf16>
    %cst_28 = arith.constant dense<0.000000e+00> : vector<1x128xf32>
    %110 = tpu.matmul %107, %109, %cst_28 {dimension_numbers = #tpu.dot_dimension_numbers<[1], [0], [0], [1], [0, 0, 1, 1], [], []>} : vector<1x128xbf16>, vector<128x128xbf16>, vector<1x128xf32> -> vector<1x128xf32>
    %111 = arith.addf %105, %110 : vector<1x128xf32>
    %112 = vector.extract_strided_slice %94 {offsets = [3, 0, 0], sizes = [1, 1, 128], strides = [1, 1, 1]} : vector<16x1x128xbf16> to vector<1x1x128xbf16>
    %113 = vector.shape_cast %112 : vector<1x1x128xbf16> to vector<1x128xbf16>
    %c3 = arith.constant 3 : index
    %c0_29 = arith.constant 0 : index
    %c0_30 = arith.constant 0 : index
    %114 = vector.load %arg8[%c3, %c0_29, %c0_30] : memref<16x128x128xbf16, #tpu.memory_space<vmem>>, vector<1x128x128xbf16>
    %115 = vector.shape_cast %114 : vector<1x128x128xbf16> to vector<128x128xbf16>
    %cst_31 = arith.constant dense<0.000000e+00> : vector<1x128xf32>
    %116 = tpu.matmul %113, %115, %cst_31 {dimension_numbers = #tpu.dot_dimension_numbers<[1], [0], [0], [1], [0, 0, 1, 1], [], []>} : vector<1x128xbf16>, vector<128x128xbf16>, vector<1x128xf32> -> vector<1x128xf32>
    %117 = arith.addf %111, %116 : vector<1x128xf32>
    %118 = vector.extract_strided_slice %94 {offsets = [4, 0, 0], sizes = [1, 1, 128], strides = [1, 1, 1]} : vector<16x1x128xbf16> to vector<1x1x128xbf16>
    %119 = vector.shape_cast %118 : vector<1x1x128xbf16> to vector<1x128xbf16>
    %c4 = arith.constant 4 : index
    %c0_32 = arith.constant 0 : index
    %c0_33 = arith.constant 0 : index
    %120 = vector.load %arg8[%c4, %c0_32, %c0_33] : memref<16x128x128xbf16, #tpu.memory_space<vmem>>, vector<1x128x128xbf16>
    %121 = vector.shape_cast %120 : vector<1x128x128xbf16> to vector<128x128xbf16>
    %cst_34 = arith.constant dense<0.000000e+00> : vector<1x128xf32>
    %122 = tpu.matmul %119, %121, %cst_34 {dimension_numbers = #tpu.dot_dimension_numbers<[1], [0], [0], [1], [0, 0, 1, 1], [], []>} : vector<1x128xbf16>, vector<128x128xbf16>, vector<1x128xf32> -> vector<1x128xf32>
    %123 = arith.addf %117, %122 : vector<1x128xf32>
    %124 = vector.extract_strided_slice %94 {offsets = [5, 0, 0], sizes = [1, 1, 128], strides = [1, 1, 1]} : vector<16x1x128xbf16> to vector<1x1x128xbf16>
    %125 = vector.shape_cast %124 : vector<1x1x128xbf16> to vector<1x128xbf16>
    %c5 = arith.constant 5 : index
    %c0_35 = arith.constant 0 : index
    %c0_36 = arith.constant 0 : index
    %126 = vector.load %arg8[%c5, %c0_35, %c0_36] : memref<16x128x128xbf16, #tpu.memory_space<vmem>>, vector<1x128x128xbf16>
    %127 = vector.shape_cast %126 : vector<1x128x128xbf16> to vector<128x128xbf16>
    %cst_37 = arith.constant dense<0.000000e+00> : vector<1x128xf32>
    %128 = tpu.matmul %125, %127, %cst_37 {dimension_numbers = #tpu.dot_dimension_numbers<[1], [0], [0], [1], [0, 0, 1, 1], [], []>} : vector<1x128xbf16>, vector<128x128xbf16>, vector<1x128xf32> -> vector<1x128xf32>
    %129 = arith.addf %123, %128 : vector<1x128xf32>
    %130 = vector.extract_strided_slice %94 {offsets = [6, 0, 0], sizes = [1, 1, 128], strides = [1, 1, 1]} : vector<16x1x128xbf16> to vector<1x1x128xbf16>
    %131 = vector.shape_cast %130 : vector<1x1x128xbf16> to vector<1x128xbf16>
    %c6 = arith.constant 6 : index
    %c0_38 = arith.constant 0 : index
    %c0_39 = arith.constant 0 : index
    %132 = vector.load %arg8[%c6, %c0_38, %c0_39] : memref<16x128x128xbf16, #tpu.memory_space<vmem>>, vector<1x128x128xbf16>
    %133 = vector.shape_cast %132 : vector<1x128x128xbf16> to vector<128x128xbf16>
    %cst_40 = arith.constant dense<0.000000e+00> : vector<1x128xf32>
    %134 = tpu.matmul %131, %133, %cst_40 {dimension_numbers = #tpu.dot_dimension_numbers<[1], [0], [0], [1], [0, 0, 1, 1], [], []>} : vector<1x128xbf16>, vector<128x128xbf16>, vector<1x128xf32> -> vector<1x128xf32>
    %135 = arith.addf %129, %134 : vector<1x128xf32>
    %136 = vector.extract_strided_slice %94 {offsets = [7, 0, 0], sizes = [1, 1, 128], strides = [1, 1, 1]} : vector<16x1x128xbf16> to vector<1x1x128xbf16>
    %137 = vector.shape_cast %136 : vector<1x1x128xbf16> to vector<1x128xbf16>
    %c7 = arith.constant 7 : index
    %c0_41 = arith.constant 0 : index
    %c0_42 = arith.constant 0 : index
    %138 = vector.load %arg8[%c7, %c0_41, %c0_42] : memref<16x128x128xbf16, #tpu.memory_space<vmem>>, vector<1x128x128xbf16>
    %139 = vector.shape_cast %138 : vector<1x128x128xbf16> to vector<128x128xbf16>
    %cst_43 = arith.constant dense<0.000000e+00> : vector<1x128xf32>
    %140 = tpu.matmul %137, %139, %cst_43 {dimension_numbers = #tpu.dot_dimension_numbers<[1], [0], [0], [1], [0, 0, 1, 1], [], []>} : vector<1x128xbf16>, vector<128x128xbf16>, vector<1x128xf32> -> vector<1x128xf32>
    %141 = arith.addf %135, %140 : vector<1x128xf32>
    %142 = vector.extract_strided_slice %94 {offsets = [8, 0, 0], sizes = [1, 1, 128], strides = [1, 1, 1]} : vector<16x1x128xbf16> to vector<1x1x128xbf16>
    %143 = vector.shape_cast %142 : vector<1x1x128xbf16> to vector<1x128xbf16>
    %c8 = arith.constant 8 : index
    %c0_44 = arith.constant 0 : index
    %c0_45 = arith.constant 0 : index
    %144 = vector.load %arg8[%c8, %c0_44, %c0_45] : memref<16x128x128xbf16, #tpu.memory_space<vmem>>, vector<1x128x128xbf16>
    %145 = vector.shape_cast %144 : vector<1x128x128xbf16> to vector<128x128xbf16>
    %cst_46 = arith.constant dense<0.000000e+00> : vector<1x128xf32>
    %146 = tpu.matmul %143, %145, %cst_46 {dimension_numbers = #tpu.dot_dimension_numbers<[1], [0], [0], [1], [0, 0, 1, 1], [], []>} : vector<1x128xbf16>, vector<128x128xbf16>, vector<1x128xf32> -> vector<1x128xf32>
    %147 = arith.addf %141, %146 : vector<1x128xf32>
    %148 = vector.extract_strided_slice %94 {offsets = [9, 0, 0], sizes = [1, 1, 128], strides = [1, 1, 1]} : vector<16x1x128xbf16> to vector<1x1x128xbf16>
    %149 = vector.shape_cast %148 : vector<1x1x128xbf16> to vector<1x128xbf16>
    %c9 = arith.constant 9 : index
    %c0_47 = arith.constant 0 : index
    %c0_48 = arith.constant 0 : index
    %150 = vector.load %arg8[%c9, %c0_47, %c0_48] : memref<16x128x128xbf16, #tpu.memory_space<vmem>>, vector<1x128x128xbf16>
    %151 = vector.shape_cast %150 : vector<1x128x128xbf16> to vector<128x128xbf16>
    %cst_49 = arith.constant dense<0.000000e+00> : vector<1x128xf32>
    %152 = tpu.matmul %149, %151, %cst_49 {dimension_numbers = #tpu.dot_dimension_numbers<[1], [0], [0], [1], [0, 0, 1, 1], [], []>} : vector<1x128xbf16>, vector<128x128xbf16>, vector<1x128xf32> -> vector<1x128xf32>
    %153 = arith.addf %147, %152 : vector<1x128xf32>
    %154 = vector.extract_strided_slice %94 {offsets = [10, 0, 0], sizes = [1, 1, 128], strides = [1, 1, 1]} : vector<16x1x128xbf16> to vector<1x1x128xbf16>
    %155 = vector.shape_cast %154 : vector<1x1x128xbf16> to vector<1x128xbf16>
    %c10 = arith.constant 10 : index
    %c0_50 = arith.constant 0 : index
    %c0_51 = arith.constant 0 : index
    %156 = vector.load %arg8[%c10, %c0_50, %c0_51] : memref<16x128x128xbf16, #tpu.memory_space<vmem>>, vector<1x128x128xbf16>
    %157 = vector.shape_cast %156 : vector<1x128x128xbf16> to vector<128x128xbf16>
    %cst_52 = arith.constant dense<0.000000e+00> : vector<1x128xf32>
    %158 = tpu.matmul %155, %157, %cst_52 {dimension_numbers = #tpu.dot_dimension_numbers<[1], [0], [0], [1], [0, 0, 1, 1], [], []>} : vector<1x128xbf16>, vector<128x128xbf16>, vector<1x128xf32> -> vector<1x128xf32>
    %159 = arith.addf %153, %158 : vector<1x128xf32>
    %160 = vector.extract_strided_slice %94 {offsets = [11, 0, 0], sizes = [1, 1, 128], strides = [1, 1, 1]} : vector<16x1x128xbf16> to vector<1x1x128xbf16>
    %161 = vector.shape_cast %160 : vector<1x1x128xbf16> to vector<1x128xbf16>
    %c11 = arith.constant 11 : index
    %c0_53 = arith.constant 0 : index
    %c0_54 = arith.constant 0 : index
    %162 = vector.load %arg8[%c11, %c0_53, %c0_54] : memref<16x128x128xbf16, #tpu.memory_space<vmem>>, vector<1x128x128xbf16>
    %163 = vector.shape_cast %162 : vector<1x128x128xbf16> to vector<128x128xbf16>
    %cst_55 = arith.constant dense<0.000000e+00> : vector<1x128xf32>
    %164 = tpu.matmul %161, %163, %cst_55 {dimension_numbers = #tpu.dot_dimension_numbers<[1], [0], [0], [1], [0, 0, 1, 1], [], []>} : vector<1x128xbf16>, vector<128x128xbf16>, vector<1x128xf32> -> vector<1x128xf32>
    %165 = arith.addf %159, %164 : vector<1x128xf32>
    %166 = vector.extract_strided_slice %94 {offsets = [12, 0, 0], sizes = [1, 1, 128], strides = [1, 1, 1]} : vector<16x1x128xbf16> to vector<1x1x128xbf16>
    %167 = vector.shape_cast %166 : vector<1x1x128xbf16> to vector<1x128xbf16>
    %c12 = arith.constant 12 : index
    %c0_56 = arith.constant 0 : index
    %c0_57 = arith.constant 0 : index
    %168 = vector.load %arg8[%c12, %c0_56, %c0_57] : memref<16x128x128xbf16, #tpu.memory_space<vmem>>, vector<1x128x128xbf16>
    %169 = vector.shape_cast %168 : vector<1x128x128xbf16> to vector<128x128xbf16>
    %cst_58 = arith.constant dense<0.000000e+00> : vector<1x128xf32>
    %170 = tpu.matmul %167, %169, %cst_58 {dimension_numbers = #tpu.dot_dimension_numbers<[1], [0], [0], [1], [0, 0, 1, 1], [], []>} : vector<1x128xbf16>, vector<128x128xbf16>, vector<1x128xf32> -> vector<1x128xf32>
    %171 = arith.addf %165, %170 : vector<1x128xf32>
    %172 = vector.extract_strided_slice %94 {offsets = [13, 0, 0], sizes = [1, 1, 128], strides = [1, 1, 1]} : vector<16x1x128xbf16> to vector<1x1x128xbf16>
    %173 = vector.shape_cast %172 : vector<1x1x128xbf16> to vector<1x128xbf16>
    %c13 = arith.constant 13 : index
    %c0_59 = arith.constant 0 : index
    %c0_60 = arith.constant 0 : index
    %174 = vector.load %arg8[%c13, %c0_59, %c0_60] : memref<16x128x128xbf16, #tpu.memory_space<vmem>>, vector<1x128x128xbf16>
    %175 = vector.shape_cast %174 : vector<1x128x128xbf16> to vector<128x128xbf16>
    %cst_61 = arith.constant dense<0.000000e+00> : vector<1x128xf32>
    %176 = tpu.matmul %173, %175, %cst_61 {dimension_numbers = #tpu.dot_dimension_numbers<[1], [0], [0], [1], [0, 0, 1, 1], [], []>} : vector<1x128xbf16>, vector<128x128xbf16>, vector<1x128xf32> -> vector<1x128xf32>
    %177 = arith.addf %171, %176 : vector<1x128xf32>
    %178 = vector.extract_strided_slice %94 {offsets = [14, 0, 0], sizes = [1, 1, 128], strides = [1, 1, 1]} : vector<16x1x128xbf16> to vector<1x1x128xbf16>
    %179 = vector.shape_cast %178 : vector<1x1x128xbf16> to vector<1x128xbf16>
    %c14 = arith.constant 14 : index
    %c0_62 = arith.constant 0 : index
    %c0_63 = arith.constant 0 : index
    %180 = vector.load %arg8[%c14, %c0_62, %c0_63] : memref<16x128x128xbf16, #tpu.memory_space<vmem>>, vector<1x128x128xbf16>
    %181 = vector.shape_cast %180 : vector<1x128x128xbf16> to vector<128x128xbf16>
    %cst_64 = arith.constant dense<0.000000e+00> : vector<1x128xf32>
    %182 = tpu.matmul %179, %181, %cst_64 {dimension_numbers = #tpu.dot_dimension_numbers<[1], [0], [0], [1], [0, 0, 1, 1], [], []>} : vector<1x128xbf16>, vector<128x128xbf16>, vector<1x128xf32> -> vector<1x128xf32>
    %183 = arith.addf %177, %182 : vector<1x128xf32>
    %184 = vector.extract_strided_slice %94 {offsets = [15, 0, 0], sizes = [1, 1, 128], strides = [1, 1, 1]} : vector<16x1x128xbf16> to vector<1x1x128xbf16>
    %185 = vector.shape_cast %184 : vector<1x1x128xbf16> to vector<1x128xbf16>
    %c15 = arith.constant 15 : index
    %c0_65 = arith.constant 0 : index
    %c0_66 = arith.constant 0 : index
    %186 = vector.load %arg8[%c15, %c0_65, %c0_66] : memref<16x128x128xbf16, #tpu.memory_space<vmem>>, vector<1x128x128xbf16>
    %187 = vector.shape_cast %186 : vector<1x128x128xbf16> to vector<128x128xbf16>
    %cst_67 = arith.constant dense<0.000000e+00> : vector<1x128xf32>
    %188 = tpu.matmul %185, %187, %cst_67 {dimension_numbers = #tpu.dot_dimension_numbers<[1], [0], [0], [1], [0, 0, 1, 1], [], []>} : vector<1x128xbf16>, vector<128x128xbf16>, vector<1x128xf32> -> vector<1x128xf32>
    %189 = arith.addf %183, %188 : vector<1x128xf32>
    %c0_68 = arith.constant 0 : index
    %c0_69 = arith.constant 0 : index
    %190 = vector.load %arg9[%c0_68, %c0_69] : memref<1x128xf32, #tpu.memory_space<vmem>>, vector<1x128xf32>
    %191 = arith.addf %189, %190 : vector<1x128xf32>
    %cst_70 = arith.constant 0.000000e+00 : f32
    %192 = vector.broadcast %cst_70 : f32 to vector<1x128xf32>
    %193 = arith.maximumf %191, %192 : vector<1x128xf32>
    %194 = arith.truncf %193 : vector<1x128xf32> to vector<1x128xbf16>
    %c0_71 = arith.constant 0 : index
    %c0_72 = arith.constant 0 : index
    %195 = vector.load %arg10[%c0_71, %c0_72] : memref<128x128xbf16, #tpu.memory_space<vmem>>, vector<128x128xbf16>
    %cst_73 = arith.constant dense<0.000000e+00> : vector<1x128xf32>
    %196 = tpu.matmul %194, %195, %cst_73 {dimension_numbers = #tpu.dot_dimension_numbers<[1], [0], [0], [1], [0, 0, 1, 1], [], []>} : vector<1x128xbf16>, vector<128x128xbf16>, vector<1x128xf32> -> vector<1x128xf32>
    %c0_74 = arith.constant 0 : index
    %c0_75 = arith.constant 0 : index
    %197 = vector.load %arg11[%c0_74, %c0_75] : memref<1x128xf32, #tpu.memory_space<vmem>>, vector<1x128xf32>
    %198 = arith.addf %196, %197 : vector<1x128xf32>
    %cst_76 = arith.constant 0.000000e+00 : f32
    %199 = vector.broadcast %cst_76 : f32 to vector<1x128xf32>
    %200 = arith.maximumf %198, %199 : vector<1x128xf32>
    %201 = arith.truncf %200 : vector<1x128xf32> to vector<1x128xbf16>
    %c0_77 = arith.constant 0 : index
    %c0_78 = arith.constant 0 : index
    %202 = vector.load %arg12[%c0_77, %c0_78] : memref<128x128xbf16, #tpu.memory_space<vmem>>, vector<128x128xbf16>
    %cst_79 = arith.constant dense<0.000000e+00> : vector<1x128xf32>
    %203 = tpu.matmul %201, %202, %cst_79 {dimension_numbers = #tpu.dot_dimension_numbers<[1], [0], [0], [1], [0, 0, 1, 1], [], []>} : vector<1x128xbf16>, vector<128x128xbf16>, vector<1x128xf32> -> vector<1x128xf32>
    %c0_80 = arith.constant 0 : index
    %c0_81 = arith.constant 0 : index
    %204 = vector.load %arg13[%c0_80, %c0_81] : memref<1x128xf32, #tpu.memory_space<vmem>>, vector<1x128xf32>
    %205 = arith.addf %203, %204 : vector<1x128xf32>
    %c0_82 = arith.constant 0 : index
    %c0_83 = arith.constant 0 : index
    %c0_84 = arith.constant 0 : index
    %206 = vector.load %arg14[%c0_82, %c0_83, %c0_84] : memref<1x1x128xf32, #tpu.memory_space<vmem>>, vector<1x1x128xf32>
    %207 = vector.shape_cast %206 : vector<1x1x128xf32> to vector<1x128xf32>
    %208 = vector.shape_cast %205 : vector<1x128xf32> to vector<1x1x128xf32>
    tpu.vector_store %arg14[%c0_82, %c0_83, %c0_84], %208 {strides = array<i32>} : memref<1x1x128xf32, #tpu.memory_space<vmem>>, vector<1x1x128xf32>,
    return
  }
  func.func @transform_0(%arg0: i32) -> (i32, i32, i32) {
    %c0_i32 = arith.constant 0 : i32
    %c0_i32_0 = arith.constant 0 : i32
    %c0_i32_1 = arith.constant 0 : i32
    return %arg0, %c0_i32, %c0_i32_0 : i32, i32, i32
  }
  func.func @transform_1(%arg0: i32) -> (i32, i32) {
    %c0_i32 = arith.constant 0 : i32
    %c0_i32_0 = arith.constant 0 : i32
    %c0_i32_1 = arith.constant 0 : i32
    return %c0_i32, %c0_i32_0 : i32, i32
  }
  func.func @transform_2(%arg0: i32) -> (i32, i32) {
    %c0_i32 = arith.constant 0 : i32
    %c0_i32_0 = arith.constant 0 : i32
    %c0_i32_1 = arith.constant 0 : i32
    return %c0_i32, %c0_i32_0 : i32, i32
  }
  func.func @transform_3(%arg0: i32) -> (i32, i32) {
    %c0_i32 = arith.constant 0 : i32
    %c0_i32_0 = arith.constant 0 : i32
    %c0_i32_1 = arith.constant 0 : i32
    return %c0_i32, %c0_i32_0 : i32, i32
  }
  func.func @transform_4(%arg0: i32) -> (i32, i32) {
    %c0_i32 = arith.constant 0 : i32
    %c0_i32_0 = arith.constant 0 : i32
    %c0_i32_1 = arith.constant 0 : i32
    return %c0_i32, %c0_i32_0 : i32, i32
  }
  func.func @transform_5(%arg0: i32) -> (i32, i32) {
    %c0_i32 = arith.constant 0 : i32
    %c0_i32_0 = arith.constant 0 : i32
    %c0_i32_1 = arith.constant 0 : i32
    return %c0_i32, %c0_i32_0 : i32, i32
  }
  func.func @transform_6(%arg0: i32) -> (i32, i32) {
    %c0_i32 = arith.constant 0 : i32
    %c0_i32_0 = arith.constant 0 : i32
    %c0_i32_1 = arith.constant 0 : i32
    return %c0_i32, %c0_i32_0 : i32, i32
  }
  func.func @transform_7(%arg0: i32) -> (i32, i32, i32) {
    %c0_i32 = arith.constant 0 : i32
    %c0_i32_0 = arith.constant 0 : i32
    %c0_i32_1 = arith.constant 0 : i32
    %c0_i32_2 = arith.constant 0 : i32
    return %c0_i32, %c0_i32_0, %c0_i32_1 : i32, i32, i32
  }
  func.func @transform_8(%arg0: i32) -> (i32, i32) {
    %c0_i32 = arith.constant 0 : i32
    %c0_i32_0 = arith.constant 0 : i32
    %c0_i32_1 = arith.constant 0 : i32
    return %c0_i32, %c0_i32_0 : i32, i32
  }
  func.func @transform_9(%arg0: i32) -> (i32, i32) {
    %c0_i32 = arith.constant 0 : i32
    %c0_i32_0 = arith.constant 0 : i32
    %c0_i32_1 = arith.constant 0 : i32
    return %c0_i32, %c0_i32_0 : i32, i32
  }
  func.func @transform_10(%arg0: i32) -> (i32, i32) {
    %c0_i32 = arith.constant 0 : i32
    %c0_i32_0 = arith.constant 0 : i32
    %c0_i32_1 = arith.constant 0 : i32
    return %c0_i32, %c0_i32_0 : i32, i32
  }
  func.func @transform_11(%arg0: i32) -> (i32, i32) {
    %c0_i32 = arith.constant 0 : i32
    %c0_i32_0 = arith.constant 0 : i32
    %c0_i32_1 = arith.constant 0 : i32
    return %c0_i32, %c0_i32_0 : i32, i32
  }
  func.func @transform_12(%arg0: i32) -> (i32, i32) {
    %c0_i32 = arith.constant 0 : i32
    %c0_i32_0 = arith.constant 0 : i32
    %c0_i32_1 = arith.constant 0 : i32
    return %c0_i32, %c0_i32_0 : i32, i32
  }
  func.func @transform_13(%arg0: i32) -> (i32, i32, i32) {
    %c0_i32 = arith.constant 0 : i32
    %c0_i32_0 = arith.constant 0 : i32
    %c0_i32_1 = arith.constant 0 : i32
    return %arg0, %c0_i32, %c0_i32_0 : i32, i32, i32
  }
}

</mosaic_0001>

<bundles_post_ra>
// kernel: net_forward.1
= control target key start
LH: loop header
LB: loop body
LE: loop exit
PB: predicated region body
PF: predicated region fallthrough
CT: control target
= control target key end

     0   :  { %s7896_s0 = inlined_call_operand.vmem [shape: bf16[2,8,1152], index: 0, kind: input, shape index: {}]   ;;  %s7897_s1 = inlined_call_operand.vmem [shape: bf16[8,200], index: 1, kind: input, shape index: {}]   ;;  %s7898_s2 = inlined_call_operand.vmem [shape: f32[8,1], index: 2, kind: input, shape index: {}]   ;;  %s7899_s3 = inlined_call_operand.hbm [shape: bf16[863,256], index: 3, kind: input, shape index: {}]   ;;  %s7900_s4 = inlined_call_operand.vmem [shape: bf16[16,200], index: 4, kind: input, shape index: {}]   ;;  %s7901_s5 = inlined_call_operand.vmem [shape: f32[16,1], index: 5, kind: input, shape index: {}]   ;;  %s7902_s6 = inlined_call_operand.vmem [shape: bf16[143,128], index: 6, kind: input, shape index: {}]   ;;  %s7903_s7 = inlined_call_operand.hbm [shape: bf16[16,128,128], index: 7, kind: input, shape index: {}]   ;;  %s7904_s8 = inlined_call_operand.vmem [shape: f32[1,128], index: 8, kind: input, shape index: {}]   ;;  %s7905_s9 = inlined_call_operand.vmem [shape: bf16[128,128], index: 9, kind: input, shape index: {}]   ;;  %s7906_s10 = inlined_call_operand.vmem [shape: f32[1,128], index: 10, kind: input, shape index: {}]   ;;  %s7907_s11 = inlined_call_operand.vmem [shape: bf16[128,128], index: 11, kind: input, shape index: {}]   ;;  %s7908_s12 = inlined_call_operand.vmem [shape: f32[1,128], index: 12, kind: input, shape index: {}]   ;;  %s7909_s13 = inlined_call_operand.hbm [shape: f32[2,1,128], index: 13, kind: output, shape index: {}]  }
   0x1   :  { %7951 = sst [smem:[#allocation36_spill]] %s7899_s3 }
   0x2   :  { %18 = vsyncpa [#allocation3], 0 }
   0x3   :  { %19 = vsyncpa [#allocation6], 0 }
   0x4   :  { %20 = vsyncpa [#allocation4], 0 }
   0x5   :  { %22 = vsyncpa [#allocation4 + $0x1], 0  ;;  %s6199_s25 = smov 0   ;;  %s6201_s26 = smov 0  }
   0x6   :  { %s6203_s27 = smov 0   ;;  %s6205_s28 = smov 0  }
   0x7 LB: > { %7952 = sst [smem:[#allocation11_spill]] %s6090_s27  ;;  %s6220_s29 = sadd.s32 4294967295, %s6094_s28   ;;  %s6094_s28 = sphi %s6205_s28, %s8024_s28   ;;  %s6090_s27 = sphi %s6203_s27, %s8026_s27   ;;  %s6086_s26 = sphi %s6201_s26, %s8028_s26   ;;  %s6082_s25 = sphi %s6199_s25, %s8027_s25  }
   0x8   : > { %s4487_s30 = sadd.s32 4294967294, %s6094_s28   ;;  %s6224_s14 = sadd.s32 1, %s6094_s28  }
   0x9   : > { %7953 = sst [smem:[#allocation12_spill]] %s6224_s14  ;;  %s313_s15 = sadd.s32 1, %s6090_s27 }
   0xa   : > { %s310_s16 = ssub.s32 %s6094_s28, %s6224_s14  ;;  %p323_p0 = scmp.ne.s32.totalorder %s6090_s27, %s6086_s26 }
   0xb   : > { %p311_p1 = scmp.eq.s32.totalorder %s310_s16, 0  ;;  %p324_p2 = scmp.eq.s32.totalorder %s6220_s29, 1 }
   0xc   : > { %p329_p3 = scmp.ne.s32.totalorder %s6086_s26, %s6082_s25  ;;  %p330_p4 = scmp.eq.s32.totalorder %s4487_s30, 1 }
   0xd   : > { %s6235_s17 = scalar_select %p311_p1, %s6090_s27, %s313_s15  }
   0xe   : > { %p6237_p5 = por %p324_p2, %p323_p0  ;;  %p6241_p6 = por %p330_p4, %p329_p3 }
   0xf   : > { %7954 = sst [smem:[#allocation13_spill]] %s6235_s17  ;;  %p4488_p7 = scmp.ge.s32.totalorder %s6094_s28, 1 }
  0x10   : > { %s7956_s19 = scalar_select %p6241_p6, 1, 0 }
  0x11   : > { %p337_p8 = scmp.lt.s32.totalorder %s6094_s28, 3  ;;  %p5847_p9 = scmp.eq.s32.totalorder %s6220_s29, 0 }
  0x12   : > { %7957 = sst [smem:[#allocation14_spill]] %s7956_s19  ;;  %s6096_s24 = smov [#allocation2]  }
  0x13   : > { %p6248_p10 = pnand %p4488_p7, %p337_p8  ;;  %s7959_s3 = sld [smem:[#allocation36_spill]] }
  0x14   : > { %s356_s30 = sshll.u32 %s6096_s24, 4  ;;  %s377_s17 = sshll.u32 %s7903_s7, 4  ;;  %s357_s30 = int_to_ptr.vmem [resolvable:$true] %s356_s30  ;;  %s378_s17 = int_to_ptr.hbm [resolvable:$true] %s377_s17 }
  0x15   : > { %p5836_p11 = pneg %p6248_p10  ;;  %s6097_s27 = smov 128  }
  0x16   : > { %s6098_s14 = smov 8   ;;  %s6099_s19 = smov [#allocation5]  }
  0x17   : > { %p5837_p12 = pnand %p5847_p9, %p5836_p11  ;;  %s379_s21 = sshll.u32 %s6099_s19, 4  ;;  %s380_s21 = int_to_ptr.vmem [resolvable:$true] %s379_s21 }
  0x18   : > { %s6100_s22 = smov 64   ;;  %418 = sbr.rel (%p6248_p10) target bundleno = 2443 (0x98b), region = 72 }
  0x19   : > { %s354_s23 = sshll.u32 %s7959_s3, 4  ;;  %s6101_s3 = smov 4   ;;  %s355_s23 = int_to_ptr.hbm [resolvable:$true] %s354_s23 }
  0x1a   : > { %5839 = dma.hbm_to_vmem [thread:$0]  (!%p5837_p12), %s355_s23, 13824, %s357_s30, [#allocation3], %s6097_s27, %s6097_s27, %s6098_s14  }
  0x1b   : > { %5842 = dma.hbm_to_vmem [thread:$0]  (!%p5837_p12), %s378_s17, 16384, %s380_s21, [#allocation6], %s6100_s22, %s6100_s22, %s6101_s3  }
  0x1d   : > { %6069 = dma.done.wait (%p5847_p9), [#allocation3], 13824  }
  0x1e   : > { %6071 = vsyncadd (%p5847_p9), [#allocation3], 4294953472 }
  0x1f   : > { %6073 = dma.done.wait (%p5847_p9), [#allocation6], 16384  }
  0x20   : > { %6075 = vsyncadd (%p5847_p9), [#allocation6], 4294950912  ;;  %p467_p13 = scmp.lt.s32.totalorder %s6220_s29, 1  ;;  %s7935_s20 = smov 93   ;;  %vm7950_vm0 = vcmask 760832   ;;  %vm790_vm1 = vcmask 769024  }
  0x21   : > { %s7942_s23 = smov 95   ;;  %s6104_s24 = smov 94   ;;  %vm766_vm2 = vcmask 777216   ;;  %vm990_vm3 = vcmask 1043456   ;;  %vm1229_vm4 = vcmask 793600   ;;  %vm742_vm5 = vcmask 785408  }
  0x22   : > { %s468_s27 = scalar_select %p467_p13, %s6220_s29, 1  ;;  %vm7947_vm6 = vcmask 1022976   ;;  %vm670_vm7 = vcmask 1031168   ;;  %vm1393_vm8 = vcmask 252928   ;;  %vm958_vm9 = vcmask 490496  }
  0x23   : > { %s6105_s30 = smov 96   ;;  %s7914_s15 = smov 97   ;;  %vm982_vm10 = vcmask 261120   ;;  %vm646_vm11 = vcmask 1039360   ;;  %vm910_vm12 = vcmask 506880   ;;  %vm7948_vm13 = vcmask 498688  }
  0x24   : > { %s5825_s3 = smul.u32 36, %s468_s27  ;;  %s6107_s16 = smov 126   ;;  %vm862_vm14 = vcmask 523264   ;;  %vm886_vm15 = vcmask 515072  }
  0x25   : > { %s7937_s21 = smov 125   ;;  %s6109_s22 = smov 127  }
  0x26   : > { %s6277_s19 = scalar_lea.vmem %s7896_s0, %s5825_s3  ;;  %s6110_s27 = smov 60  }
  0x27   : > { %v606_v0 = vld [vmem:[%s6277_s19 + $0x8] sm:$0xff]  ;;  %v605_v1 = vld [vmem:[%s6277_s19] sm:$0xff]  ;;  %v607_v8 = vld [vmem:[%s6277_s19 + $0x10] sm:$0xff]  ;;  %s7915_s3 = smov 32   ;;  %s6112_s14 = smov 31  }
  0x28   : > { %v617_v2 = vunpack.c.h.b16 %v606_v0  ;;  %v616_v3 = vunpack.c.l.b16 %v606_v0  ;;  %v615_v4 = vunpack.c.h.b16 %v605_v1  ;;  %v618_v9 = vunpack.c.l.b16 %v607_v8  ;;  %v6361_v15 = vld [vmem:[%s6277_s19 + $0x18] sm:$0xff]  ;;  %s7917_s17 = smov 61   ;;  %v609_v52 = vld [vmem:[%s6277_s19 + $0x20] sm:$0xf]  ;;  %s6115_s19 = smov 63  }
  0x29   : > { %v614_v10 = vunpack.c.l.b16 %v605_v1  ;;  %v619_v13 = vunpack.c.h.b16 %v607_v8  ;;  %v620_v16 = vunpack.c.l.b16 %v6361_v15  ;;  %v628_v47 = vunpack.c.h.b16 %v6361_v15 }
  0x2a   : > { %v6281_v5 = vpack.c.b16 %v617_v2, %v617_v2  ;;  %v6283_v6 = vpack.c.b16 %v616_v3, %v616_v3  ;;  %v6285_v7 = vpack.c.b16 %v615_v4, %v615_v4  ;;  %v6336_v11 = vpack.c.b16 %v618_v9, %v618_v9 }
  0x2b   : > { %v6338_v12 = vpack.c.b16 %v614_v10, %v614_v10  ;;  %v6358_v14 = vpack.c.b16 %v619_v13, %v619_v13  ;;  %v6370_v18 = vpack.c.b16 %v620_v16, %v620_v16  ;;  %v6487_v51 = vpack.c.b16 %v628_v47, %v628_v47 }
  0x2c   : > { %804 = vrot.lane.b32.xlu1 %v6281_v5, %s7935_s20  ;;  %754 = vrot.lane.b32.xlu2 %v6283_v6, %s7942_s23  ;;  %v1237_v53 = vunpack.c.l.b16 %v609_v52 }
  0x2d   : > { %800 = vrot.lane.b32.xlu0 %v6285_v7, %s7935_s20 }
  0x2e   : > { %v6502_v57 = vpack.c.b16 %v1237_v53, %v1237_v53 }
  0x34   : > { %756 = vrot.lane.b32.xlu2 %v6281_v5, %s7942_s23  ;;  %752 = vrot.lane.b32.xlu1 %v6285_v7, %s7942_s23 }
  0x35   : > { %802 = vrot.lane.b32.xlu0 %v6283_v6, %s7935_s20 }
  0x3c   : > { %780 = vrot.lane.b32.xlu2 %v6281_v5, %s6104_s24  ;;  %778 = vrot.lane.b32.xlu1 %v6283_v6, %s6104_s24 }
  0x3d   : > { %776 = vrot.lane.b32.xlu0 %v6285_v7, %s6104_s24 }
  0x44   : > { %732 = vrot.lane.b32.xlu2 %v6281_v5, %s6105_s30  ;;  %730 = vrot.lane.b32.xlu1 %v6283_v6, %s6105_s30 }
  0x45   : > { %728 = vrot.lane.b32.xlu0 %v6285_v7, %s6105_s30 }
  0x4c   : > { %1219 = vrot.lane.b32.xlu2 %v6281_v5, %s7914_s15  ;;  %1217 = vrot.lane.b32.xlu1 %v6283_v6, %s7914_s15 }
  0x4d   : > { %1215 = vrot.lane.b32.xlu0 %v6285_v7, %s7914_s15 }
  0x54   : > { %660 = vrot.lane.b32.xlu2 %v6281_v5, %s6107_s16  ;;  %658 = vrot.lane.b32.xlu1 %v6283_v6, %s6107_s16 }
  0x55   : > { %656 = vrot.lane.b32.xlu0 %v6285_v7, %s6107_s16 }
  0x5c   : > { %684 = vrot.lane.b32.xlu2 %v6281_v5, %s7937_s21  ;;  %682 = vrot.lane.b32.xlu1 %v6283_v6, %s7937_s21 }
  0x5d   : > { %680 = vrot.lane.b32.xlu0 %v6285_v7, %s7937_s21 }
  0x64   : > { %636 = vrot.lane.b32.xlu2 %v6281_v5, %s6109_s22  ;;  %634 = vrot.lane.b32.xlu1 %v6283_v6, %s6109_s22 }
  0x65   : > { %632 = vrot.lane.b32.xlu0 %v6285_v7, %s6109_s22 }
  0x6c   : > { %806 = vrot.lane.b32.xlu2 %v6336_v11, %s7935_s20  ;;  %678 = vrot.lane.b32.xlu1 %v6338_v12, %s7937_s21 }
  0x6d   : > { %654 = vrot.lane.b32.xlu0 %v6338_v12, %s6107_s16 }
  0x74   : > { %782 = vrot.lane.b32.xlu2 %v6336_v11, %s6104_s24  ;;  %758 = vrot.lane.b32.xlu1 %v6336_v11, %s7942_s23 }
  0x75   : > { %630 = vrot.lane.b32.xlu0 %v6338_v12, %s6109_s22 }
  0x7c   : > { %662 = vrot.lane.b32.xlu2 %v6336_v11, %s6107_s16  ;;  %1221 = vrot.lane.b32.xlu1 %v6336_v11, %s7914_s15 }
  0x7d   : > { %734 = vrot.lane.b32.xlu0 %v6336_v11, %s6105_s30 }
  0x84   : > { %638 = vrot.lane.b32.xlu2 %v6336_v11, %s6109_s22  ;;  %808 = vrot.lane.b32.xlu1 %v6358_v14, %s7935_s20 }
  0x85   : > { %686 = vrot.lane.b32.xlu0 %v6336_v11, %s7937_s21 }
  0x86   : > { %v755_v17 = vpop.permute.xlu2 %754 }
  0x8c   : > { %810 = vrot.lane.b32.xlu2 %v6370_v18, %s7935_s20  ;;  %784 = vrot.lane.b32.xlu1 %v6358_v14, %s6104_s24 }
  0x8d   : > { %760 = vrot.lane.b32.xlu0 %v6358_v14, %s7942_s23 }
  0x8e   : > { %v6378_v19 = vpop.permute.xlu2 %756 }
  0x8f   : > { %v769_v37 = vsel %vm766_vm2, %v755_v17, %v6378_v19 }
  0x94   : > { %762 = vrot.lane.b32.xlu2 %v6370_v18, %s7942_s23  ;;  %1223 = vrot.lane.b32.xlu1 %v6358_v14, %s7914_s15 }
  0x95   : > { %736 = vrot.lane.b32.xlu0 %v6358_v14, %s6105_s30 }
  0x96   : > { %v6386_v20 = vpop.permute.xlu2 %780 }
  0x9c   : > { %944 = vrot.lane.b32.xlu2 %v6285_v7, %s6110_s27  ;;  %688 = vrot.lane.b32.xlu1 %v6358_v14, %s7937_s21 }
  0x9d   : > { %786 = vrot.lane.b32.xlu0 %v6370_v18, %s6104_s24 }
  0x9e   : > { %v6394_v21 = vpop.permute.xlu1 %804  ;;  %v6396_v22 = vpop.permute.xlu2 %732 }
  0x9f   : > { %v6398_v23 = vpop.permute.xlu0 %800 }
  0xa4   : > { %970 = vrot.lane.b32.xlu2 %v6283_v6, %s7915_s3  ;;  %968 = vrot.lane.b32.xlu1 %v6285_v7, %s7915_s3 }
  0xa5   : > { %664 = vrot.lane.b32.xlu0 %v6358_v14, %s6107_s16 }
  0xa6   : > { %v6406_v24 = vpop.permute.xlu2 %1219  ;;  %v6408_v25 = vpop.permute.xlu1 %752 }
  0xa7   : > { %7960 = vst [vmem:[#allocation15_spill] sm:$0xff] %v6408_v25  ;;  %v803_v26 = vpop.permute.xlu0 %802  ;;  %v768_v39 = vsel %vm766_vm2, %v6408_v25, %v755_v17 }
  0xa8   : > { %v6412_v27 = vsel %vm7950_vm0, %v803_v26, %v6394_v21  ;;  %v6416_v28 = vsel %vm7950_vm0, %v6398_v23, %v803_v26 }
  0xac   : > { %1381 = vrot.lane.b32.xlu2 %v6412_v27, %s6112_s14  ;;  %1379 = vrot.lane.b32.xlu1 %v6416_v28, %s6112_s14 }
  0xad   : > { %946 = vrot.lane.b32.xlu0 %v6283_v6, %s6110_s27 }
  0xae   : > { %v6424_v29 = vpop.permute.xlu2 %660  ;;  %v779_v30 = vpop.permute.xlu1 %778 }
  0xaf   : > { %v6426_v31 = vpop.permute.xlu0 %776  ;;  %v793_v35 = vsel %vm790_vm1, %v779_v30, %v6386_v20 }
  0xb0   : > { %7961 = vst [vmem:[#allocation16_spill] sm:$0xff] %v6426_v31  ;;  %v792_v36 = vsel %vm790_vm1, %v6426_v31, %v779_v30  ;;  %v6445_v38 = vsel %vm990_vm3, %v769_v37, %v793_v35  ;;  %v1277_v0 = vsel %vm990_vm3, %v6408_v25, %v6426_v31 }
  0xb1   : > { %v6454_v40 = vsel %vm990_vm3, %v768_v39, %v792_v36 }
  0xb4   : > { %1377 = vrot.lane.b32.xlu2 %v6398_v23, %s6112_s14  ;;  %1225 = vrot.lane.b32.xlu1 %v6370_v18, %s7914_s15  ;;  %s6114_s15 = smov 62  }
  0xb5   : > { %738 = vrot.lane.b32.xlu0 %v6370_v18, %s6105_s30 }
  0xb6   : > { %v6434_v32 = vpop.permute.xlu2 %684  ;;  %v731_v33 = vpop.permute.xlu1 %730 }
  0xb7   : > { %v6436_v34 = vpop.permute.xlu0 %728  ;;  %v6522_v63 = vsel %vm742_vm5, %v731_v33, %v6396_v22 }
  0xb8   : > { %7962 = vst [vmem:[#allocation17_spill] sm:$0xff] %v6436_v34  ;;  %v6531_v2 = vsel %vm742_vm5, %v6436_v34, %v731_v33 }
  0xb9   : > { %7963 = vst [vmem:[#allocation18_spill] sm:$0xff] %v6522_v63 }
  0xba   : > { %7964 = vst [vmem:[#allocation19_spill] sm:$0xff] %v6531_v2 }
  0xbc   : > { %640 = vrot.lane.b32.xlu2 %v6358_v14, %s6109_s22  ;;  %1365 = vrot.lane.b32.xlu1 %v6445_v38, %s6112_s14 }
  0xbd   : > { %1363 = vrot.lane.b32.xlu0 %v6454_v40, %s6112_s14 }
  0xbe   : > { %v6458_v41 = vpop.permute.xlu2 %636  ;;  %v1218_v42 = vpop.permute.xlu1 %1217 }
  0xbf   : > { %v6460_v43 = vpop.permute.xlu0 %1215  ;;  %v1231_v61 = vsel %vm1229_vm4, %v1218_v42, %v6406_v24 }
  0xc0   : > { %v1230_v62 = vsel %vm1229_vm4, %v6460_v43, %v1218_v42  ;;  %v1263_v1 = vsel %vm990_vm3, %v1231_v61, %v6522_v63 }
  0xc1   : > { %v1261_v3 = vsel %vm990_vm3, %v1230_v62, %v6531_v2 }
  0xc4   : > { %920 = vrot.lane.b32.xlu2 %v6285_v7, %s7917_s17  ;;  %898 = vrot.lane.b32.xlu1 %v6283_v6, %s6114_s15 }
  0xc5   : > { %896 = vrot.lane.b32.xlu0 %v6285_v7, %s6114_s15 }
  0xc6   : > { %v6468_v44 = vpop.permute.xlu2 %806  ;;  %v6470_v45 = vpop.permute.xlu1 %658 }
  0xc7   : > { %v6472_v46 = vpop.permute.xlu0 %656  ;;  %v673_v52 = vsel %vm670_vm7, %v6470_v45, %v6424_v29 }
  0xc8   : > { %v672_v53 = vsel %vm670_vm7, %v6472_v46, %v6470_v45  ;;  %v1259_v45 = vsel %vm990_vm3, %v6460_v43, %v6436_v34 }
  0xcc   : > { %690 = vrot.lane.b32.xlu2 %v6370_v18, %s7937_s21  ;;  %666 = vrot.lane.b32.xlu1 %v6370_v18, %s6107_s16 }
  0xcd   : > { %922 = vrot.lane.b32.xlu0 %v6283_v6, %s7917_s17 }
  0xce   : > { %v6481_v48 = vpop.permute.xlu2 %782  ;;  %v6483_v49 = vpop.permute.xlu1 %682 }
  0xcf   : > { %v6485_v50 = vpop.permute.xlu0 %680  ;;  %v697_v42 = vsel %vm7947_vm6, %v6483_v49, %v6434_v32 }
  0xd0   : > { %v696_v47 = vsel %vm7947_vm6, %v6485_v50, %v6483_v49  ;;  %v6605_v61 = vsel %vm990_vm3, %v673_v52, %v697_v42 }
  0xd1   : > { %7965 = vst [vmem:[#allocation20_spill] sm:$0xff] %v6605_v61  ;;  %v6608_v62 = vsel %vm990_vm3, %v672_v53, %v696_v47 }
  0xd2   : > { %7966 = vst [vmem:[#allocation21_spill] sm:$0xff] %v6608_v62 }
  0xd4   : > { %948 = vrot.lane.b32.xlu2 %v6281_v5, %s6110_s27  ;;  %942 = vrot.lane.b32.xlu1 %v6338_v12, %s6110_s27 }
  0xd5   : > { %812 = vrot.lane.b32.xlu0 %v6487_v51, %s7935_s20 }
  0xd6   : > { %v6496_v54 = vpop.permute.xlu2 %662  ;;  %v6498_v55 = vpop.permute.xlu1 %634 }
  0xd7   : > { %v6500_v56 = vpop.permute.xlu0 %632 }
  0xdc   : > { %1248 = vrot.lane.b32.xlu2 %v6502_v57, %s7935_s20  ;;  %972 = vrot.lane.b32.xlu1 %v6281_v5, %s7915_s3 }
  0xdd   : > { %966 = vrot.lane.b32.xlu0 %v6338_v12, %s7915_s3  ;;  %s7925_s3 = smov 64  }
  0xde   : > { %v6510_v58 = vpop.permute.xlu2 %638  ;;  %v6512_v59 = vpop.permute.xlu1 %678 }
  0xdf   : > { %v6514_v60 = vpop.permute.xlu0 %654 }
  0xe4   : > { %1361 = vrot.lane.b32.xlu2 %v1277_v0, %s6112_s14  ;;  %1349 = vrot.lane.b32.xlu1 %v1263_v1, %s6112_s14 }
  0xe5   : > { %1347 = vrot.lane.b32.xlu0 %v1261_v3, %s6112_s14 }
  0xe6   : > { %v6538_v4 = vpop.permute.xlu2 %810  ;;  %v6540_v8 = vpop.permute.xlu1 %758 }
  0xe7   : > { %v6542_v9 = vpop.permute.xlu0 %630 }
  0xec   : > { %872 = vrot.lane.b32.xlu2 %v6285_v7, %s6115_s19  ;;  %850 = vrot.lane.b32.xlu1 %v6283_v6, %s7925_s3 }
  0xed   : > { %848 = vrot.lane.b32.xlu0 %v6285_v7, %s7925_s3 }
  0xee   : > { %v6550_v10 = vpop.permute.xlu2 %762  ;;  %v6552_v13 = vpop.permute.xlu1 %1221 }
  0xef   : > { %v6554_v15 = vpop.permute.xlu0 %734 }
  0xf4   : > { %764 = vrot.lane.b32.xlu2 %v6487_v51, %s7942_s23  ;;  %642 = vrot.lane.b32.xlu1 %v6370_v18, %s6109_s22 }
  0xf5   : > { %874 = vrot.lane.b32.xlu0 %v6283_v6, %s6115_s19 }
  0xf6   : > { %v6562_v16 = vpop.permute.xlu2 %944  ;;  %v6564_v17 = vpop.permute.xlu1 %808 }
  0xf7   : > { %v6566_v26 = vpop.permute.xlu0 %686 }
  0xfc   : > { %900 = vrot.lane.b32.xlu2 %v6281_v5, %s6114_s15  ;;  %894 = vrot.lane.b32.xlu1 %v6338_v12, %s6114_s15 }
  0xfd   : > { %788 = vrot.lane.b32.xlu0 %v6487_v51, %s6104_s24 }
  0xfe   : > { %v6574_v30 = vpop.permute.xlu2 %970  ;;  %v6576_v33 = vpop.permute.xlu1 %784 }
  0xff   : > { %v6578_v35 = vpop.permute.xlu0 %760 }
 0x104   : > { %1242 = vrot.lane.b32.xlu2 %v6502_v57, %s7942_s23  ;;  %924 = vrot.lane.b32.xlu1 %v6281_v5, %s7917_s17 }
 0x105   : > { %918 = vrot.lane.b32.xlu0 %v6338_v12, %s7917_s17  ;;  %s6117_s17 = smov 92  }
 0x106   : > { %v6586_v36 = vpop.permute.xlu2 %1381  ;;  %v6588_v37 = vpop.permute.xlu1 %1223 }
 0x107   : > { %v6590_v39 = vpop.permute.xlu0 %736 }
 0x10c   : > { %1333 = vrot.lane.b32.xlu2 %v6605_v61, %s6112_s14  ;;  %1331 = vrot.lane.b32.xlu1 %v6608_v62, %s6112_s14 }
 0x10d   : > { %1245 = vrot.lane.b32.xlu0 %v6502_v57, %s6104_s24 }
 0x10e   : > { %v1378_v49 = vpop.permute.xlu2 %1377  ;;  %v6616_v0 = vpop.permute.xlu1 %688 }
 0x10f   : > { %v6618_v1 = vpop.permute.xlu0 %786 }
 0x114   : > { %826 = vrot.lane.b32.xlu2 %v6283_v6, %s6117_s17  ;;  %824 = vrot.lane.b32.xlu1 %v6285_v7, %s6117_s17 }
 0x115   : > { %1345 = vrot.lane.b32.xlu0 %v1259_v45, %s6112_s14 }
 0x116   : > { %v6628_v3 = vpop.permute.xlu2 %640  ;;  %v6630_v42 = vpop.permute.xlu1 %968 }
 0x117   : > { %v6632_v47 = vpop.permute.xlu0 %664  ;;  %v984_v25 = vsel %vm982_vm10, %v6630_v42, %v6574_v30 }
 0x11c   : > { %852 = vrot.lane.b32.xlu2 %v6281_v5, %s7925_s3  ;;  %846 = vrot.lane.b32.xlu1 %v6338_v12, %s7925_s3  ;;  %s7967_s3 = smov 97  }
 0x11d   : > { %740 = vrot.lane.b32.xlu0 %v6487_v51, %s6105_s30 }
 0x11e   : > { %v6640_v43 = vpop.permute.xlu2 %920  ;;  %v1380_v52 = vpop.permute.xlu1 %1379 }
 0x11f   : > { %v6642_v53 = vpop.permute.xlu0 %946  ;;  %v1422_v45 = vsel %vm1393_vm8, %v1378_v49, %v1380_v52  ;;  %v1423_v61 = vsel %vm1393_vm8, %v1380_v52, %v6586_v36 }
 0x120   : > { %v1473_v63 = vsel %vm990_vm3, %v1422_v45, 0  ;;  %v960_v34 = vsel %vm958_vm9, %v6562_v16, %v6642_v53  ;;  %v1476_v31 = vsel %vm990_vm3, %v1423_v61, 0 }
 0x121   : > { %1509 = vmatpush.bf16.msra.mxu1 %v1473_v63  ;;  %v1193_v62 = vsel %vm990_vm3, %v960_v34, %v984_v25  ;;  %1535 = vmatpush.bf16.msra.mxu3 %v1476_v31  ;;  %v648_v25 = vsel %vm646_vm11, %v6500_v56, %v6498_v55  ;;  %v6678_v34 = vsel %vm7950_vm0, %v6394_v21, %v6468_v44 }
 0x122   : > { %1519 = vmatpush.bf16.msra.mxu2 %v1193_v62  ;;  %v6673_v31 = vsel %vm990_vm3, %v6285_v7, %v648_v25  ;;  %7970 = vst [vmem:[#allocation24_spill] sm:$0xff] %v6678_v34  ;;  %v695_v25 = vsel %vm7947_vm6, %v6512_v59, %v6485_v50  ;;  %v671_v21 = vsel %vm670_vm7, %v6514_v60, %v6472_v46 }
 0x123   : > { %7969 = vst [vmem:[#allocation23_spill] sm:$0xff] %v6673_v31 }
 0x124   : > { %1227 = vrot.lane.b32.xlu2 %v6487_v51, %s7967_s3  ;;  %876 = vrot.lane.b32.xlu1 %v6281_v5, %s6115_s19  ;;  %s7977_s3 = smov 32  }
 0x125   : > { %870 = vrot.lane.b32.xlu0 %v6338_v12, %s6115_s19 }
 0x126   : > { %v6662_v49 = vpop.permute.xlu2 %690  ;;  %v6664_v52 = vpop.permute.xlu1 %1225 }
 0x127   : > { %7968 = vst [vmem:[#allocation22_spill] sm:$0xff] %v6662_v49  ;;  %v6666_v61 = vpop.permute.xlu0 %738  ;;  %v794_v49 = vsel %vm790_vm1, %v6386_v20, %v6481_v48 }
 0x12c   : > { %1315 = vrot.lane.b32.xlu2 %v6673_v31, %s6112_s14  ;;  %1383 = vrot.lane.b32.xlu1 %v6678_v34, %s6112_s14  ;;  %v6702_v34 = vsel %vm990_vm3, %v671_v21, %v695_v25 }
 0x12d   : > { %1239 = vrot.lane.b32.xlu0 %v6502_v57, %s6105_s30  ;;  %v649_v57 = vsel %vm646_vm11, %v6498_v55, %v6458_v41  ;;  %7972 = vst [vmem:[#allocation26_spill] sm:$0xff] %v6702_v34 }
 0x12e   : > { %v6686_v63 = vpop.permute.xlu2 %948  ;;  %v6688_v62 = vpop.permute.xlu1 %1365  ;;  %v6708_v50 = vsel %vm990_vm3, %v6283_v6, %v649_v57 }
 0x12f   : > { %7971 = vst [vmem:[#allocation25_spill] sm:$0xff] %v6688_v62  ;;  %v1364_v45 = vpop.permute.xlu0 %1363 }
 0x130   : > { %v1416_v31 = vsel %vm1393_vm8, %v1364_v45, %v6688_v62  ;;  %7973 = vst [vmem:[#allocation27_spill] sm:$0xff] %v6708_v50 }
 0x131   : > { %1536 = vmatpush.bf16.msra.mxu3 %v1416_v31 }
 0x134   : > { %668 = vrot.lane.b32.xlu2 %v6487_v51, %s6107_s16  ;;  %1329 = vrot.lane.b32.xlu1 %v6702_v34, %s6112_s14 }
 0x135   : > { %1317 = vrot.lane.b32.xlu0 %v6708_v50, %s6112_s14 }
 0x136   : > { %v6714_v46 = vpop.permute.xlu2 %1248  ;;  %v6716_v55 = vpop.permute.xlu1 %898 }
 0x137   : > { %7974 = vst [vmem:[#allocation28_spill] sm:$0xff] %v6714_v46  ;;  %v6718_v59 = vpop.permute.xlu0 %896  ;;  %v647_v46 = vsel %vm646_vm11, %v6542_v9, %v6500_v56 }
 0x138   : > { %v912_v57 = vsel %vm910_vm12, %v6718_v59, %v6716_v55 }
 0x13c   : > { %822 = vrot.lane.b32.xlu2 %v6338_v12, %s6117_s17  ;;  %798 = vrot.lane.b32.xlu1 %v6338_v12, %s7935_s20  ;;  %s6118_s20 = smov 124  }
 0x13d   : > { %692 = vrot.lane.b32.xlu0 %v6487_v51, %s7937_s21  ;;  %s7980_s21 = smov 61  }
 0x13e   : > { %v1362_v60 = vpop.permute.xlu2 %1361  ;;  %v6726_v31 = vpop.permute.xlu1 %666 }
 0x13f   : > { %v6728_v25 = vpop.permute.xlu0 %922  ;;  %v1415_v21 = vsel %vm1393_vm8, %v1362_v60, %v1364_v45 }
 0x140   : > { %1510 = vmatpush.bf16.msra.mxu1 %v1415_v21  ;;  %v936_v50 = vsel %vm7948_vm13, %v6640_v43, %v6728_v25 }
 0x141   : > { %v1165_v34 = vsel %vm990_vm3, %v912_v57, %v936_v50 }
 0x142   : > { %1520 = vmatpush.bf16.msra.mxu2 %v1165_v34  ;;  %v6753_v34 = vsel %vm990_vm3, %v6338_v12, %v647_v46  ;;  %v770_v46 = vsel %vm766_vm2, %v6378_v19, %v6540_v8 }
 0x143   : > { %7976 = vst [vmem:[#allocation30_spill] sm:$0xff] %v6753_v34  ;;  %v6777_v2 = vsel %vm990_vm3, %v770_v46, %v794_v49 }
 0x144   : > { %952 = vrot.lane.b32.xlu2 %v6358_v14, %s6110_s27  ;;  %950 = vrot.lane.b32.xlu1 %v6336_v11, %s6110_s27  ;;  %7978 = vst [vmem:[#allocation31_spill] sm:$0xff] %v6777_v2 }
 0x145   : > { %828 = vrot.lane.b32.xlu0 %v6281_v5, %s6117_s17 }
 0x146   : > { %v6744_v45 = vpop.permute.xlu2 %872  ;;  %v943_v60 = vpop.permute.xlu1 %942 }
 0x147   : > { %v6746_v21 = vpop.permute.xlu0 %812  ;;  %v959_v56 = vsel %vm958_vm9, %v943_v60, %v6562_v16 }
 0x148   : > { %7975 = vst [vmem:[#allocation29_spill] sm:$0xff] %v6746_v21 }
 0x14c   : > { %976 = vrot.lane.b32.xlu1 %v6358_v14, %s7977_s3  ;;  %1313 = vrot.lane.b32.xlu2 %v6753_v34, %s6112_s14 }
 0x14d   : > { %974 = vrot.lane.b32.xlu0 %v6336_v11, %s7977_s3 }
 0x14e   : > { %v6761_v50 = vpop.permute.xlu2 %764  ;;  %v6763_v57 = vpop.permute.xlu1 %972 }
 0x14f   : > { %v967_v21 = vpop.permute.xlu0 %966 }
 0x150   : > { %v983_v9 = vsel %vm982_vm10, %v967_v21, %v6630_v42 }
 0x151   : > { %v1189_v34 = vsel %vm990_vm3, %v959_v56, %v983_v9  ;;  %v1232_v56 = vsel %vm1229_vm4, %v6406_v24, %v6552_v13  ;;  %v6822_v9 = vsel %vm742_vm5, %v6396_v22, %v6554_v15 }
 0x152   : > { %1493 = vmatpush.bf16.msra.mxu0 %v1189_v34  ;;  %7983 = vst [vmem:[#allocation35_spill] sm:$0xff] %v6822_v9 }
 0x154   : > { %704 = vrot.lane.b32.xlu1 %v6285_v7, %s6118_s20  ;;  %706 = vrot.lane.b32.xlu2 %v6283_v6, %s6118_s20 }
 0x155   : > { %1367 = vrot.lane.b32.xlu0 %v6777_v2, %s6112_s14 }
 0x156   : > { %v6785_v19 = vpop.permute.xlu2 %900  ;;  %v6787_v16 = vpop.permute.xlu1 %1349 }
 0x157   : > { %7979 = vst [vmem:[#allocation32_spill] sm:$0xff] %v6787_v16  ;;  %v6789_v42 = vpop.permute.xlu0 %1347 }
 0x158   : > { %v1409_v20 = vsel %vm1393_vm8, %v6789_v42, %v6787_v16  ;;  %v1265_v16 = vsel %vm990_vm3, %v1232_v56, %v6822_v9 }
 0x159   : > { %1537 = vmatpush.bf16.msra.mxu3 %v1409_v20 }
 0x15c   : > { %750 = vrot.lane.b32.xlu1 %v6338_v12, %s7942_s23  ;;  %774 = vrot.lane.b32.xlu2 %v6338_v12, %s6104_s24  ;;  %s7984_s23 = smov 64  }
 0x15d   : > { %644 = vrot.lane.b32.xlu0 %v6487_v51, %s6109_s22 }
 0x15e   : > { %v1243_v6 = vpop.permute.xlu2 %1242  ;;  %v6800_v7 = vpop.permute.xlu1 %850 }
 0x15f   : > { %v6802_v49 = vpop.permute.xlu0 %848 }
 0x160   : > { %v864_v46 = vsel %vm862_vm14, %v6802_v49, %v6800_v7 }
 0x164   : > { %904 = vrot.lane.b32.xlu1 %v6358_v14, %s6114_s15  ;;  %926 = vrot.lane.b32.xlu2 %v6336_v11, %s7980_s21 }
 0x165   : > { %902 = vrot.lane.b32.xlu0 %v6336_v11, %s6114_s15 }
 0x166   : > { %v6810_v60 = vpop.permute.xlu2 %1333  ;;  %v6812_v21 = vpop.permute.xlu1 %642 }
 0x167   : > { %7981 = vst [vmem:[#allocation33_spill] sm:$0xff] %v6810_v60  ;;  %v6814_v34 = vpop.permute.xlu0 %874 }
 0x168   : > { %7982 = vst [vmem:[#allocation34_spill] sm:$0xff] %v6812_v21  ;;  %v888_v20 = vsel %vm886_vm15, %v6744_v45, %v6814_v34 }
 0x169   : > { %v1137_v2 = vsel %vm990_vm3, %v864_v46, %v888_v20 }
 0x16a   : > { %1521 = vmatpush.bf16.msra.mxu2 %v1137_v2 }
 0x16c   : > { %702 = vrot.lane.b32.xlu2 %v6338_v12, %s6118_s20  ;;  %1351 = vrot.lane.b32.xlu1 %v1265_v16, %s6112_s14 }
 0x16d   : > { %928 = vrot.lane.b32.xlu0 %v6358_v14, %s7980_s21 }
 0x16e   : > { %v6838_v22 = vpop.permute.xlu2 %826  ;;  %v895_v24 = vpop.permute.xlu1 %894 }
 0x16f   : > { %v6840_v21 = vpop.permute.xlu0 %788  ;;  %v911_v46 = vsel %vm910_vm12, %v895_v24, %v6718_v59 }
 0x174   : > { %854 = vrot.lane.b32.xlu2 %v6336_v11, %s7984_s23  ;;  %726 = vrot.lane.b32.xlu1 %v6338_v12, %s6105_s30 }
 0x175   : > { %708 = vrot.lane.b32.xlu0 %v6281_v5, %s6118_s20 }
 0x176   : > { %v6848_v2 = vpop.permute.xlu2 %852  ;;  %v6850_v16 = vpop.permute.xlu1 %924 }
 0x177   : > { %v919_v56 = vpop.permute.xlu0 %918 }
 0x178   : > { %v935_v20 = vsel %vm7948_vm13, %v919_v56, %v6640_v43  ;;  %v698_v56 = vsel %vm7947_vm6, %v6434_v32, %v6566_v26  ;;  %vm7949_vm6 = vcmask 752640  }
 0x179   : > { %v1161_v9 = vsel %vm990_vm3, %v911_v46, %v935_v20  ;;  %v674_v20 = vsel %vm670_vm7, %v6424_v29, %v6496_v54 }
 0x17a   : > { %1494 = vmatpush.bf16.msra.mxu0 %v1161_v9  ;;  %v1244_v9 = vsel %vm766_vm2, %v6761_v50, %v1243_v6  ;;  %v6893_v32 = vsel %vm990_vm3, %v674_v20, %v698_v56  ;;  %v771_v20 = vsel %vm766_vm2, %v6540_v8, %v6578_v35 }
 0x17c   : > { %880 = vrot.lane.b32.xlu2 %v6358_v14, %s6115_s19  ;;  %878 = vrot.lane.b32.xlu1 %v6336_v11, %s6115_s19 }
 0x17d   : > { %856 = vrot.lane.b32.xlu0 %v6358_v14, %s7984_s23 }
 0x17e   : > { %v6863_v12 = vpop.permute.xlu2 %1227  ;;  %v6865_v62 = vpop.permute.xlu1 %1331 }
 0x17f   : > { %v1246_v59 = vpop.permute.xlu0 %1245  ;;  %v1402_v43 = vsel %vm1393_vm8, %v6865_v62, %v6810_v60  ;;  %v6886_v60 = vsel %vm7950_vm0, %v6468_v44, %v6564_v17 }
 0x180   : > { %v1247_v24 = vsel %vm790_vm1, %v6840_v21, %v1246_v59  ;;  %1538 = vmatpush.bf16.msra.mxu3 %v1402_v43  ;;  %v650_v43 = vsel %vm646_vm11, %v6458_v41, %v6510_v58 }
 0x181   : > { %v6878_v46 = vsel %vm990_vm3, %v1244_v9, %v1247_v24  ;;  %v6911_v56 = vsel %vm990_vm3, %v6281_v5, %v650_v43  ;;  %v795_v5 = vsel %vm790_vm1, %v6481_v48, %v6576_v33  ;;  %v6952_v43 = vsel %vm742_vm5, %v6554_v15, %v6590_v39 }
 0x184   : > { %830 = vrot.lane.b32.xlu2 %v6336_v11, %s6117_s17  ;;  %1385 = vrot.lane.b32.xlu1 %v6886_v60, %s6112_s14 }
 0x185   : > { %1335 = vrot.lane.b32.xlu0 %v6893_v32, %s6112_s14 }
 0x186   : > { %v1316_v6 = vpop.permute.xlu2 %1315  ;;  %v6897_v29 = vpop.permute.xlu1 %824 }
 0x187   : > { %v840_v44 = vsel %vm7949_vm6, %v6897_v29, %v6838_v22  ;;  %v1346_v59 = vpop.permute.xlu0 %1345 }
 0x188   : > { %v1408_v9 = vsel %vm1393_vm8, %v1346_v59, %v6789_v42  ;;  %v1109_v24 = vsel %vm990_vm3, %v6416_v28, %v840_v44  ;;  %v6933_v44 = vsel %vm7950_vm0, %v6564_v17, %v6538_v4  ;;  %v1233_v17 = vsel %vm1229_vm4, %v6552_v13, %v6588_v37 }
 0x189   : > { %1511 = vmatpush.bf16.msra.mxu1 %v1408_v9  ;;  %1522 = vmatpush.bf16.msra.mxu2 %v1109_v24 }
 0x18c   : > { %954 = vrot.lane.b32.xlu2 %v6370_v18, %s6110_s27  ;;  %1319 = vrot.lane.b32.xlu1 %v6911_v56, %s6112_s14 }
 0x18d   : > { %832 = vrot.lane.b32.xlu0 %v6358_v14, %s6117_s17  ;;  %1523 = vmatpush.bf16.msra.mxu2 %v6454_v40  ;;  %v6936_v40 = vsel %vm990_vm3, %v771_v20, %v795_v5  ;;  %v1267_v20 = vsel %vm990_vm3, %v1233_v17, %v6952_v43 }
 0x18e   : > { %v6920_v41 = vpop.permute.xlu2 %668  ;;  %v847_v28 = vpop.permute.xlu1 %846 }
 0x18f   : > { %v6922_v42 = vpop.permute.xlu0 %740  ;;  %v863_v9 = vsel %vm862_vm14, %v847_v28, %v6802_v49 }
 0x194   : > { %1387 = vrot.lane.b32.xlu2 %v6933_v44, %s6112_s14  ;;  %1369 = vrot.lane.b32.xlu1 %v6936_v40, %s6112_s14 }
 0x195   : > { %978 = vrot.lane.b32.xlu0 %v6370_v18, %s7977_s3 }
 0x196   : > { %v823_v48 = vpop.permute.xlu2 %822  ;;  %v6944_v59 = vpop.permute.xlu1 %876 }
 0x197   : > { %v871_v8 = vpop.permute.xlu0 %870 }
 0x198   : > { %v887_v24 = vsel %vm886_vm15, %v871_v8, %v6744_v45 }
 0x199   : > { %v1133_v5 = vsel %vm990_vm3, %v863_v9, %v887_v24 }
 0x19a   : > { %1495 = vmatpush.bf16.msra.mxu0 %v1133_v5 }
 0x19c   : > { %930 = vrot.lane.b32.xlu1 %v6370_v18, %s7980_s21  ;;  %1353 = vrot.lane.b32.xlu2 %v1267_v20, %s6112_s14  ;;  %v796_v20 = vsel %vm790_vm1, %v6576_v33, %v6618_v1 }
 0x19d   : > { %906 = vrot.lane.b32.xlu0 %v6370_v18, %s6114_s15 }
 0x19e   : > { %v6966_v13 = vpop.permute.xlu2 %952  ;;  %v6968_v15 = vpop.permute.xlu1 %1383 }
 0x19f   : > { %v1240_v49 = vpop.permute.xlu0 %1239  ;;  %v1424_v9 = vsel %vm1393_vm8, %v6586_v36, %v6968_v15  ;;  %v772_v36 = vsel %vm766_vm2, %v6578_v35, %v6550_v10  ;;  %v961_v35 = vsel %vm958_vm9, %v6642_v53, %v6686_v63 }
 0x1a0   : > { %v1241_v45 = vsel %vm742_vm5, %v6922_v42, %v1240_v49 }
 0x1a1   : > { %v6974_v28 = vsel %vm990_vm3, %v6863_v12, %v1241_v45  ;;  %v1479_v45 = vsel %vm990_vm3, %v1424_v9, 0 }
 0x1a4   : > { %712 = vrot.lane.b32.xlu1 %v6358_v14, %s6118_s20  ;;  %956 = vrot.lane.b32.xlu2 %v6487_v51, %s6110_s27  ;;  %s8018_s27 = smov 93  }
 0x1a5   : > { %710 = vrot.lane.b32.xlu0 %v6336_v11, %s6118_s20 }
 0x1a6   : > { %v1330_v8 = vpop.permute.xlu1 %1329  ;;  %v1314_v17 = vpop.permute.xlu2 %1313 }
 0x1a7   : > { %v6985_v24 = vpop.permute.xlu0 %1317  ;;  %v1401_v5 = vsel %vm1393_vm8, %v1330_v8, %v6865_v62  ;;  %v985_v62 = vsel %vm982_vm10, %v6574_v30, %v6763_v57  ;;  %v7002_v8 = vsel %vm990_vm3, %v772_v36, %v796_v20  ;;  %v1394_v33 = vsel %vm1393_vm8, %v1314_v17, %v1316_v6 }
 0x1a8   : > { %1512 = vmatpush.bf16.msra.mxu1 %v1401_v5  ;;  %v1395_v49 = vsel %vm1393_vm8, %v1316_v6, %v6985_v24  ;;  %v1197_v30 = vsel %vm990_vm3, %v961_v35, %v985_v62  ;;  %v937_v20 = vsel %vm7948_vm13, %v6728_v25, %v6850_v16  ;;  %v839_v6 = vsel %vm7949_vm6, %v823_v48, %v6897_v29 }
 0x1a9   : > { %1539 = vmatpush.bf16.msra.mxu3 %v1395_v49  ;;  %v675_v49 = vsel %vm670_vm7, %v6496_v54, %v6632_v47  ;;  %v913_v36 = vsel %vm910_vm12, %v6716_v55, %v6785_v19  ;;  %vm7985_vm13 = vcmask 1022976   ;;  %v865_v48 = vsel %vm862_vm14, %v6800_v7, %v6848_v2 }
 0x1aa   : > { %v1169_v25 = vsel %vm990_vm3, %v913_v36, %v937_v20  ;;  %v699_v29 = vsel %vm7985_vm13, %v6566_v26, %v6616_v0  ;;  %v1234_v7 = vsel %vm1229_vm4, %v6588_v37, %v6664_v52  ;;  %vm718_vm13 = vcmask 1014784   ;;  %v7987_v36 = vld [vmem:[#allocation19_spill] sm:$0xff] }
 0x1ab   : > { %v7041_v54 = vsel %vm990_vm3, %v675_v49, %v699_v29  ;;  %v7986_v49 = vld [vmem:[#allocation25_spill] sm:$0xff]  ;;  %v7988_v29 = vld [vmem:[#allocation22_spill] sm:$0xff] }
 0x1ac   : > { %858 = vrot.lane.b32.xlu2 %v6370_v18, %s7984_s23  ;;  %1371 = vrot.lane.b32.xlu1 %v7002_v8, %s6112_s14 }
 0x1ad   : > { %1561 = vmatpush.bf16.msrb.mxu3 %v1479_v45  ;;  %980 = vrot.lane.b32.xlu0 %v6487_v51, %s7977_s3  ;;  %s6123_s3 = smov 110  }
 0x1ae   : > { %1513 = vmatpush.bf16.msra.mxu1 %v1394_v33  ;;  %v799_v9 = vpop.permute.xlu1 %798  ;;  %v7015_v5 = vpop.permute.xlu2 %706  ;;  %v7063_v33 = vsel %vm742_vm5, %v6590_v39, %v6666_v61 }
 0x1af   : > { %v815_v53 = vsel %vm7950_vm0, %v799_v9, %v6398_v23  ;;  %v7024_v17 = vpop.permute.xlu0 %692  ;;  %v889_v23 = vsel %vm886_vm15, %v6814_v34, %v6944_v59  ;;  %v1269_v9 = vsel %vm990_vm3, %v1234_v7, %v7063_v33  ;;  %v7991_v7 = vld [vmem:[#allocation29_spill] sm:$0xff] }
 0x1b0   : > { %v1105_v45 = vsel %vm990_vm3, %v815_v53, %v839_v6  ;;  %v1141_v26 = vsel %vm990_vm3, %v865_v48, %v889_v23  ;;  %v676_v53 = vsel %vm670_vm7, %v6632_v47, %v6726_v31 }
 0x1b1   : > { %1496 = vmatpush.bf16.msra.mxu0 %v1105_v45 }
 0x1b2   : > { %1545 = vmatpush.bf16.msrb.mxu1 %v1197_v30 }
 0x1b4   : > { %908 = vrot.lane.b32.xlu2 %v6487_v51, %s6114_s15  ;;  %1337 = vrot.lane.b32.xlu1 %v7041_v54, %s6112_s14  ;;  %s6125_s15 = smov 113  }
 0x1b5   : > { %882 = vrot.lane.b32.xlu0 %v6370_v18, %s6115_s19 }
 0x1b6   : > { %1546 = vmatpush.bf16.msrb.mxu1 %v1169_v25  ;;  %v7053_v55 = vpop.permute.xlu1 %950  ;;  %v775_v34 = vpop.permute.xlu2 %774 }
 0x1b7   : > { %v7055_v62 = vpop.permute.xlu0 %828 }
 0x1b8   : > { %v841_v35 = vsel %vm7949_vm6, %v6838_v22, %v7055_v62  ;;  %vm7989_vm6 = vcmask 1022976  }
 0x1b9   : > { %v1113_v30 = vsel %vm990_vm3, %v6412_v27, %v841_v35  ;;  %v651_v27 = vsel %vm646_vm11, %v6510_v58, %v6628_v3  ;;  %v700_v23 = vsel %vm7989_vm6, %v6616_v0, %v7988_v29  ;;  %v7129_v35 = vsel %vm7950_vm0, %v6538_v4, %v7991_v7  ;;  %v7992_v0 = vld [vmem:[#allocation21_spill] sm:$0xff]  ;;  %v473_v4 = vld [vmem:[%s7897_s1] sm:$0xff] }
 0x1ba   : > { %1547 = vmatpush.bf16.msrb.mxu1 %v1141_v26  ;;  %v7089_v20 = vsel %vm990_vm3, %v6336_v11, %v651_v27  ;;  %v7118_v48 = vsel %vm990_vm3, %v676_v53, %v700_v23  ;;  %v7990_v26 = vld [vmem:[#allocation28_spill] sm:$0xff]  ;;  %v7994_v53 = vld [vmem:[#allocation15_spill] sm:$0xff]  ;;  %v797_v23 = vsel %vm790_vm1, %v6618_v1, %v6840_v21  ;;  %vm1468_vm6 = vcmask 588800  }
 0x1bb   : > { %v1250_v47 = vsel %vm7950_vm0, %v7991_v7, %v7990_v26  ;;  %v7993_v27 = vld [vmem:[#allocation16_spill] sm:$0xff]  ;;  %v1464_v7 = vunpack.c.h.b16 %v473_v4  ;;  %v1235_v21 = vsel %vm1229_vm4, %v6664_v52, %v6863_v12  ;;  %vm7998_vm4 = vcmask 1022976  }
 0x1bc   : > { %834 = vrot.lane.b32.xlu2 %v6370_v18, %s6117_s17  ;;  %1355 = vrot.lane.b32.xlu1 %v1269_v9, %s6112_s14  ;;  %v7997_v52 = vld [vmem:[#allocation32_spill] sm:$0xff]  ;;  %vm8012_vm0 = vcmask 498688  }
 0x1bd   : > { %932 = vrot.lane.b32.xlu0 %v6487_v51, %s7980_s21  ;;  %s8017_s21 = smov 125  }
 0x1be   : > { %1548 = vmatpush.bf16.msrb.mxu1 %v1113_v30  ;;  %v7078_v37 = vpop.permute.xlu1 %976  ;;  %v7080_v39 = vpop.permute.xlu2 %926 }
 0x1bf   : > { %v7082_v22 = vpop.permute.xlu0 %974 }
 0x1c2   : > { %1549 = vmatpush.bf16.msrb.mxu1 %v6445_v38 }
 0x1c4   : > { %884 = vrot.lane.b32.xlu2 %v6487_v51, %s6115_s19  ;;  %860 = vrot.lane.b32.xlu1 %v6487_v51, %s7984_s23  ;;  %s6122_s19 = smov 111   ;;  %s6124_s23 = smov 112  }
 0x1c5   : > { %1321 = vrot.lane.b32.xlu0 %v7089_v20, %s6112_s14 }
 0x1c6   : > { %v7097_v38 = vpop.permute.xlu1 %704  ;;  %v7099_v6 = vpop.permute.xlu2 %702 }
 0x1c7   : > { %v720_v58 = vsel %vm718_vm13, %v7097_v38, %v7015_v5  ;;  %v7104_v11 = vpop.permute.xlu0 %1367 }
 0x1c8   : > { %v1417_v45 = vsel %vm1393_vm8, %v7986_v49, %v7104_v11  ;;  %v1053_v25 = vsel %vm990_vm3, %v720_v58, %v7987_v36  ;;  %v791_v58 = vsel %vm790_vm1, %v775_v34, %v7993_v27  ;;  %v7995_v36 = vld [vmem:[#allocation34_spill] sm:$0xff]  ;;  %v7996_v34 = vld [vmem:[#allocation23_spill] sm:$0xff] }
 0x1c9   : > { %1562 = vmatpush.bf16.msrb.mxu3 %v1417_v45  ;;  %1524 = vmatpush.bf16.msra.mxu2 %v1053_v25  ;;  %v652_v25 = vsel %vm646_vm11, %v6628_v3, %v7995_v36 }
 0x1ca   : > { %v7158_v3 = vsel %vm990_vm3, %v6358_v14, %v652_v25 }
 0x1cc   : > { %1339 = vrot.lane.b32.xlu2 %v7118_v48, %s6112_s14  ;;  %1391 = vrot.lane.b32.xlu1 %v1250_v47, %s6112_s14  ;;  %v773_v47 = vsel %vm766_vm2, %v6550_v10, %v6761_v50  ;;  %v7182_v50 = vsel %vm742_vm5, %v6666_v61, %v6922_v42  ;;  %v1463_v61 = vunpack.c.l.b16 %v473_v4 }
 0x1cd   : > { %1389 = vrot.lane.b32.xlu0 %v7129_v35, %s6112_s14  ;;  %1525 = vmatpush.bf16.msra.mxu2 %v7992_v0  ;;  %v7154_v0 = vpack.c.b16 %v1464_v7, %v1464_v7  ;;  %v1271_v27 = vsel %vm990_vm3, %v1235_v21, %v7182_v50 }
 0x1ce   : > { %v751_v30 = vpop.permute.xlu1 %750  ;;  %v7134_v9 = vpop.permute.xlu2 %854  ;;  %v7206_v25 = vpack.c.b16 %v1463_v61, %v1463_v61 }
 0x1cf   : > { %v767_v49 = vsel %vm766_vm2, %v751_v30, %v7994_v53  ;;  %v645_v45 = vpop.permute.xlu0 %644  ;;  %v7161_v30 = vsel %vm990_vm3, %v773_v47, %v797_v23  ;;  %4497 = vmatmul.msk.bf16.vlgmr.msra.gmra.mxu3 %vm1468_vm6, %v7154_v0  ;;  %4496 = vmatmul.msk.bf16.vlgmr.msra.gmra.mxu1 %vm1468_vm6, %v7154_v0 }
 0x1d0   : > { %v1077_v26 = vsel %vm990_vm3, %v767_v49, %v791_v58  ;;  %v701_v49 = vsel %vm7998_vm4, %v7988_v29, %v7024_v17  ;;  %v653_v47 = vsel %vm646_vm11, %v7995_v36, %v645_v45  ;;  %v1256_v36 = vsel %vm990_vm3, %v6920_v41, %v7024_v17  ;;  %v8003_v17 = vld [vmem:[#allocation30_spill] sm:$0xff] }
 0x1d1   : > { %1497 = vmatpush.bf16.msra.mxu0 %v1077_v26  ;;  %1526 = vmatpush.bf16.msra.mxu2 %v7996_v34  ;;  %v7999_v26 = vld [vmem:[#allocation17_spill] sm:$0xff]  ;;  %vm8005_vm4 = vcmask 498688  }
 0x1d4   : > { %1323 = vrot.lane.b32.xlu1 %v7158_v3, %s6112_s14  ;;  %1373 = vrot.lane.b32.xlu2 %v7161_v30, %s6112_s14 }
 0x1d5   : > { %836 = vrot.lane.b32.xlu0 %v6487_v51, %s6117_s17  ;;  %1527 = vmatmul.bf16.vlgmr.msra.gmra.mxu2 %v7206_v25 }
 0x1d6   : > { %v7171_v10 = vpop.permute.xlu1 %904  ;;  %v7173_v1 = vpop.permute.xlu2 %880 }
 0x1d7   : > { %v7177_v14 = vpop.permute.xlu0 %902 }
 0x1dc   : > { %714 = vrot.lane.b32.xlu1 %v6370_v18, %s6118_s20  ;;  %1357 = vrot.lane.b32.xlu2 %v1271_v27, %s6112_s14  ;;  %v8000_v27 = vld [vmem:[#allocation18_spill] sm:$0xff] }
 0x1dd   : > { %1375 = vrot.lane.b32.xlu0 %v6878_v46, %s6112_s14  ;;  %v677_v46 = vsel %vm670_vm7, %v6726_v31, %v6920_v41  ;;  %v719_v31 = vsel %vm718_vm13, %v7099_v6, %v7097_v38  ;;  %v1253_v38 = vsel %vm990_vm3, %v6487_v51, %v645_v45  ;;  %v7242_v6 = vsel %vm990_vm3, %v6370_v18, %v653_v47  ;;  %v8002_v45 = vld [vmem:[#allocation20_spill] sm:$0xff] }
 0x1de   : > { %v7194_v58 = vpop.permute.xlu2 %830  ;;  %v7196_v53 = vpop.permute.xlu1 %1351  ;;  %v7213_v4 = vsel %vm990_vm3, %v677_v46, %v701_v49  ;;  %v962_v41 = vsel %vm958_vm9, %v6686_v63, %v7053_v55  ;;  %v6119_v46 = vmov 0   ;;  %v938_v63 = vsel %vm8005_vm4, %v6850_v16, %v7080_v39 }
 0x1df   : > { %v7198_v42 = vpop.permute.xlu0 %928  ;;  %v1410_v12 = vsel %vm1393_vm8, %v7997_v52, %v7196_v53  ;;  %5917 = vset.pattern.permute.xlu0 %v6119_v46  ;;  %5943 = vset.pattern.permute.xlu2 %v6119_v46  ;;  %vm8007_vm4 = vcmask 752640  }
 0x1e0   : > { %1563 = vmatpush.bf16.msrb.mxu3 %v1410_v12 }
 0x1e4   : > { %716 = vrot.lane.b32.xlu1 %v6487_v51, %s6118_s20  ;;  %1341 = vrot.lane.b32.xlu2 %v7213_v4, %s6112_s14  ;;  %v986_v51 = vsel %vm982_vm10, %v6763_v57, %v7082_v22  ;;  %v914_v57 = vsel %vm910_vm12, %v6785_v19, %v7177_v14 }
 0x1e5   : > { %1359 = vrot.lane.b32.xlu0 %v6974_v28, %s6112_s14  ;;  %v1201_v49 = vsel %vm990_vm3, %v962_v41, %v986_v51  ;;  %v8008_v51 = vld [vmem:[#allocation24_spill] sm:$0xff] }
 0x1e6   : > { %v7221_v29 = vpop.permute.xlu2 %954  ;;  %v727_v23 = vpop.permute.xlu1 %726 }
 0x1e7   : > { %v743_v7 = vsel %vm742_vm5, %v727_v23, %v7999_v26  ;;  %v7228_v34 = vpop.permute.xlu0 %708  ;;  %v8004_v23 = vld [vmem:[#allocation27_spill] sm:$0xff]  ;;  %v1173_v26 = vsel %vm990_vm3, %v914_v57, %v938_v63 }
 0x1e8   : > { %v721_v21 = vsel %vm718_vm13, %v7015_v5, %v7228_v34  ;;  %v1049_v28 = vsel %vm990_vm3, %v719_v31, %v743_v7  ;;  %v8001_v5 = vld [vmem:[#allocation26_spill] sm:$0xff] }
 0x1e9   : > { %1498 = vmatpush.bf16.msra.mxu0 %v1049_v28  ;;  %v1057_v61 = vsel %vm990_vm3, %v721_v21, %v8000_v27  ;;  %v474_v31 = vld [vmem:[%s7898_s2] sm:$0xff]  ;;  %v866_v27 = vsel %vm862_vm14, %v6848_v2, %v7134_v9  ;;  %v987_v2 = vsel %vm982_vm10, %v7082_v22, %v7078_v37 }
 0x1ea   : > { %1550 = vmatpush.bf16.msrb.mxu1 %v1057_v61 }
 0x1ec   : > { %1327 = vrot.lane.b32.xlu2 %v1253_v38, %s6112_s14  ;;  %1325 = vrot.lane.b32.xlu1 %v7242_v6, %s6112_s14 }
 0x1ed   : > { %1343 = vrot.lane.b32.xlu0 %v1256_v36, %s6112_s14  ;;  %1499 = vmatpush.bf16.msra.mxu0 %v8001_v5  ;;  %s6121_s14 = smov 109  }
 0x1ee   : > { %1551 = vmatpush.bf16.msrb.mxu1 %v8002_v45  ;;  %v7256_v18 = vpop.permute.xlu2 %1387  ;;  %v879_v52 = vpop.permute.xlu1 %878 }
 0x1ef   : > { %v7258_v12 = vpop.permute.xlu0 %856  ;;  %v890_v19 = vsel %vm886_vm15, %v6944_v59, %v879_v52  ;;  %v8006_v59 = vld [vmem:[#allocation33_spill] sm:$0xff] }
 0x1f0   : > { %v1145_v5 = vsel %vm990_vm3, %v866_v27, %v890_v19  ;;  %v867_v63 = vsel %vm862_vm14, %v7134_v9, %v7258_v12 }
 0x1f1   : > { %1500 = vmatpush.bf16.msra.mxu0 %v8003_v17 }
 0x1f2   : > { %1552 = vmatpush.bf16.msrb.mxu1 %v8004_v23  ;;  %v8010_v23 = vld [vmem:[#allocation31_spill] sm:$0xff] }
 0x1f4   : > { %1501 = vmatmul.bf16.vlgmr.msra.gmra.mxu0 %v7206_v25 }
 0x1f5   : > { %1571 = vmatpush.bf16.msrb.mxu0 %v1201_v49  ;;  %1553 = vmatmul.bf16.vlgmr.msrb.gmra.mxu1 %v7206_v25  ;;  %v963_v49 = vsel %vm958_vm9, %v7053_v55, %v6966_v13  ;;  %v915_v55 = vsel %vm910_vm12, %v7177_v14, %v7171_v10 }
 0x1f6   : > { %1459 = vperm.xlu0 %5917, %v474_v31   ;;  %v1386_v7 = vpop.permute.xlu1 %1385  ;;  %v7280_v47 = vpop.permute.xlu2 %1353  ;;  %v1205_v22 = vsel %vm990_vm3, %v963_v49, %v987_v2 }
 0x1f7   : > { %v1426_v21 = vsel %vm1393_vm8, %v1386_v7, %v7256_v18  ;;  %v7284_v28 = vpop.permute.xlu0 %1335  ;;  %v1425_v16 = vsel %vm1393_vm8, %v6968_v15, %v1386_v7  ;;  %v842_v15 = vsel %vm8007_vm4, %v7055_v62, %v7194_v58  ;;  %vm8009_vm4 = vcmask 498688  }
 0x1f8   : > { %v1485_v61 = vsel %vm990_vm3, %v1426_v21, 0  ;;  %v1403_v38 = vsel %vm1393_vm8, %v8006_v59, %v7284_v28  ;;  %v1482_v36 = vsel %vm990_vm3, %v1425_v16, 0  ;;  %v1117_v45 = vsel %vm990_vm3, %v8008_v51, %v842_v15 }
 0x1f9   : > { %1572 = vmatpush.bf16.msrb.mxu0 %v1173_v26  ;;  %1564 = vmatpush.bf16.msrb.mxu3 %v1403_v38  ;;  %v939_v57 = vsel %vm8009_vm4, %v7080_v39, %v7198_v42  ;;  %vm8011_vm4 = vcmask 752640   ;;  %v1411_v9 = vsel %vm1393_vm8, %v7196_v53, %v7280_v47 }
 0x1fa   : > { %1587 = vmatpush.bf16.msrb.mxu2 %v1482_v36  ;;  %1613 = vmatpush.bf16.msra.mxu1 %v1485_v61  ;;  %v1177_v31 = vsel %vm990_vm3, %v915_v55, %v939_v57 }
 0x1fd   : > { %1573 = vmatpush.bf16.msrb.mxu0 %v1145_v5  ;;  %v8013_v5 = vld [vmem:[#allocation35_spill] sm:$0xff] }
 0x1fe   : > { %v7305_v41 = vpop.permute.xlu1 %1319  ;;  %v7307_v17 = vpop.permute.xlu2 %956 }
 0x1ff   : > { %v7312_v46 = vpop.permute.xlu0 %832  ;;  %v1396_v62 = vsel %vm1393_vm8, %v6985_v24, %v7305_v41  ;;  %v891_v24 = vsel %vm886_vm15, %v879_v52, %v7173_v1 }
 0x200   : > { %1565 = vmatpush.bf16.msrb.mxu3 %v1396_v62  ;;  %v1149_v7 = vsel %vm990_vm3, %v867_v63, %v891_v24  ;;  %v843_v52 = vsel %vm8011_vm4, %v7194_v58, %v7312_v46 }
 0x201   : > { %1574 = vmatpush.bf16.msrb.mxu0 %v1117_v45  ;;  %v1121_v21 = vsel %vm990_vm3, %v6886_v60, %v843_v52 }
 0x203   : > { %4498 = vmatmul.msk.bf16.vlgmr.msrb.gmra.mxu3 %vm1468_vm6, %v7154_v0 }
 0x204   : > { %1597 = vmatpush.bf16.msra.mxu3 %v1205_v22 }
 0x205   : > { %1575 = vmatpush.bf16.msrb.mxu0 %v8010_v23 }
 0x206   : > { %v1370_v39 = vpop.permute.xlu1 %1369  ;;  %v7333_v26 = vpop.permute.xlu2 %858 }
 0x207   : > { %v7335_v19 = vpop.permute.xlu0 %978  ;;  %v1418_v14 = vsel %vm1393_vm8, %v7104_v11, %v1370_v39 }
 0x208   : > { %1598 = vmatpush.bf16.msra.mxu3 %v1177_v31  ;;  %1588 = vmatpush.bf16.msrb.mxu2 %v1418_v14 }
 0x20c   : > { %1599 = vmatpush.bf16.msra.mxu3 %v1149_v7  ;;  %1589 = vmatpush.bf16.msrb.mxu2 %v1411_v9 }
 0x20e   : > { %v7348_v16 = vpop.permute.xlu1 %930  ;;  %v7350_v11 = vpop.permute.xlu2 %908 }
 0x20f   : > { %v940_v27 = vsel %vm8012_vm0, %v7198_v42, %v7348_v16  ;;  %v7355_v61 = vpop.permute.xlu0 %906  ;;  %vm8014_vm0 = vmmov %vm8011_vm4  ;;  %vm2549_vm4 = vcmask 900096  }
 0x210   : > { %1600 = vmatpush.bf16.msra.mxu3 %v1121_v21  ;;  %v916_v58 = vsel %vm910_vm12, %v7171_v10, %v7355_v61 }
 0x211   : > { %v1181_v53 = vsel %vm990_vm3, %v916_v58, %v940_v27  ;;  %v965_v58 = vsel %vm958_vm9, %v7221_v29, %v7307_v17 }
 0x214   : > { %1601 = vmatpush.bf16.msra.mxu3 %v6936_v40 }
 0x216   : > { %v7362_v60 = vpop.permute.xlu1 %712  ;;  %v7364_v38 = vpop.permute.xlu2 %834 }
 0x217   : > { %v711_v59 = vpop.permute.xlu0 %710 }
 0x218   : > { %v722_v36 = vsel %vm718_vm13, %v7228_v34, %v711_v59  ;;  %v723_v42 = vsel %vm718_vm13, %v711_v59, %v7362_v60 }
 0x219   : > { %v1061_v15 = vsel %vm990_vm3, %v722_v36, %v8013_v5  ;;  %v1065_v10 = vsel %vm990_vm3, %v723_v42, %v6952_v43 }
 0x21a   : > { %1576 = vmatpush.bf16.msrb.mxu0 %v1061_v15  ;;  %1602 = vmatpush.bf16.msra.mxu3 %v1065_v10 }
 0x21e   : > { %1577 = vmatpush.bf16.msrb.mxu0 %v6893_v32  ;;  %1603 = vmatpush.bf16.msra.mxu3 %v7041_v54  ;;  %v1372_v40 = vpop.permute.xlu1 %1371  ;;  %v7377_v34 = vpop.permute.xlu2 %884 }
 0x21f   : > { %v981_v2 = vpop.permute.xlu0 %980  ;;  %v1419_v51 = vsel %vm1393_vm8, %v1370_v39, %v1372_v40 }
 0x220   : > { %1614 = vmatpush.bf16.msra.mxu1 %v1419_v51 }
 0x222   : > { %1578 = vmatpush.bf16.msrb.mxu0 %v6911_v56  ;;  %1604 = vmatpush.bf16.msra.mxu3 %v7089_v20  ;;  %v988_v20 = vsel %vm982_vm10, %v7078_v37, %v7335_v19 }
 0x225   : > { %1579 = vmatmul.bf16.vlgmr.msrb.gmra.mxu0 %v7206_v25  ;;  %1605 = vmatmul.bf16.vlgmr.msra.gmra.mxu3 %v7206_v25 }
 0x226   : > { %v1338_v43 = vpop.permute.xlu1 %1337  ;;  %v1340_v54 = vpop.permute.xlu2 %1339 }
 0x227   : > { %v7383_v45 = vpop.permute.xlu0 %882  ;;  %v1404_v32 = vsel %vm1393_vm8, %v7284_v28, %v1338_v43  ;;  %v1405_v56 = vsel %vm1393_vm8, %v1338_v43, %v1340_v54  ;;  %v964_v28 = vsel %vm958_vm9, %v6966_v13, %v7221_v29  ;;  %v868_v13 = vsel %vm862_vm14, %v7258_v12, %v7333_v26  ;;  %vm8016_vm9 = vmmov %vm8014_vm0 }
 0x228   : > { %1590 = vmatpush.bf16.msrb.mxu2 %v1404_v32  ;;  %v892_v37 = vsel %vm886_vm15, %v7173_v1, %v7383_v45  ;;  %v844_v1 = vsel %vm8014_vm0, %v7312_v46, %v7364_v38  ;;  %v989_v12 = vsel %vm982_vm10, %v7335_v19, %v981_v2  ;;  %vm8015_vm10 = vcmask 498688  }
 0x229   : > { %v1153_v9 = vsel %vm990_vm3, %v868_v13, %v892_v37  ;;  %v1213_v59 = vsel %vm990_vm3, %v965_v58, %v989_v12  ;;  %v917_v29 = vsel %vm910_vm12, %v7355_v61, %v7350_v11  ;;  %v893_v11 = vsel %vm886_vm15, %v7383_v45, %v7377_v34 }
 0x22a   : > { %vm2316_vm12 = vcmask 1047552   ;;  %vm2543_vm15 = vcmask 908288   ;;  %vm2537_vm0 = vcmask 916480  }
 0x22e   : > { %v1356_v49 = vpop.permute.xlu1 %1355  ;;  %v1374_v57 = vpop.permute.xlu2 %1373 }
 0x22f   : > { %v933_v62 = vpop.permute.xlu0 %932  ;;  %v1412_v22 = vsel %vm1393_vm8, %v7280_v47, %v1356_v49  ;;  %v1209_v47 = vsel %vm990_vm3, %v964_v28, %v988_v20  ;;  %v1420_v21 = vsel %vm1393_vm8, %v1372_v40, %v1374_v57 }
 0x230   : > { %1615 = vmatpush.bf16.msra.mxu1 %v1412_v22  ;;  %v941_v19 = vsel %vm8015_vm10, %v7348_v16, %v933_v62  ;;  %vm2662_vm10 = vcmask 924672  }
 0x231   : > { %v1185_v17 = vsel %vm990_vm3, %v917_v29, %v941_v19 }
 0x234   : > { %1616 = vmatpush.bf16.msra.mxu1 %v1405_v56 }
 0x236   : > { %v861_v23 = vpop.permute.xlu1 %860  ;;  %v1358_v39 = vpop.permute.xlu2 %1357 }
 0x237   : > { %v1322_v55 = vpop.permute.xlu0 %1321  ;;  %v869_v16 = vsel %vm862_vm14, %v7333_v26, %v861_v23  ;;  %vm2555_vm14 = vcmask 891904  }
 0x238   : > { %v1397_v31 = vsel %vm1393_vm8, %v7305_v41, %v1322_v55  ;;  %v1157_v40 = vsel %vm990_vm3, %v869_v16, %v893_v11 }
 0x239   : > { %1591 = vmatpush.bf16.msrb.mxu2 %v1397_v31 }
 0x23c   : > { %4499 = vmatmul.msk.bf16.vlgmr.msrb.gmra.mxu2 %vm1468_vm6, %v7154_v0 }
 0x23d   : > { %1623 = vmatpush.bf16.msra.mxu2 %v1209_v47 }
 0x23e   : > { %v1392_v24 = vpop.permute.xlu1 %1391  ;;  %v1342_v36 = vpop.permute.xlu2 %1341 }
 0x23f   : > { %v1390_v63 = vpop.permute.xlu0 %1389  ;;  %v1406_v42 = vsel %vm1393_vm8, %v1340_v54, %v1342_v36 }
 0x240   : > { %v1427_v41 = vsel %vm1393_vm8, %v7256_v18, %v1390_v63  ;;  %v1428_v14 = vsel %vm1393_vm8, %v1390_v63, %v1392_v24  ;;  %v1125_v18 = vsel %vm990_vm3, %v6933_v44, %v844_v1  ;;  %v1413_v44 = vsel %vm1393_vm8, %v1356_v49, %v1358_v39 }
 0x241   : > { %1624 = vmatpush.bf16.msra.mxu2 %v1181_v53  ;;  %v1488_v7 = vsel %vm990_vm3, %v1427_v41, 0  ;;  %v1491_v52 = vsel %vm990_vm3, %v1428_v14, 0 }
 0x242   : > { %1639 = vmatpush.bf16.msra.mxu0 %v1488_v7  ;;  %1665 = vmatpush.bf16.msrb.mxu3 %v1491_v52 }
 0x245   : > { %1625 = vmatpush.bf16.msra.mxu2 %v1153_v9 }
 0x246   : > { %1640 = vmatpush.bf16.msra.mxu0 %v1420_v21  ;;  %v1324_v27 = vpop.permute.xlu1 %1323 }
 0x247   : > { %v837_v53 = vpop.permute.xlu0 %836  ;;  %v1398_v46 = vsel %vm1393_vm8, %v1322_v55, %v1324_v27 }
 0x248   : > { %1617 = vmatpush.bf16.msra.mxu1 %v1398_v46  ;;  %v845_v26 = vsel %vm8016_vm9, %v7364_v38, %v837_v53  ;;  %vm8020_vm9 = vcmask 1022976  }
 0x249   : > { %1626 = vmatpush.bf16.msra.mxu2 %v1125_v18 }
 0x24a   : > { %1641 = vmatpush.bf16.msra.mxu0 %v1413_v44 }
 0x24b   : > { %4500 = vmatmul.msk.bf16.vlgmr.msra.gmra.mxu1 %vm1468_vm6, %v7154_v0 }
 0x24c   : > { %1649 = vmatpush.bf16.msrb.mxu1 %v1213_v59  ;;  %v1515_v2 = vpop.f32.mrf.mxu1 }
 0x24d   : > { %1627 = vmatpush.bf16.msra.mxu2 %v7002_v8 }
 0x24e   : > { %1642 = vmatpush.bf16.msra.mxu0 %v1406_v42  ;;  %v715_v5 = vpop.permute.xlu1 %714 }
 0x24f   : > { %v724_v8 = vsel %vm718_vm13, %v7362_v60, %v715_v5  ;;  %v1376_v15 = vpop.permute.xlu0 %1375  ;;  %v1129_v60 = vsel %vm990_vm3, %v7129_v35, %v845_v26 }
 0x250   : > { %1650 = vmatpush.bf16.msrb.mxu1 %v1185_v17  ;;  %v1421_v61 = vsel %vm1393_vm8, %v1374_v57, %v1376_v15  ;;  %v1069_v10 = vsel %vm990_vm3, %v724_v8, %v7063_v33 }
 0x251   : > { %1666 = vmatpush.bf16.msrb.mxu3 %v1421_v61  ;;  %1628 = vmatpush.bf16.msra.mxu2 %v1069_v10 }
 0x252   : > { %v1541_v33 = vpop.f32.mrf.mxu3 }
 0x254   : > { %1651 = vmatpush.bf16.msrb.mxu1 %v1157_v40  ;;  %v1517_v38 = vpop.f32.mrf.mxu1 }
 0x255   : > { %1629 = vmatpush.bf16.msra.mxu2 %v7118_v48 }
 0x256   : > { %v717_v51 = vpop.permute.xlu1 %716 }
 0x257   : > { %v1360_v34 = vpop.permute.xlu0 %1359  ;;  %v725_v45 = vsel %vm718_vm13, %v715_v5, %v717_v51 }
 0x258   : > { %1652 = vmatpush.bf16.msrb.mxu1 %v1129_v60  ;;  %v1414_v43 = vsel %vm1393_vm8, %v1358_v39, %v1360_v34  ;;  %v1073_v48 = vsel %vm990_vm3, %v725_v45, %v7182_v50  ;;  %v1528_v50 = vpop.f32.mrf.mxu2 }
 0x259   : > { %1667 = vmatpush.bf16.msrb.mxu3 %v1414_v43  ;;  %1630 = vmatpush.bf16.msra.mxu2 %v7158_v3  ;;  %v1328_v3 = vpop.permute.xlu2 %1327 }
 0x25a   : > { %v1543_v62 = vpop.f32.mrf.mxu3 }
 0x25b   : > { %v5577_v62 = vld [vmem:[#allocation2 + $0x74] sm:$0xf0] }
 0x25c   : > { %1653 = vmatpush.bf16.msrb.mxu1 %v7161_v30  ;;  %1631 = vmatmul.bf16.vlgmr.msra.gmra.mxu2 %v7206_v25 }
 0x25e   : > { %v1326_v35 = vpop.permute.xlu1 %1325 }
 0x25f   : > { %v1344_v32 = vpop.permute.xlu0 %1343  ;;  %v1399_v54 = vsel %vm1393_vm8, %v1324_v27, %v1326_v35  ;;  %v1400_v30 = vsel %vm1393_vm8, %v1326_v35, %v1328_v3  ;;  %v4625_v3 = vld [vmem:[#allocation2 + $0xf0] sm:$0xf] }
 0x260   : > { %1654 = vmatpush.bf16.msrb.mxu1 %v1073_v48  ;;  %1643 = vmatpush.bf16.msra.mxu0 %v1399_v54  ;;  %v1407_v49 = vsel %vm1393_vm8, %v1342_v36, %v1344_v32  ;;  %v1530_v22 = vpop.f32.mrf.mxu2  ;;  %vm2315_vm8 = vcmask 1046528  }
 0x261   : > { %1668 = vmatpush.bf16.msrb.mxu3 %v1407_v49  ;;  %v4561_v49 = vld [vmem:[#allocation2 + $0x70] sm:$0xf]  ;;  %v4553_v22 = vld [vmem:[#allocation2 + $0x60] sm:$0xf] }
 0x263   : > { %4501 = vmatmul.msk.bf16.vlgmr.msra.gmra.mxu0 %vm1468_vm6, %v7154_v0 }
 0x264   : > { %1655 = vmatpush.bf16.msrb.mxu1 %v7213_v4 }
 0x265   : > { %1669 = vmatpush.bf16.msrb.mxu3 %v1400_v30  ;;  %v4562_v30 = vor.u32 %v5577_v62, %v4561_v49  ;;  %v4753_v49 = vld [vmem:[#allocation2 + $0x1f0] sm:$0xf]  ;;  %v5625_v62 = vld [vmem:[#allocation2 + $0x1f4] sm:$0xf0] }
 0x267   : > { %2325 = vmatpush.bf16.msrb.mxu0 %v4562_v30  ;;  %v4754_v30 = vor.u32 %v5625_v62, %v4753_v49  ;;  %v4777_v49 = vld [vmem:[#allocation2 + $0x220] sm:$0xf] }
 0x268   : > { %1656 = vmatpush.bf16.msrb.mxu1 %v7242_v6  ;;  %4502 = vmatmul.msk.bf16.vlgmr.msrb.gmra.mxu3 %vm1468_vm6, %v7154_v0  ;;  %v1460_v23 = vpop.permute.xlu0 %1459 }
 0x269   : > { %v1529_v55 = vadd.f32 %v1528_v50, %v1460_v23  ;;  %v5593_v50 = vld [vmem:[#allocation2 + $0xf4] sm:$0xf0] }
 0x26b   : > { %1657 = vmatmul.bf16.vlgmr.msrb.gmra.mxu1 %v7206_v25  ;;  %v1542_v28 = vadd.f32 %v1541_v33, %v1529_v55 }
 0x26c   : > { %2364 = vmatpush.bf16.msra.mxu1 %v4754_v30  ;;  %v4849_v30 = vld [vmem:[#allocation2 + $0x2b0] sm:$0xf] }
 0x26d   : > { %v1676_v37 = vmax.f32 %v1542_v28, 0.0  ;;  %v4545_v28 = vld [vmem:[#allocation2 + $0x50] sm:$0xf] }
 0x271   : > { %v1502_v56 = vpop.f32.mrf.mxu0 }
 0x272   : > { %v1554_v20 = vpop.f32.mrf.mxu1  ;;  %v1503_v13 = vadd.f32 %v1502_v56, %v1460_v23  ;;  %v5575_v56 = vld [vmem:[#allocation2 + $0x64] sm:$0xf0] }
 0x273   : > { %v1555_v31 = vadd.f32 %v1554_v20, %v1460_v23  ;;  %v4626_v20 = vor.u32 %v5593_v50, %v4625_v3  ;;  %v4817_v3 = vld [vmem:[#allocation2 + $0x270] sm:$0xf]  ;;  %v5641_v50 = vld [vmem:[#allocation2 + $0x274] sm:$0xf0] }
 0x274   : > { %v1516_v0 = vadd.f32 %v1515_v2, %v1503_v13  ;;  %v4537_v13 = vld [vmem:[#allocation2 + $0x40] sm:$0xf] }
 0x275   : > { %2338 = vmatpush.bf16.msrb.mxu2 %v4626_v20  ;;  %v4818_v20 = vor.u32 %v5641_v50, %v4817_v3  ;;  %v5631_v3 = vld [vmem:[#allocation2 + $0x224] sm:$0xf0]  ;;  %v5649_v50 = vld [vmem:[#allocation2 + $0x2b4] sm:$0xf0] }
 0x276   : > { %v1675_v25 = vmax.f32 %v1516_v0, 0.0  ;;  %v4601_v0 = vld [vmem:[#allocation2 + $0xc0] sm:$0xf] }
 0x279   : > { %v1504_v57 = vpop.f32.mrf.mxu0 }
 0x27a   : > { %v1556_v4 = vpop.f32.mrf.mxu1  ;;  %v4617_v57 = vld [vmem:[#allocation2 + $0xe0] sm:$0xf] }
 0x27b   : > { %v5591_v4 = vld [vmem:[#allocation2 + $0xe4] sm:$0xf0] }
 0x27c   : > { %v4618_v55 = vor.u32 %v5591_v4, %v4617_v57  ;;  %v4809_v57 = vld [vmem:[#allocation2 + $0x260] sm:$0xf]  ;;  %v5639_v4 = vld [vmem:[#allocation2 + $0x264] sm:$0xf0] }
 0x27e   : > { %2339 = vmatpush.bf16.msrb.mxu2 %v4618_v55 }
 0x286   : > { %v1567_v47 = vpop.f32.mrf.mxu3 }
 0x287   : > { %v1568_v24 = vadd.f32 %v1567_v47, %v1555_v31  ;;  %v5573_v31 = vld [vmem:[#allocation2 + $0x54] sm:$0xf0]  ;;  %v4609_v47 = vld [vmem:[#allocation2 + $0xd0] sm:$0xf] }
 0x289   : > { %v1677_v63 = vmax.f32 %v1568_v24, 0.0  ;;  %v4546_v24 = vor.u32 %v5573_v31, %v4545_v28  ;;  %v5609_v28 = vld [vmem:[#allocation2 + $0x174] sm:$0xf0]  ;;  %v4737_v31 = vld [vmem:[#allocation2 + $0x1d0] sm:$0xf] }
 0x28b   : > { %v5918_v6 = vpack.i.bf16 %v1677_v63, %v1676_v37 }
 0x28d   : > { %5919 = vrot.lane.b32.xlu1 %v5918_v6, %s6109_s22  ;;  %v5571_v6 = vld [vmem:[#allocation2 + $0x44] sm:$0xf0] }
 0x28e   : > { %v1569_v39 = vpop.f32.mrf.mxu3 }
 0x28f   : > { %v5587_v39 = vld [vmem:[#allocation2 + $0xc4] sm:$0xf0] }
 0x295   : > { %1689 = vrot.lane.b32.xlu1 %v1675_v25, %s6109_s22 }
 0x2a2   : > { %v1580_v41 = vpop.f32.mrf.mxu0 }
 0x2a3   : > { %v1581_v9 = vadd.f32 %v1580_v41, %v1460_v23  ;;  %v4602_v41 = vor.u32 %v5587_v39, %v4601_v0  ;;  %v5657_v0 = vld [vmem:[#allocation2 + $0x2f4] sm:$0xf0]  ;;  %v4681_v39 = vld [vmem:[#allocation2 + $0x160] sm:$0xf] }
 0x2a8   : > { %v1606_v14 = vpop.f32.mrf.mxu3 }
 0x2a9   : > { %v1607_v21 = vadd.f32 %v1606_v14, %v1460_v23  ;;  %v4529_v14 = vld [vmem:[#allocation2 + $0x30] sm:$0xf] }
 0x2aa   : > { %v1582_v7 = vpop.f32.mrf.mxu0 }
 0x2ab   : > { %v5569_v7 = vld [vmem:[#allocation2 + $0x34] sm:$0xf0] }
 0x2b0   : > { %v1608_v52 = vpop.f32.mrf.mxu3 }
 0x2b1   : > { %v4593_v52 = vld [vmem:[#allocation2 + $0xb0] sm:$0xf] }
 0x2bf   : > { %v1593_v1 = vpop.f32.mrf.mxu2 }
 0x2c0   : > { %v7472_v12 = vadd.f32 %v1593_v1, %v1581_v9  ;;  %v5585_v9 = vld [vmem:[#allocation2 + $0xb4] sm:$0xf0]  ;;  %v4530_v1 = vor.u32 %v5569_v7, %v4529_v14 }
 0x2c2   : > { %v1678_v18 = vmax.f32 %v7472_v12, 0.0  ;;  %v4513_v12 = vld [vmem:[#allocation2 + $0x10] sm:$0xf] }
 0x2c4   : > { %1695 = vrot.lane.b32.xlu2 %v1678_v18, %s6109_s22 }
 0x2c7   : > { %v1595_v27 = vpop.f32.mrf.mxu2 }
 0x2c8   : > { %v1619_v58 = vpop.f32.mrf.mxu1  ;;  %v4521_v27 = vld [vmem:[#allocation2 + $0x20] sm:$0xf] }
 0x2c9   : > { %v7478_v53 = vadd.f32 %v1619_v58, %v1607_v21  ;;  %v4594_v21 = vor.u32 %v5585_v9, %v4593_v52  ;;  %v5567_v58 = vld [vmem:[#allocation2 + $0x24] sm:$0xf0]  ;;  %v4729_v52 = vld [vmem:[#allocation2 + $0x1c0] sm:$0xf] }
 0x2ca   : > { %v4873_v9 = vld [vmem:[#allocation2 + $0x2e0] sm:$0xf] }
 0x2cb   : > { %v1679_v46 = vmax.f32 %v7478_v53, 0.0 }
 0x2cd   : > { %1697 = vrot.lane.b32.xlu2 %v1679_v46, %s6109_s22 }
 0x2d0   : > { %v1621_v59 = vpop.f32.mrf.mxu1 }
 0x2d1   : > { %v4585_v59 = vld [vmem:[#allocation2 + $0xa0] sm:$0xf] }
 0x2df   : > { %v1632_v19 = vpop.f32.mrf.mxu2 }
 0x2e0   : > { %v1645_v44 = vpop.f32.mrf.mxu0  ;;  %v1633_v36 = vadd.f32 %v1632_v19, %v1460_v23  ;;  %v5583_v19 = vld [vmem:[#allocation2 + $0xa4] sm:$0xf0] }
 0x2e2   : > { %v7484_v16 = vadd.f32 %v1645_v44, %v1633_v36  ;;  %v4522_v44 = vor.u32 %v5567_v58, %v4521_v27  ;;  %v4586_v36 = vor.u32 %v5583_v19, %v4585_v59  ;;  %v5619_v27 = vld [vmem:[#allocation2 + $0x1c4] sm:$0xf0]  ;;  %v4673_v59 = vld [vmem:[#allocation2 + $0x150] sm:$0xf]  ;;  %v5605_v19 = vld [vmem:[#allocation2 + $0x154] sm:$0xf0] }
 0x2e4   : > { %v1680_v11 = vmax.f32 %v7484_v16, 0.0  ;;  %v4505_v16 = vld [vmem:[#allocation2] sm:$0xf] }
 0x2e7   : > { %v1634_v17 = vpop.f32.mrf.mxu2 }
 0x2e8   : > { %v1658_v29 = vpop.f32.mrf.mxu1  ;;  %v1647_v42 = vpop.f32.mrf.mxu0 }
 0x2e9   : > { %v1659_v5 = vadd.f32 %v1658_v29, %v1460_v23  ;;  %v4554_v23 = vor.u32 %v5575_v56, %v4553_v22  ;;  %v4745_v22 = vld [vmem:[#allocation2 + $0x1e0] sm:$0xf]  ;;  %v5623_v56 = vld [vmem:[#allocation2 + $0x1e4] sm:$0xf0] }
 0x2ea   : > { %v4746_v55 = vor.u32 %v5623_v56, %v4745_v22 }
 0x2eb   : > { %v1671_v8 = vpop.f32.mrf.mxu3  ;;  %2326 = vmatpush.bf16.msrb.mxu0 %v4554_v23  ;;  %v4689_v23 = vld [vmem:[#allocation2 + $0x170] sm:$0xf] }
 0x2ec   : > { %v7486_v15 = vadd.f32 %v1671_v8, %v1659_v5  ;;  %2365 = vmatpush.bf16.msra.mxu1 %v4746_v55  ;;  %v5613_v55 = vld [vmem:[#allocation2 + $0x194] sm:$0xf0] }
 0x2ee   : > { %v1681_v61 = vmax.f32 %v7486_v15, 0.0 }
 0x2ef   : > { %2327 = vmatpush.bf16.msrb.mxu0 %v4546_v24  ;;  %v4690_v24 = vor.u32 %v5609_v28, %v4689_v23  ;;  %v4705_v23 = vld [vmem:[#allocation2 + $0x190] sm:$0xf] }
 0x2f0   : > { %v1660_v10 = vpop.f32.mrf.mxu1  ;;  %v5923_v40 = vpack.i.bf16 %v1681_v61, %v1680_v11  ;;  %v4769_v28 = vld [vmem:[#allocation2 + $0x210] sm:$0xf] }
 0x2f1   : > { %2351 = vmatpush.bf16.msra.mxu3 %v4690_v24  ;;  %v5647_v24 = vld [vmem:[#allocation2 + $0x2a4] sm:$0xf0] }
 0x2f2   : > { %5924 = vrot.lane.b32.xlu0 %v5923_v40, %s6109_s22 }
 0x2f3   : > { %v1673_v26 = vpop.f32.mrf.mxu3 }
 0x2ff   : > { %v5920_v2 = vpop.permute.xlu1 %5919 }
 0x300   : > { %v5921_v60 = vunpack.i.l.bf16 %v5920_v2  ;;  %v5922_v33 = vunpack.i.h.bf16 %v5920_v2 }
 0x302   : > { %v1705_v45 = vsel %vm646_vm11, %v5921_v60, %v5922_v33 }
 0x303   : > { %v7502_v35 = vmax.f32 %v1676_v37, %v1705_v45  ;;  %v5589_v37 = vld [vmem:[#allocation2 + $0xd4] sm:$0xf0]  ;;  %v4569_v45 = vld [vmem:[#allocation2 + $0x80] sm:$0xf] }
 0x307   : > { %v1690_v51 = vpop.permute.xlu1 %1689 }
 0x308   : > { %v1704_v34 = vsel %vm646_vm11, %v1690_v51, %v5921_v60 }
 0x309   : > { %v7496_v43 = vmax.f32 %v1675_v25, %v1704_v34  ;;  %v4538_v25 = vor.u32 %v5571_v6, %v4537_v13  ;;  %v4577_v34 = vld [vmem:[#allocation2 + $0x90] sm:$0xf]  ;;  %v5637_v13 = vld [vmem:[#allocation2 + $0x254] sm:$0xf0] }
 0x30a   : > { %v4881_v6 = vld [vmem:[#allocation2 + $0x2f0] sm:$0xf] }
 0x30b   : > { %1731 = vrot.lane.b32.xlu2 %v7496_v43, %s6105_s30  ;;  %2328 = vmatpush.bf16.msrb.mxu0 %v4538_v25  ;;  %v5607_v25 = vld [vmem:[#allocation2 + $0x164] sm:$0xf0] }
 0x30c   : > { %v4682_v14 = vor.u32 %v5607_v25, %v4681_v39  ;;  %v4641_v39 = vld [vmem:[#allocation2 + $0x110] sm:$0xf]  ;;  %v5597_v25 = vld [vmem:[#allocation2 + $0x114] sm:$0xf0] }
 0x30e   : > { %2352 = vmatpush.bf16.msra.mxu3 %v4682_v14 }
 0x30f   : > { %2329 = vmatpush.bf16.msrb.mxu0 %v4530_v1  ;;  %v5655_v1 = vld [vmem:[#allocation2 + $0x2e4] sm:$0xf0] }
 0x310   : > { %v4874_v58 = vor.u32 %v5655_v1, %v4873_v9  ;;  %v5576_v1 = vld [vmem:[#allocation2 + $0x74] sm:$0xf] }
 0x313   : > { %2330 = vmatpush.bf16.msrb.mxu0 %v4522_v44  ;;  %v4793_v44 = vld [vmem:[#allocation2 + $0x240] sm:$0xf] }
 0x31e   : > { %v1696_v38 = vpop.permute.xlu2 %1695 }
 0x31f   : > { %v1706_v48 = vsel %vm646_vm11, %v5922_v33, %v1696_v38 }
 0x320   : > { %v7504_v32 = vmax.f32 %v1677_v63, %v1706_v48  ;;  %v4610_v63 = vor.u32 %v5589_v37, %v4609_v47  ;;  %v5579_v48 = vld [vmem:[#allocation2 + $0x84] sm:$0xf0]  ;;  %v5621_v47 = vld [vmem:[#allocation2 + $0x1d4] sm:$0xf0]  ;;  %v4810_v37 = vor.u32 %v5639_v4, %v4809_v57  ;;  %v4778_v4 = vor.u32 %v5631_v3, %v4777_v49  ;;  %v4555_v49 = vld [vmem:[#allocation2 + $0x68] sm:$0xf0] }
 0x321   : > { %v4738_v7 = vor.u32 %v5621_v47, %v4737_v31  ;;  %v5599_v57 = vld [vmem:[#allocation2 + $0x124] sm:$0xf0]  ;;  %v4850_v31 = vor.u32 %v5649_v50, %v4849_v30  ;;  %v5629_v47 = vld [vmem:[#allocation2 + $0x214] sm:$0xf0]  ;;  %v4825_v30 = vld [vmem:[#allocation2 + $0x280] sm:$0xf] }
 0x322   : > { %v5928_v54 = vpack.i.bf16 %v7504_v32, %v7502_v35  ;;  %2340 = vmatpush.bf16.msrb.mxu2 %v4610_v63  ;;  %v4801_v63 = vld [vmem:[#allocation2 + $0x250] sm:$0xf]  ;;  %v4770_v14 = vor.u32 %v5629_v47, %v4769_v28  ;;  %v5643_v50 = vld [vmem:[#allocation2 + $0x284] sm:$0xf0]  ;;  %v4547_v47 = vld [vmem:[#allocation2 + $0x58] sm:$0xf0] }
 0x323   : > { %2366 = vmatpush.bf16.msra.mxu1 %v4738_v7  ;;  %v4761_v7 = vld [vmem:[#allocation2 + $0x200] sm:$0xf]  ;;  %v4826_v28 = vor.u32 %v5643_v50, %v4825_v30  ;;  %v4515_v50 = vld [vmem:[#allocation2 + $0x18] sm:$0xf0] }
 0x324   : > { %5929 = vrot.lane.b32.xlu1 %v5928_v54, %s6105_s30  ;;  %v4570_v54 = vor.u32 %v5579_v48, %v4569_v45  ;;  %v5601_v45 = vld [vmem:[#allocation2 + $0x134] sm:$0xf0]  ;;  %v4713_v48 = vld [vmem:[#allocation2 + $0x1a0] sm:$0xf] }
 0x326   : > { %2341 = vmatpush.bf16.msrb.mxu2 %v4602_v41  ;;  %v4882_v41 = vor.u32 %v5657_v0, %v4881_v6  ;;  %v4706_v6 = vor.u32 %v5613_v55, %v4705_v23  ;;  %v5611_v0 = vld [vmem:[#allocation2 + $0x184] sm:$0xf0] }
 0x327   : > { %v1698_v29 = vpop.permute.xlu2 %1697  ;;  %v5667_v23 = vld [vmem:[#allocation2 + $0x344] sm:$0xf0] }
 0x328   : > { %v1707_v42 = vsel %vm646_vm11, %v1696_v38, %v1698_v29 }
 0x329   : > { %v7518_v2 = vmax.f32 %v1678_v18, %v1707_v42  ;;  %v5565_v18 = vld [vmem:[#allocation2 + $0x14] sm:$0xf0] }
 0x32a   : > { %2342 = vmatpush.bf16.msrb.mxu2 %v4594_v21  ;;  %v4514_v53 = vor.u32 %v5565_v18, %v4513_v12  ;;  %v4802_v21 = vor.u32 %v5637_v13, %v4801_v63  ;;  %v5653_v42 = vld [vmem:[#allocation2 + $0x2d4] sm:$0xf0]  ;;  %v4785_v12 = vld [vmem:[#allocation2 + $0x230] sm:$0xf]  ;;  %v4697_v13 = vld [vmem:[#allocation2 + $0x180] sm:$0xf] }
 0x32c   : > { %2331 = vmatpush.bf16.msrb.mxu0 %v4514_v53  ;;  %v4857_v53 = vld [vmem:[#allocation2 + $0x2c0] sm:$0xf] }
 0x32e   : > { %2343 = vmatpush.bf16.msrb.mxu2 %v4586_v36  ;;  %v5635_v36 = vld [vmem:[#allocation2 + $0x244] sm:$0xf0] }
 0x364   : > { %v5925_v17 = vpop.permute.xlu0 %5924 }
 0x365   : > { %v5927_v5 = vunpack.i.h.bf16 %v5925_v17  ;;  %v5926_v8 = vunpack.i.l.bf16 %v5925_v17  ;;  %v4865_v17 = vld [vmem:[#allocation2 + $0x2d0] sm:$0xf] }
 0x366   : > { %v4866_v18 = vor.u32 %v5653_v42, %v4865_v17  ;;  %v6120_v17 = vmov 65535  }
 0x367   : > { %v7512_v10 = vmax.f32 %v1681_v61, %v5927_v5  ;;  %v1708_v40 = vsel %vm646_vm11, %v1698_v29, %v5926_v8  ;;  %v1709_v26 = vsel %vm646_vm11, %v5926_v8, %v5927_v5  ;;  %v4674_v29 = vor.u32 %v5605_v19, %v4673_v59  ;;  %v4665_v8 = vld [vmem:[#allocation2 + $0x140] sm:$0xf]  ;;  %v5669_v59 = vld [vmem:[#allocation2 + $0x354] sm:$0xf0]  ;;  %v1732_v19 = vpop.permute.xlu2 %1731 }
 0x368   : > { %v7522_v60 = vmax.f32 %v1679_v46, %v1708_v40  ;;  %v7526_v51 = vmax.f32 %v1680_v11, %v1709_v26  ;;  %v5581_v46 = vld [vmem:[#allocation2 + $0x94] sm:$0xf0]  ;;  %v5563_v11 = vld [vmem:[#allocation2 + $0x4] sm:$0xf0]  ;;  %v4730_v5 = vor.u32 %v5619_v27, %v4729_v52  ;;  %v4794_v26 = vor.u32 %v5635_v36, %v4793_v44  ;;  %v4563_v44 = vld [vmem:[#allocation2 + $0x78] sm:$0xf0] }
 0x369   : > { %v4578_v33 = vor.u32 %v5581_v46, %v4577_v34  ;;  %v4506_v38 = vor.u32 %v5563_v11, %v4505_v16  ;;  %v5603_v40 = vld [vmem:[#allocation2 + $0x144] sm:$0xf0]  ;;  %v5633_v34 = vld [vmem:[#allocation2 + $0x234] sm:$0xf0]  ;;  %2353 = vmatpush.bf16.msra.mxu3 %v4674_v29  ;;  %v4657_v11 = vld [vmem:[#allocation2 + $0x130] sm:$0xf]  ;;  %v4642_v29 = vor.u32 %v5597_v25, %v4641_v39 }
 0x36a   : > { %v5938_v15 = vpack.i.bf16 %v7522_v60, %v7512_v10  ;;  %v5933_v61 = vpack.i.bf16 %v7526_v51, %v7518_v2  ;;  %v5651_v46 = vld [vmem:[#allocation2 + $0x2c4] sm:$0xf0]  ;;  %2367 = vmatpush.bf16.msra.mxu1 %v4730_v5  ;;  %v4658_v22 = vor.u32 %v5601_v45, %v4657_v11  ;;  %v5592_v36 = vld [vmem:[#allocation2 + $0xf4] sm:$0xf]  ;;  %v2317_v42 = vsel %vm2315_vm8, 4294967295, %v6120_v17 }
 0x36b   : > { %2344 = vmatpush.bf16.msrb.mxu2 %v4578_v33  ;;  %2332 = vmatpush.bf16.msrb.mxu0 %v4506_v38  ;;  %v4666_v33 = vor.u32 %v5603_v40, %v4665_v8  ;;  %v4786_v38 = vor.u32 %v5633_v34, %v4785_v12  ;;  %v4858_v62 = vor.u32 %v5651_v46, %v4857_v53  ;;  %v5627_v52 = vld [vmem:[#allocation2 + $0x204] sm:$0xf0]  ;;  %v4633_v34 = vld [vmem:[#allocation2 + $0x100] sm:$0xf]  ;;  %v7545_v11 = vsel %vm2316_vm12, %v2317_v42, 0 }
 0x36c   : > { %5934 = vrot.lane.b32.xlu0 %v5933_v61, %s6105_s30  ;;  %5939 = vrot.lane.b32.xlu1 %v5938_v15, %s6105_s30  ;;  %v4721_v15 = vld [vmem:[#allocation2 + $0x1b0] sm:$0xf]  ;;  %v5617_v61 = vld [vmem:[#allocation2 + $0x1b4] sm:$0xf0]  ;;  %v4698_v40 = vor.u32 %v5611_v0, %v4697_v13  ;;  %v5595_v53 = vld [vmem:[#allocation2 + $0x104] sm:$0xf0] }
 0x36d   : > { %v4722_v16 = vor.u32 %v5617_v61, %v4721_v15  ;;  %2354 = vmatpush.bf16.msra.mxu3 %v4666_v33  ;;  %v4833_v15 = vld [vmem:[#allocation2 + $0x290] sm:$0xf]  ;;  %v5645_v61 = vld [vmem:[#allocation2 + $0x294] sm:$0xf0]  ;;  %v4762_v33 = vor.u32 %v5627_v52, %v4761_v7  ;;  %v4634_v3 = vor.u32 %v5595_v53, %v4633_v34  ;;  %v4683_v0 = vld [vmem:[#allocation2 + $0x168] sm:$0xf0] }
 0x36e   : > { %v4913_v25 = vld [vmem:[#allocation2 + $0x330] sm:$0xf]  ;;  %v5570_v52 = vld [vmem:[#allocation2 + $0x44] sm:$0xf]  ;;  %v5663_v17 = vld [vmem:[#allocation2 + $0x324] sm:$0xf0] }
 0x36f   : > { %2345 = vmatpush.bf16.msrb.mxu2 %v4570_v54  ;;  %2377 = vmatpush.bf16.msra.mxu0 %v4818_v20  ;;  %v5615_v54 = vld [vmem:[#allocation2 + $0x1a4] sm:$0xf0]  ;;  %v4649_v20 = vld [vmem:[#allocation2 + $0x120] sm:$0xf]  ;;  %v5566_v34 = vld [vmem:[#allocation2 + $0x24] sm:$0xf] }
 0x370   : > { %2368 = vmatpush.bf16.msra.mxu1 %v4722_v16  ;;  %v4714_v56 = vor.u32 %v5615_v54, %v4713_v48  ;;  %v4650_v63 = vor.u32 %v5599_v57, %v4649_v20  ;;  %v4566_v16 = vor.u32 %v5576_v1, %v4563_v44  ;;  %v4834_v54 = vor.u32 %v5645_v61, %v4833_v15  ;;  %v4691_v20 = vld [vmem:[#allocation2 + $0x178] sm:$0xf0]  ;;  %v5586_v1 = vld [vmem:[#allocation2 + $0xc4] sm:$0xf]  ;;  %v4523_v53 = vld [vmem:[#allocation2 + $0x28] sm:$0xf0] }
 0x371   : > { %2355 = vmatpush.bf16.msra.mxu3 %v4658_v22  ;;  %v4675_v44 = vld [vmem:[#allocation2 + $0x158] sm:$0xf0]  ;;  %vm8021_vm8 = vcmask 752640   ;;  %vm8022_vm12 = vcmask 760832  }
 0x373   : > { %2378 = vmatpush.bf16.msra.mxu0 %v4810_v37  ;;  %2390 = vmatpush.bf16.msra.mxu2 %v4882_v41  ;;  %v4841_v37 = vld [vmem:[#allocation2 + $0x2a0] sm:$0xf] }
 0x374   : > { %2369 = vmatpush.bf16.msra.mxu1 %v4714_v56  ;;  %v4842_v9 = vor.u32 %v5647_v24, %v4841_v37  ;;  %v5608_v56 = vld [vmem:[#allocation2 + $0x174] sm:$0xf]  ;;  %v4611_v24 = vld [vmem:[#allocation2 + $0xd8] sm:$0xf0] }
 0x375   : > { %2356 = vmatpush.bf16.msra.mxu3 %v4650_v63  ;;  %v5588_v37 = vld [vmem:[#allocation2 + $0xd4] sm:$0xf]  ;;  %v4694_v63 = vor.u32 %v5608_v56, %v4691_v20  ;;  %v4579_v56 = vld [vmem:[#allocation2 + $0x98] sm:$0xf0] }
 0x376   : > { %v4614_v7 = vor.u32 %v5588_v37, %v4611_v24  ;;  %v4507_v24 = vld [vmem:[#allocation2 + $0x8] sm:$0xf0] }
 0x377   : > { %2379 = vmatpush.bf16.msra.mxu0 %v4802_v21  ;;  %2391 = vmatpush.bf16.msra.mxu2 %v4874_v58  ;;  %v4929_v58 = vld [vmem:[#allocation2 + $0x350] sm:$0xf] }
 0x378   : > { %2370 = vmatpush.bf16.msra.mxu1 %v4706_v6  ;;  %v4930_v46 = vor.u32 %v5669_v59, %v4929_v58  ;;  %v5606_v6 = vld [vmem:[#allocation2 + $0x164] sm:$0xf] }
 0x379   : > { %2357 = vmatpush.bf16.msra.mxu3 %v4642_v29  ;;  %v4686_v58 = vor.u32 %v5606_v6, %v4683_v0  ;;  %v4905_v29 = vld [vmem:[#allocation2 + $0x320] sm:$0xf] }
 0x37a   : > { %v2320_v22 = vand.u32 %v4930_v46, %v7545_v11  ;;  %v4906_v61 = vor.u32 %v5663_v17, %v4905_v29  ;;  %v4526_v46 = vor.u32 %v5566_v34, %v4523_v53 }
 0x37b   : > { %2380 = vmatpush.bf16.msra.mxu0 %v4794_v26  ;;  %2392 = vmatpush.bf16.msra.mxu2 %v4866_v18  ;;  %v4627_v26 = vld [vmem:[#allocation2 + $0xf8] sm:$0xf0] }
 0x37c   : > { %v4630_v48 = vor.u32 %v5592_v36, %v4627_v26  ;;  %2371 = vmatpush.bf16.msra.mxu1 %v4698_v40  ;;  %v5584_v40 = vld [vmem:[#allocation2 + $0xb4] sm:$0xf]  ;;  %v4595_v26 = vld [vmem:[#allocation2 + $0xb8] sm:$0xf0] }
 0x37d   : > { %2358 = vmatpush.bf16.msra.mxu3 %v4634_v3  ;;  %v5564_v3 = vld [vmem:[#allocation2 + $0x14] sm:$0xf] }
 0x37e   : > { %v4518_v20 = vor.u32 %v5564_v3, %v4515_v50 }
 0x37f   : > { %2381 = vmatpush.bf16.msra.mxu0 %v4786_v38  ;;  %2393 = vmatpush.bf16.msra.mxu2 %v4858_v62  ;;  %v4619_v62 = vld [vmem:[#allocation2 + $0xe8] sm:$0xf0] }
 0x380   : > { %2416 = vmatpush.bf16.msrb.mxu1 %v4566_v16  ;;  %v4587_v16 = vld [vmem:[#allocation2 + $0xa8] sm:$0xf0] }
 0x381   : > { %2405 = vmatpush.bf16.msrb.mxu3 %v2320_v22  ;;  %v5580_v22 = vld [vmem:[#allocation2 + $0x94] sm:$0xf] }
 0x383   : > { %2382 = vmatpush.bf16.msra.mxu0 %v4778_v4  ;;  %2394 = vmatpush.bf16.msra.mxu2 %v4850_v31  ;;  %v4921_v4 = vld [vmem:[#allocation2 + $0x340] sm:$0xf]  ;;  %v5572_v31 = vld [vmem:[#allocation2 + $0x54] sm:$0xf] }
 0x384   : > { %v4922_v13 = vor.u32 %v5667_v23, %v4921_v4  ;;  %v4550_v39 = vor.u32 %v5572_v31, %v4547_v47  ;;  %v5600_v4 = vld [vmem:[#allocation2 + $0x134] sm:$0xf]  ;;  %v4659_v23 = vld [vmem:[#allocation2 + $0x138] sm:$0xf0]  ;;  %v5659_v31 = vld [vmem:[#allocation2 + $0x304] sm:$0xf0] }
 0x385   : > { %v5562_v47 = vld [vmem:[#allocation2 + $0x4] sm:$0xf] }
 0x386   : > { %2406 = vmatpush.bf16.msrb.mxu3 %v4922_v13  ;;  %v4571_v13 = vld [vmem:[#allocation2 + $0x88] sm:$0xf0]  ;;  %v4510_v6 = vor.u32 %v5562_v47, %v4507_v24  ;;  %v5636_v47 = vld [vmem:[#allocation2 + $0x254] sm:$0xf] }
 0x387   : > { %2383 = vmatpush.bf16.msra.mxu0 %v4770_v14  ;;  %2395 = vmatpush.bf16.msra.mxu2 %v4842_v9  ;;  %v5665_v14 = vld [vmem:[#allocation2 + $0x334] sm:$0xf0]  ;;  %v4539_v9 = vld [vmem:[#allocation2 + $0x48] sm:$0xf0]  ;;  %v5652_v24 = vld [vmem:[#allocation2 + $0x2d4] sm:$0xf] }
 0x388   : > { %v4914_v59 = vor.u32 %v5665_v14, %v4913_v25  ;;  %v4542_v36 = vor.u32 %v5570_v52, %v4539_v9  ;;  %v4651_v25 = vld [vmem:[#allocation2 + $0x128] sm:$0xf0]  ;;  %v4643_v52 = vld [vmem:[#allocation2 + $0x118] sm:$0xf0] }
 0x38a   : > { %2407 = vmatpush.bf16.msrb.mxu3 %v4914_v59  ;;  %v5668_v59 = vld [vmem:[#allocation2 + $0x354] sm:$0xf] }
 0x38b   : > { %2384 = vmatpush.bf16.msra.mxu0 %v4762_v33  ;;  %2396 = vmatpush.bf16.msra.mxu2 %v4834_v54  ;;  %v5582_v33 = vld [vmem:[#allocation2 + $0xa4] sm:$0xf] }
 0x38c   : > { %v4590_v54 = vor.u32 %v5582_v33, %v4587_v16 }
 0x38e   : > { %2408 = vmatpush.bf16.msrb.mxu3 %v4906_v61 }
 0x38f   : > { %2397 = vmatpush.bf16.msra.mxu2 %v4826_v28  ;;  %v4889_v28 = vld [vmem:[#allocation2 + $0x300] sm:$0xf] }
 0x390   : > { %v4890_v37 = vor.u32 %v5659_v31, %v4889_v28  ;;  %v4739_v28 = vld [vmem:[#allocation2 + $0x1d8] sm:$0xf0] }
 0x396   : > { %v7534_v41 = vpop.permute.xlu1 %5929 }
 0x397   : > { %v5932_v21 = vunpack.i.h.bf16 %v7534_v41  ;;  %v5931_v27 = vunpack.i.l.bf16 %v7534_v41  ;;  %v4883_v41 = vld [vmem:[#allocation2 + $0x2f8] sm:$0xf0] }
 0x399   : > { %v1746_v5 = vsel %vm742_vm5, %v1732_v19, %v5931_v27  ;;  %v1747_v8 = vsel %vm742_vm5, %v5931_v27, %v5932_v21  ;;  %v4603_v27 = vld [vmem:[#allocation2 + $0xc8] sm:$0xf0]  ;;  %v5604_v19 = vld [vmem:[#allocation2 + $0x154] sm:$0xf] }
 0x39a   : > { %v1759_v12 = vmax.f32 %v7496_v43, %v1746_v5  ;;  %v1760_v18 = vmax.f32 %v7502_v35, %v1747_v8  ;;  %v5574_v43 = vld [vmem:[#allocation2 + $0x64] sm:$0xf]  ;;  %v4606_v42 = vor.u32 %v5586_v1, %v4603_v27  ;;  %v5568_v5 = vld [vmem:[#allocation2 + $0x34] sm:$0xf]  ;;  %v4531_v8 = vld [vmem:[#allocation2 + $0x38] sm:$0xf0]  ;;  %v4678_v15 = vor.u32 %v5604_v19, %v4675_v44 }
 0x39b   : > { %v5590_v35 = vld [vmem:[#allocation2 + $0xe4] sm:$0xf]  ;;  %v4558_v57 = vor.u32 %v5574_v43, %v4555_v49  ;;  %v4667_v43 = vld [vmem:[#allocation2 + $0x148] sm:$0xf0]  ;;  %v4931_v19 = vld [vmem:[#allocation2 + $0x358] sm:$0xf0] }
 0x39c   : > { %v7547_v45 = vpack.c.bf16 %v1759_v12, %v1759_v12  ;;  %v7549_v38 = vpack.c.bf16 %v1760_v18, %v1760_v18  ;;  %v4622_v55 = vor.u32 %v5590_v35, %v4619_v62  ;;  %v4534_v12 = vor.u32 %v5568_v5, %v4531_v8  ;;  %v4897_v35 = vld [vmem:[#allocation2 + $0x310] sm:$0xf]  ;;  %v5661_v62 = vld [vmem:[#allocation2 + $0x314] sm:$0xf0]  ;;  %v5594_v1 = vld [vmem:[#allocation2 + $0x104] sm:$0xf] }
 0x39d   : > { %2417 = vmatpush.bf16.msrb.mxu1 %v4558_v57  ;;  %v4598_v18 = vor.u32 %v5584_v40, %v4595_v26  ;;  %v4898_v30 = vor.u32 %v5661_v62, %v4897_v35  ;;  %v4582_v57 = vor.u32 %v5580_v22, %v4579_v56  ;;  %v4635_v27 = vld [vmem:[#allocation2 + $0x108] sm:$0xf0]  ;;  %v5624_v8 = vld [vmem:[#allocation2 + $0x1f4] sm:$0xf]  ;;  %v4755_v40 = vld [vmem:[#allocation2 + $0x1f8] sm:$0xf0]  ;;  %v4934_v61 = vor.u32 %v5668_v59, %v4931_v19 }
 0x39e   : > { %2333 = vmatmul.bf16.vlgmr.msrb.gmra.mxu0 %v7547_v45  ;;  %2346 = vmatmul.bf16.vlgmr.msrb.gmra.mxu2 %v7549_v38  ;;  %v5640_v26 = vld [vmem:[#allocation2 + $0x274] sm:$0xf]  ;;  %v4811_v22 = vld [vmem:[#allocation2 + $0x268] sm:$0xf0]  ;;  %v5662_v19 = vld [vmem:[#allocation2 + $0x324] sm:$0xf] }
 0x39f   : > { %2429 = vmatpush.bf16.msrb.mxu0 %v4630_v48  ;;  %2442 = vmatpush.bf16.msrb.mxu2 %v4694_v63  ;;  %v5602_v48 = vld [vmem:[#allocation2 + $0x144] sm:$0xf]  ;;  %v4875_v56 = vld [vmem:[#allocation2 + $0x2e8] sm:$0xf0] }
 0x3a0   : > { %v4670_v49 = vor.u32 %v5602_v48, %v4667_v43  ;;  %2409 = vmatpush.bf16.msrb.mxu3 %v4898_v30  ;;  %v5578_v63 = vld [vmem:[#allocation2 + $0x84] sm:$0xf]  ;;  %v4758_v43 = vor.u32 %v5624_v8, %v4755_v40  ;;  %v4859_v59 = vld [vmem:[#allocation2 + $0x2c8] sm:$0xf0]  ;;  %v5616_v8 = vld [vmem:[#allocation2 + $0x1b4] sm:$0xf] }
 0x3a1   : > { %2418 = vmatpush.bf16.msrb.mxu1 %v4550_v39  ;;  %v4574_v0 = vor.u32 %v5578_v63, %v4571_v13  ;;  %v5598_v39 = vld [vmem:[#allocation2 + $0x124] sm:$0xf]  ;;  %v4867_v13 = vld [vmem:[#allocation2 + $0x2d8] sm:$0xf0] }
 0x3a2   : > { %v4654_v14 = vor.u32 %v5598_v39, %v4651_v25  ;;  %v5622_v30 = vld [vmem:[#allocation2 + $0x1e4] sm:$0xf]  ;;  %v4723_v40 = vld [vmem:[#allocation2 + $0x1b8] sm:$0xf0] }
 0x3a3   : > { %2430 = vmatpush.bf16.msrb.mxu0 %v4622_v55  ;;  %2443 = vmatpush.bf16.msrb.mxu2 %v4686_v58  ;;  %v4662_v55 = vor.u32 %v5600_v4, %v4659_v23  ;;  %v4638_v58 = vor.u32 %v5594_v1, %v4635_v27  ;;  %v4795_v1 = vld [vmem:[#allocation2 + $0x248] sm:$0xf0]  ;;  %v5650_v27 = vld [vmem:[#allocation2 + $0x2c4] sm:$0xf] }
 0x3a4   : > { %2410 = vmatpush.bf16.msrb.mxu3 %v4890_v37  ;;  %v4803_v37 = vld [vmem:[#allocation2 + $0x258] sm:$0xf0] }
 0x3a5   : > { %2419 = vmatpush.bf16.msrb.mxu1 %v4542_v36  ;;  %v4806_v25 = vor.u32 %v5636_v47, %v4803_v37  ;;  %v5626_v47 = vld [vmem:[#allocation2 + $0x204] sm:$0xf]  ;;  %v4763_v37 = vld [vmem:[#allocation2 + $0x208] sm:$0xf0] }
 0x3a7   : > { %2431 = vmatpush.bf16.msrb.mxu0 %v4614_v7  ;;  %2444 = vmatpush.bf16.msrb.mxu2 %v4678_v15  ;;  %v5596_v7 = vld [vmem:[#allocation2 + $0x114] sm:$0xf]  ;;  %v4819_v15 = vld [vmem:[#allocation2 + $0x278] sm:$0xf0] }
 0x3a8   : > { %v4646_v9 = vor.u32 %v5596_v7, %v4643_v52  ;;  %v4731_v7 = vld [vmem:[#allocation2 + $0x1c8] sm:$0xf0]  ;;  %v4870_v52 = vor.u32 %v5652_v24, %v4867_v13  ;;  %v5642_v24 = vld [vmem:[#allocation2 + $0x284] sm:$0xf] }
 0x3a9   : > { %2420 = vmatpush.bf16.msrb.mxu1 %v4534_v12 }
 0x3ab   : > { %2432 = vmatpush.bf16.msrb.mxu0 %v4606_v42  ;;  %2445 = vmatpush.bf16.msrb.mxu2 %v4670_v49 }
 0x3ad   : > { %2421 = vmatpush.bf16.msrb.mxu1 %v4526_v46 }
 0x3af   : > { %2433 = vmatpush.bf16.msrb.mxu0 %v4598_v18  ;;  %2446 = vmatpush.bf16.msrb.mxu2 %v4662_v55  ;;  %v5620_v55 = vld [vmem:[#allocation2 + $0x1d4] sm:$0xf] }
 0x3b0   : > { %v4742_v39 = vor.u32 %v5620_v55, %v4739_v28  ;;  %v5610_v28 = vld [vmem:[#allocation2 + $0x184] sm:$0xf] }
 0x3b1   : > { %2422 = vmatpush.bf16.msrb.mxu1 %v4518_v20  ;;  %v5666_v20 = vld [vmem:[#allocation2 + $0x344] sm:$0xf] }
 0x3b3   : > { %2434 = vmatpush.bf16.msrb.mxu0 %v4590_v54  ;;  %2447 = vmatpush.bf16.msrb.mxu2 %v4654_v14  ;;  %v5656_v54 = vld [vmem:[#allocation2 + $0x2f4] sm:$0xf]  ;;  %v5618_v14 = vld [vmem:[#allocation2 + $0x1c4] sm:$0xf] }
 0x3b4   : > { %v4886_v50 = vor.u32 %v5656_v54, %v4883_v41  ;;  %v5630_v54 = vld [vmem:[#allocation2 + $0x224] sm:$0xf]  ;;  %v4779_v41 = vld [vmem:[#allocation2 + $0x228] sm:$0xf0] }
 0x3b5   : > { %2423 = vmatpush.bf16.msrb.mxu1 %v4510_v6  ;;  %v5664_v6 = vld [vmem:[#allocation2 + $0x334] sm:$0xf] }
 0x3b7   : > { %2435 = vmatpush.bf16.msrb.mxu0 %v4582_v57  ;;  %2448 = vmatpush.bf16.msrb.mxu2 %v4646_v9  ;;  %v4923_v57 = vld [vmem:[#allocation2 + $0x348] sm:$0xf0]  ;;  %v5634_v9 = vld [vmem:[#allocation2 + $0x244] sm:$0xf] }
 0x3b8   : > { %v4926_v63 = vor.u32 %v5666_v20, %v4923_v57  ;;  %v5628_v20 = vld [vmem:[#allocation2 + $0x214] sm:$0xf]  ;;  %v4771_v57 = vld [vmem:[#allocation2 + $0x218] sm:$0xf0] }
 0x3bb   : > { %2436 = vmatpush.bf16.msrb.mxu0 %v4574_v0  ;;  %2449 = vmatpush.bf16.msrb.mxu2 %v4638_v58  ;;  %v4915_v0 = vld [vmem:[#allocation2 + $0x338] sm:$0xf0] }
 0x3bc   : > { %v4918_v58 = vor.u32 %v5664_v6, %v4915_v0  ;;  %v4766_v6 = vor.u32 %v5626_v47, %v4763_v37 }
 0x3de   : > { %v5935_v44 = vpop.permute.xlu0 %5934  ;;  %v7554_v36 = vpop.permute.xlu1 %5939 }
 0x3df   : > { %v5937_v29 = vunpack.i.h.bf16 %v5935_v44  ;;  %v5936_v17 = vunpack.i.l.bf16 %v5935_v44  ;;  %v5942_v42 = vunpack.i.h.bf16 %v7554_v36  ;;  %v5941_v5 = vunpack.i.l.bf16 %v7554_v36  ;;  %v4907_v44 = vld [vmem:[#allocation2 + $0x328] sm:$0xf0] }
 0x3e1   : > { %v1748_v12 = vsel %vm742_vm5, %v5932_v21, %v5936_v17  ;;  %v1749_v18 = vsel %vm742_vm5, %v5936_v17, %v5942_v42  ;;  %v1750_v34 = vsel %vm742_vm5, %v5942_v42, %v5937_v29  ;;  %v1751_v53 = vsel %vm742_vm5, %v5937_v29, %v5941_v5 }
 0x3e2   : > { %v1761_v46 = vmax.f32 %v7504_v32, %v1748_v12  ;;  %v1762_v33 = vmax.f32 %v7518_v2, %v1749_v18  ;;  %v1763_v16 = vmax.f32 %v7522_v60, %v1750_v34  ;;  %v1764_v48 = vmax.f32 %v7526_v51, %v1751_v53  ;;  %v4747_v32 = vld [vmem:[#allocation2 + $0x1e8] sm:$0xf0]  ;;  %v5638_v2 = vld [vmem:[#allocation2 + $0x264] sm:$0xf]  ;;  %v5648_v12 = vld [vmem:[#allocation2 + $0x2b4] sm:$0xf] }
 0x3e3   : > { %v4822_v21 = vor.u32 %v5640_v26, %v4819_v15  ;;  %v5654_v60 = vld [vmem:[#allocation2 + $0x2e4] sm:$0xf]  ;;  %v2323_v51 = vand.u32 %v4934_v61, %v7545_v11  ;;  %v4750_v4 = vor.u32 %v5622_v30, %v4747_v32  ;;  %v4814_v23 = vor.u32 %v5638_v2, %v4811_v22  ;;  %v5632_v15 = vld [vmem:[#allocation2 + $0x234] sm:$0xf]  ;;  %v4787_v61 = vld [vmem:[#allocation2 + $0x238] sm:$0xf0] }
 0x3e4   : > { %v7570_v49 = vpack.c.bf16 %v1761_v46, %v1761_v46  ;;  %v7572_v35 = vpack.c.bf16 %v1762_v33, %v1762_v33  ;;  %v7574_v62 = vpack.c.bf16 %v1763_v16, %v1763_v16  ;;  %v7576_v3 = vpack.c.bf16 %v1764_v48, %v1764_v48  ;;  %v4851_v34 = vld [vmem:[#allocation2 + $0x2b8] sm:$0xf0]  ;;  %v5660_v53 = vld [vmem:[#allocation2 + $0x314] sm:$0xf]  ;;  %v4715_v16 = vld [vmem:[#allocation2 + $0x1a8] sm:$0xf0] }
 0x3e5   : > { %v4878_v31 = vor.u32 %v5654_v60, %v4875_v56  ;;  %v1765_v29 = vmax.f32 %v7512_v10, %v5941_v5  ;;  %v4734_v17 = vor.u32 %v5618_v14, %v4731_v7  ;;  %v4798_v42 = vor.u32 %v5634_v9, %v4795_v1  ;;  %v4899_v46 = vld [vmem:[#allocation2 + $0x318] sm:$0xf0]  ;;  %v5614_v5 = vld [vmem:[#allocation2 + $0x1a4] sm:$0xf]  ;;  %v4843_v30 = vld [vmem:[#allocation2 + $0x2a8] sm:$0xf0] }
 0x3e6   : > { %2359 = vmatmul.bf16.vlgmr.msra.gmra.mxu3 %v7570_v49  ;;  %2372 = vmatmul.bf16.vlgmr.msra.gmra.mxu1 %v7572_v35  ;;  %v4862_v26 = vor.u32 %v5650_v27, %v4859_v59  ;;  %v4910_v18 = vor.u32 %v5662_v19, %v4907_v44  ;;  %v4726_v10 = vor.u32 %v5616_v8, %v4723_v40  ;;  %v5658_v32 = vld [vmem:[#allocation2 + $0x304] sm:$0xf]  ;;  %v5612_v60 = vld [vmem:[#allocation2 + $0x194] sm:$0xf]  ;;  %v4707_v56 = vld [vmem:[#allocation2 + $0x198] sm:$0xf0] }
 0x3e7   : > { %2385 = vmatmul.bf16.vlgmr.msra.gmra.mxu0 %v7574_v62  ;;  %2398 = vmatmul.bf16.vlgmr.msra.gmra.mxu2 %v7576_v3  ;;  %v1772_v33 = vpack.c.bf16 %v1765_v29, %v1765_v29  ;;  %v4790_v36 = vor.u32 %v5632_v15, %v4787_v61  ;;  %v4854_v48 = vor.u32 %v5648_v12, %v4851_v34 }
 0x3e8   : > { %2455 = vmatpush.bf16.msra.mxu3 %v4758_v43  ;;  %2468 = vmatpush.bf16.msra.mxu1 %v4822_v21  ;;  %v5646_v43 = vld [vmem:[#allocation2 + $0x2a4] sm:$0xf]  ;;  %v4902_v21 = vor.u32 %v5660_v53, %v4899_v46  ;;  %v4718_v2 = vor.u32 %v5614_v5, %v4715_v16  ;;  %v4782_v22 = vor.u32 %v5630_v54, %v4779_v41 }
 0x3e9   : > { %2481 = vmatpush.bf16.msra.mxu0 %v4886_v50  ;;  %2496 = vmatpush.bf16.msra.mxu2 %v2323_v51  ;;  %v4891_v50 = vld [vmem:[#allocation2 + $0x308] sm:$0xf0]  ;;  %v4846_v51 = vor.u32 %v5646_v43, %v4843_v30  ;;  %v4710_v55 = vor.u32 %v5612_v60, %v4707_v56 }
 0x3ec   : > { %2456 = vmatpush.bf16.msra.mxu3 %v4750_v4  ;;  %2469 = vmatpush.bf16.msra.mxu1 %v4814_v23  ;;  %v4894_v4 = vor.u32 %v5658_v32, %v4891_v50  ;;  %v4835_v23 = vld [vmem:[#allocation2 + $0x298] sm:$0xf0] }
 0x3ed   : > { %2482 = vmatpush.bf16.msra.mxu0 %v4878_v31  ;;  %2497 = vmatpush.bf16.msra.mxu2 %v4926_v63  ;;  %v4699_v31 = vld [vmem:[#allocation2 + $0x188] sm:$0xf0] }
 0x3ee   : > { %v4827_v63 = vld [vmem:[#allocation2 + $0x288] sm:$0xf0]  ;;  %v4702_v13 = vor.u32 %v5610_v28, %v4699_v31 }
 0x3ef   : > { %v4830_v0 = vor.u32 %v5642_v24, %v4827_v63 }
 0x3f0   : > { %2457 = vmatpush.bf16.msra.mxu3 %v4742_v39  ;;  %2470 = vmatpush.bf16.msra.mxu1 %v4806_v25 }
 0x3f1   : > { %2483 = vmatpush.bf16.msra.mxu0 %v4870_v52  ;;  %2498 = vmatpush.bf16.msra.mxu2 %v4918_v58 }
 0x3f4   : > { %2458 = vmatpush.bf16.msra.mxu3 %v4734_v17  ;;  %2471 = vmatpush.bf16.msra.mxu1 %v4798_v42 }
 0x3f5   : > { %2484 = vmatpush.bf16.msra.mxu0 %v4862_v26  ;;  %2499 = vmatpush.bf16.msra.mxu2 %v4910_v18 }
 0x3f6   : > { %4935 = vmatmul.msk.bf16.vlgmr.msrb.gmra.mxu3 %vm766_vm2, %v1772_v33  ;;  %2424 = vmatmul.bf16.vlgmr.msrb.gmra.mxu1 %v7547_v45  ;;  %v5644_v45 = vld [vmem:[#allocation2 + $0x294] sm:$0xf] }
 0x3f7   : > { %2437 = vmatmul.bf16.vlgmr.msrb.gmra.mxu0 %v7549_v38  ;;  %2450 = vmatmul.bf16.vlgmr.msrb.gmra.mxu2 %v7570_v49  ;;  %v4774_v38 = vor.u32 %v5628_v20, %v4771_v57  ;;  %v4838_v49 = vor.u32 %v5644_v45, %v4835_v23 }
 0x3f8   : > { %2459 = vmatpush.bf16.msra.mxu3 %v4726_v10  ;;  %2472 = vmatpush.bf16.msra.mxu1 %v4790_v36 }
 0x3f9   : > { %2485 = vmatpush.bf16.msra.mxu0 %v4854_v48  ;;  %2500 = vmatpush.bf16.msra.mxu2 %v4902_v21 }
 0x3fc   : > { %2460 = vmatpush.bf16.msra.mxu3 %v4718_v2  ;;  %2473 = vmatpush.bf16.msra.mxu1 %v4782_v22 }
 0x3fd   : > { %2486 = vmatpush.bf16.msra.mxu0 %v4846_v51  ;;  %2501 = vmatpush.bf16.msra.mxu2 %v4894_v4 }
 0x400   : > { %2461 = vmatpush.bf16.msra.mxu3 %v4710_v55  ;;  %2474 = vmatpush.bf16.msra.mxu1 %v4774_v38 }
 0x401   : > { %2487 = vmatpush.bf16.msra.mxu0 %v4838_v49 }
 0x404   : > { %2462 = vmatpush.bf16.msra.mxu3 %v4702_v13  ;;  %2475 = vmatpush.bf16.msra.mxu1 %v4766_v6 }
 0x405   : > { %2488 = vmatpush.bf16.msra.mxu0 %v4830_v0 }
 0x407   : > { %2463 = vmatmul.bf16.vlgmr.msra.gmra.mxu3 %v7572_v35  ;;  %2476 = vmatmul.bf16.vlgmr.msra.gmra.mxu1 %v7574_v62 }
 0x408   : > { %2489 = vmatmul.bf16.vlgmr.msra.gmra.mxu0 %v7576_v3  ;;  %4936 = vmatmul.msk.bf16.vlgmr.msra.gmra.mxu2 %vm766_vm2, %v1772_v33 }
 0x41b   : > { %v2334_v39 = vpop.f32.mrf.mxu0 }
 0x421   : > { %v2347_v25 = vpop.f32.mrf.mxu2 }
 0x422   : > { %v2348_v14 = vadd.f32 %v2347_v25, %v2334_v39 }
 0x423   : > { %v2336_v7 = vpop.f32.mrf.mxu0 }
 0x429   : > { %v2349_v52 = vpop.f32.mrf.mxu2 }
 0x463   : > { %v2373_v9 = vpop.f32.mrf.mxu1 }
 0x464   : > { %v2386_v1 = vpop.f32.mrf.mxu0 }
 0x469   : > { %v2360_v27 = vpop.f32.mrf.mxu3 }
 0x46a   : > { %v2399_v58 = vpop.f32.mrf.mxu2  ;;  %v2361_v15 = vadd.f32 %v2360_v27, %v2348_v14 }
 0x46b   : > { %v2375_v59 = vpop.f32.mrf.mxu1 }
 0x46c   : > { %v2388_v19 = vpop.f32.mrf.mxu0  ;;  %v2374_v18 = vadd.f32 %v2373_v9, %v2361_v15 }
 0x46e   : > { %v2387_v33 = vadd.f32 %v2386_v1, %v2374_v18 }
 0x470   : > { %v2400_v54 = vadd.f32 %v2399_v58, %v2387_v33 }
 0x471   : > { %v2362_v44 = vpop.f32.mrf.mxu3 }
 0x472   : > { %v2401_v29 = vpop.f32.mrf.mxu2 }
 0x473   : > { %v2425_v35 = vpop.f32.mrf.mxu1 }
 0x474   : > { %v2438_v17 = vpop.f32.mrf.mxu0 }
 0x475   : > { %v2439_v34 = vadd.f32 %v2438_v17, %v2425_v35 }
 0x479   : > { %v2412_v62 = vpop.f32.mrf.mxu3 }
 0x47a   : > { %v2451_v42 = vpop.f32.mrf.mxu2  ;;  %v2413_v43 = vadd.f32 %v2412_v62, %v2400_v54 }
 0x47b   : > { %v2427_v3 = vpop.f32.mrf.mxu1  ;;  %v2452_v53 = vadd.f32 %v2451_v42, %v2439_v34  ;;  %v586_v42 = vld [vmem:[%s7901_s5 + $0x8] sm:$0xff] }
 0x47c   : > { %v2440_v8 = vpop.f32.mrf.mxu0 }
 0x481   : > { %v2414_v40 = vpop.f32.mrf.mxu3 }
 0x482   : > { %v2453_v26 = vpop.f32.mrf.mxu2 }
 0x484   : > { %v2477_v61 = vpop.f32.mrf.mxu1 }
 0x485   : > { %v2490_v12 = vpop.f32.mrf.mxu0 }
 0x48a   : > { %v2464_v46 = vpop.f32.mrf.mxu3 }
 0x48b   : > { %v2465_v10 = vadd.f32 %v2464_v46, %v2452_v53  ;;  %v2503_v36 = vpop.f32.mrf.mxu2 }
 0x48c   : > { %v2479_v5 = vpop.f32.mrf.mxu1 }
 0x48d   : > { %v2478_v16 = vadd.f32 %v2477_v61, %v2465_v10  ;;  %v2492_v48 = vpop.f32.mrf.mxu0 }
 0x48f   : > { %v2491_v41 = vadd.f32 %v2490_v12, %v2478_v16 }
 0x491   : > { %v2504_v21 = vadd.f32 %v2503_v36, %v2491_v41 }
 0x492   : > { %v2466_v30 = vpop.f32.mrf.mxu3 }
 0x493   : > { %v2507_v32 = vpack.c.bf16 %v2504_v21, %v2413_v43  ;;  %v2505_v50 = vpop.f32.mrf.mxu2 }
 0x495   : > { %v2509_v2 = vunpack.c.l.b16 %v2507_v32  ;;  %v2510_v22 = vunpack.c.h.b16 %v2507_v32 }
 0x497   : > { %v7594_v60 = vpack.c.b16 %v2509_v2, %v2509_v2  ;;  %v7596_v51 = vpack.c.b16 %v2510_v22, %v2510_v22 }
 0x499   : > { %2553 = vrot.lane.b32.xlu0 %v7596_v51, %s6121_s14  ;;  %2539 = vrot.lane.b32.xlu1 %v7594_v60, %s6122_s19 }
 0x49a   : > { %2551 = vrot.lane.b32.xlu2 %v7594_v60, %s6121_s14  ;;  %s6127_s14 = smov 108  }
 0x4a1   : > { %2545 = vrot.lane.b32.xlu0 %v7594_v60, %s6123_s3  ;;  %2547 = vrot.lane.b32.xlu1 %v7596_v51, %s6123_s3  ;;  %s465_s3 = sand.u32 1, %s6086_s26  }
 0x4a2   : > { %2541 = vrot.lane.b32.xlu2 %v7596_v51, %s6122_s19 }
 0x4a9   : > { %2535 = vrot.lane.b32.xlu0 %v7596_v51, %s6124_s23  ;;  %2658 = vrot.lane.b32.xlu1 %v7594_v60, %s6125_s15 }
 0x4aa   : > { %2533 = vrot.lane.b32.xlu2 %v7594_v60, %s6124_s23 }
 0x4b1   : > { %2518 = vrot.lane.b32.xlu0 %v7594_v60, %s6107_s16  ;;  %2520 = vrot.lane.b32.xlu1 %v7596_v51, %s6107_s16  ;;  %s6126_s16 = smov 80  }
 0x4b2   : > { %2660 = vrot.lane.b32.xlu2 %v7596_v51, %s6125_s15  ;;  %s6044_s15 = scalar_lea.hbm %s7909_s13, 2 }
 0x4b9   : > { %2525 = vrot.lane.b32.xlu0 %v7596_v51, %s8017_s21  ;;  %2513 = vrot.lane.b32.xlu1 %v7594_v60, %s6109_s22 }
 0x4ba   : > { %2523 = vrot.lane.b32.xlu2 %v7594_v60, %s8017_s21  ;;  %s4406_s21 = scalar_lea.hbm %s7909_s13, %s6220_s29 }
 0x4c1   : > { %2583 = vrot.lane.b32.xlu0 %v7594_v60, %s6117_s17  ;;  %2585 = vrot.lane.b32.xlu1 %v7596_v51, %s6117_s17  ;;  %s8019_s17 = smov 95  }
 0x4c2   : > { %2515 = vrot.lane.b32.xlu2 %v7596_v51, %s6109_s22 }
 0x4c9   : > { %2590 = vrot.lane.b32.xlu0 %v7596_v51, %s6126_s16  ;;  %2573 = vrot.lane.b32.xlu1 %v7594_v60, %s6104_s24 }
 0x4ca   : > { %2588 = vrot.lane.b32.xlu2 %v7594_v60, %s6126_s16 }
 0x4d1   : > { %2578 = vrot.lane.b32.xlu0 %v7594_v60, %s8018_s27  ;;  %2580 = vrot.lane.b32.xlu1 %v7596_v51, %s8018_s27 }
 0x4d2   : > { %2575 = vrot.lane.b32.xlu2 %v7596_v51, %s6104_s24  ;;  %s6128_s24 = smov 79  }
 0x4d9   : > { %2565 = vrot.lane.b32.xlu0 %v7596_v51, %s6105_s30  ;;  %2568 = vrot.lane.b32.xlu1 %v7594_v60, %s8019_s17 }
 0x4da   : > { %2563 = vrot.lane.b32.xlu2 %v7594_v60, %s6105_s30 }
 0x4e1   : > { %2557 = vrot.lane.b32.xlu0 %v7594_v60, %s6127_s14  ;;  %2559 = vrot.lane.b32.xlu1 %v7596_v51, %s6127_s14 }
 0x4e2   : > { %2570 = vrot.lane.b32.xlu2 %v7596_v51, %s8019_s17  ;;  %s466_s17 = scalar_lea.vmem [#allocation7], %s465_s3 }
 0x4e3   : > { %s4408_s14 = sshll.u32 %s466_s17, 4  ;;  %s4409_s14 = int_to_ptr.vmem [resolvable:$true] %s4408_s14 }
 0x4e9   : > { %2530 = vrot.lane.b32.xlu0 %v7596_v51, %s6118_s20 }
 0x4ea   : > { %2528 = vrot.lane.b32.xlu2 %v7594_v60, %s6118_s20  ;;  %s4398_s20 = scalar_lea.sflag [#allocation4], %s465_s3 }
 0x4f4   : > { %v2552_v56 = vpop.permute.xlu2 %2551 }
 0x4fc   : > { %v2542_v20 = vpop.permute.xlu2 %2541 }
 0x504   : > { %v2534_v57 = vpop.permute.xlu2 %2533 }
 0x50b   : > { %v7650_v4 = vpop.permute.xlu0 %2553  ;;  %v2540_v45 = vpop.permute.xlu1 %2539 }
 0x50c   : > { %2694 = vrot.lane.b32.xlu2 %v7650_v4, %s6128_s24  ;;  %v7655_v23 = vsel %vm2555_vm14, %v2552_v56, %v7650_v4  ;;  %v2661_v55 = vpop.permute.xlu2 %2660  ;;  %v2544_v49 = vsel %vm2543_vm15, %v2540_v45, %v2542_v20  ;;  %v4939_v45 = vld [vmem:[%s7900_s4] sm:$0xf] }
 0x50d   : > { %2692 = vrot.lane.b32.xlu1 %v7655_v23, %s6128_s24 }
 0x513   : > { %v2546_v38 = vpop.permute.xlu0 %2545  ;;  %v2548_v28 = vpop.permute.xlu1 %2547 }
 0x514   : > { %v2550_v31 = vsel %vm2549_vm4, %v2546_v38, %v2548_v28  ;;  %v7660_v47 = vsel %vm990_vm3, %v2542_v20, %v2548_v28  ;;  %v2524_v24 = vpop.permute.xlu2 %2523 }
 0x515   : > { %2690 = vrot.lane.b32.xlu1 %v7660_v47, %s6128_s24  ;;  %v7665_v37 = vsel %vm990_vm3, %v2544_v49, %v2550_v31 }
 0x516   : > { %2688 = vrot.lane.b32.xlu0 %v7665_v37, %s6128_s24 }
 0x51b   : > { %v7669_v63 = vpop.permute.xlu0 %2535  ;;  %v2659_v13 = vpop.permute.xlu1 %2658 }
 0x51c   : > { %v7673_v6 = vsel %vm2537_vm0, %v2534_v57, %v7669_v63  ;;  %v2663_v0 = vsel %vm2662_vm10, %v2659_v13, %v2661_v55  ;;  %v2667_v39 = vsel %vm990_vm3, %v2661_v55, %v7669_v63  ;;  %v2516_v14 = vpop.permute.xlu2 %2515 }
 0x51d   : > { %v2665_v25 = vsel %vm990_vm3, %v2663_v0, %v7673_v6  ;;  %v2600_v3 = vsel %vm990_vm3, %v7596_v51, %v2516_v14 }
 0x51e   : > { %2686 = vrot.lane.b32.xlu0 %v2667_v39, %s6128_s24  ;;  %2684 = vrot.lane.b32.xlu2 %v2665_v25, %s6128_s24 }
 0x523   : > { %v2519_v7 = vpop.permute.xlu0 %2518  ;;  %v2521_v52 = vpop.permute.xlu1 %2520 }
 0x524   : > { %v2522_v27 = vsel %vm670_vm7, %v2519_v7, %v2521_v52  ;;  %v2589_v58 = vpop.permute.xlu2 %2588  ;;  %vm2592_vm7 = vcmask 654336  }
 0x52b   : > { %v2526_v9 = vpop.permute.xlu0 %2525  ;;  %v2514_v1 = vpop.permute.xlu1 %2513 }
 0x52c   : > { %v2527_v59 = vsel %vm8020_vm9, %v2524_v24, %v2526_v9  ;;  %v2608_v19 = vsel %vm990_vm3, %v2521_v52, %v2526_v9  ;;  %v2517_v44 = vsel %vm646_vm11, %v2514_v1, %v2516_v14  ;;  %v2576_v8 = vpop.permute.xlu2 %2575  ;;  %v5670_v52 = vld [vmem:[%s7900_s4 + $0x4] sm:$0xf]  ;;  %v4941_v9 = vld [vmem:[%s7900_s4 + $0x8] sm:$0xf0] }
 0x52d   : > { %2682 = vrot.lane.b32.xlu2 %v2608_v19, %s6128_s24  ;;  %v2604_v29 = vsel %vm990_vm3, %v2522_v27, %v2527_v59  ;;  %v2596_v35 = vsel %vm990_vm3, %v7594_v60, %v2517_v44 }
 0x52e   : > { %2680 = vrot.lane.b32.xlu1 %v2604_v29, %s6128_s24  ;;  %2676 = vrot.lane.b32.xlu0 %v2596_v35, %s6128_s24 }
 0x533   : > { %v2584_v17 = vpop.permute.xlu0 %2583  ;;  %v2586_v62 = vpop.permute.xlu1 %2585 }
 0x534   : > { %v2587_v15 = vsel %vm8021_vm8, %v2584_v17, %v2586_v62  ;;  %v2564_v34 = vpop.permute.xlu2 %2563 }
 0x536   : > { %2678 = vrot.lane.b32.xlu1 %v2600_v3, %s6128_s24  ;;  %2717 = vperm.xlu0 %5917, %v586_v42   ;;  %s4410_s24 = sshll.u32 %s4406_s21, 4  ;;  %s4411_s24 = int_to_ptr.hbm [resolvable:$true] %s4410_s24 }
 0x53b   : > { %v2591_v40 = vpop.permute.xlu0 %2590  ;;  %v2574_v26 = vpop.permute.xlu1 %2573 }
 0x53c   : > { %v2593_v61 = vsel %vm2592_vm7, %v2589_v58, %v2591_v40  ;;  %v2656_v12 = vsel %vm990_vm3, %v2586_v62, %v2591_v40  ;;  %v2577_v33 = vsel %vm790_vm1, %v2574_v26, %v2576_v8  ;;  %v2571_v16 = vpop.permute.xlu2 %2570  ;;  %vm2561_vm1 = vcmask 883712  }
 0x53d   : > { %2766 = vmatpush.bf16.msrb.mxu2 %v2656_v12  ;;  %v2652_v18 = vsel %vm990_vm3, %v2587_v15, %v2593_v61  ;;  %v4944_v58 = vor.u32 %v5670_v52, %v4941_v9  ;;  %v5702_v52 = vld [vmem:[#allocation5 + $0xa8] sm:$0xff] }
 0x53e   : > { %2738 = vmatpush.bf16.msrb.mxu3 %v2652_v18  ;;  %v5710_v9 = vld [vmem:[#allocation5 + $0xe8] sm:$0xff] }
 0x543   : > { %v2579_v53 = vpop.permute.xlu0 %2578  ;;  %v2581_v46 = vpop.permute.xlu1 %2580 }
 0x544   : > { %v2582_v10 = vsel %vm8022_vm12, %v2579_v53, %v2581_v46  ;;  %v2648_v36 = vsel %vm990_vm3, %v2576_v8, %v2581_v46  ;;  %v2529_v51 = vpop.permute.xlu2 %2528 }
 0x545   : > { %2767 = vmatpush.bf16.msrb.mxu2 %v2648_v36  ;;  %v2644_v5 = vsel %vm990_vm3, %v2577_v33, %v2582_v10 }
 0x546   : > { %2739 = vmatpush.bf16.msrb.mxu3 %v2644_v5 }
 0x54b   : > { %v2566_v48 = vpop.permute.xlu0 %2565  ;;  %v2569_v54 = vpop.permute.xlu1 %2568 }
 0x54c   : > { %v2567_v41 = vsel %vm742_vm5, %v2564_v34, %v2566_v48  ;;  %v2572_v43 = vsel %vm766_vm2, %v2569_v54, %v2571_v16  ;;  %v2640_v21 = vsel %vm990_vm3, %v2566_v48, %v2571_v16  ;;  %vm2696_vm2 = vcmask 646144   ;;  %v5679_v54 = vld [vmem:[%s7902_s6 + $0x38] sm:$0xff] }
 0x54d   : > { %2768 = vmatpush.bf16.msrb.mxu2 %v2640_v21  ;;  %v2636_v30 = vsel %vm990_vm3, %v2567_v41, %v2572_v43  ;;  %v5678_v41 = vld [vmem:[%s7902_s6 + $0x30] sm:$0xff] }
 0x54e   : > { %2740 = vmatpush.bf16.msrb.mxu3 %v2636_v30 }
 0x553   : > { %v2558_v32 = vpop.permute.xlu0 %2557  ;;  %v2560_v50 = vpop.permute.xlu1 %2559 }
 0x554   : > { %v2562_v2 = vsel %vm2561_vm1, %v2558_v32, %v2560_v50  ;;  %v2632_v22 = vsel %vm990_vm3, %v7650_v4, %v2560_v50 }
 0x555   : > { %2769 = vmatpush.bf16.msrb.mxu2 %v2632_v22  ;;  %v2628_v60 = vsel %vm990_vm3, %v7655_v23, %v2562_v2  ;;  %v5671_v23 = vld [vmem:[%s7900_s4 + $0x4] sm:$0xf0] }
 0x556   : > { %2741 = vmatpush.bf16.msrb.mxu3 %v2628_v60  ;;  %v4940_v55 = vor.u32 %v5671_v23, %v4939_v45  ;;  %v5677_v23 = vld [vmem:[%s7902_s6 + $0x28] sm:$0xff] }
 0x559   : > { %2770 = vmatpush.bf16.msrb.mxu2 %v7660_v47 }
 0x55a   : > { %2742 = vmatpush.bf16.msrb.mxu3 %v7665_v37 }
 0x55b   : > { %v2531_v56 = vpop.permute.xlu0 %2530 }
 0x55c   : > { %v2532_v20 = vsel %vm718_vm13, %v2529_v51, %v2531_v56  ;;  %v2616_v57 = vsel %vm990_vm3, %v2531_v56, %v7669_v63 }
 0x55d   : > { %2771 = vmatpush.bf16.msrb.mxu2 %v2616_v57  ;;  %v2612_v4 = vsel %vm990_vm3, %v2532_v20, %v7673_v6  ;;  %v585_v6 = vld [vmem:[%s7901_s5] sm:$0xff] }
 0x55e   : > { %2743 = vmatpush.bf16.msrb.mxu3 %v2612_v4  ;;  %2712 = vperm.xlu2 %5943, %v585_v6   ;;  %v5712_v6 = vld [vmem:[#allocation5 + $0xf8] sm:$0xff] }
 0x561   : > { %2772 = vmatpush.bf16.msrb.mxu2 %v2608_v19 }
 0x562   : > { %2744 = vmatpush.bf16.msrb.mxu3 %v2604_v29 }
 0x565   : > { %2773 = vmatpush.bf16.msrb.mxu2 %v2600_v3 }
 0x566   : > { %2745 = vmatpush.bf16.msrb.mxu3 %v2596_v35  ;;  %v2695_v38 = vpop.permute.xlu2 %2694 }
 0x567   : > { %v2736_v28 = vsel %vm990_vm3, %v2695_v38, 0 }
 0x568   : > { %2774 = vmatmul.bf16.vlgmr.msrb.gmra.mxu2 %v4940_v55  ;;  %2783 = vmatpush.bf16.msrb.mxu0 %v2736_v28  ;;  %v5674_v28 = vld [vmem:[%s7902_s6 + $0x10] sm:$0xff] }
 0x569   : > { %2746 = vmatmul.bf16.vlgmr.msrb.gmra.mxu3 %v4940_v55  ;;  %v5676_v55 = vld [vmem:[%s7902_s6 + $0x20] sm:$0xff] }
 0x56a   : > { %2905 = vmatpush.bf16.msra.mxu3 %v5679_v54  ;;  %v5728_v54 = vld [vmem:[#allocation5 + $0x178] sm:$0xff] }
 0x56e   : > { %2906 = vmatpush.bf16.msra.mxu3 %v5678_v41 }
 0x572   : > { %2907 = vmatpush.bf16.msra.mxu3 %v5677_v23  ;;  %v5734_v23 = vld [vmem:[#allocation5 + $0x1a8] sm:$0xff] }
 0x576   : > { %2908 = vmatpush.bf16.msra.mxu3 %v5676_v55  ;;  %v5725_v55 = vld [vmem:[#allocation5 + $0x160] sm:$0xff] }
 0x578   : > { %v2685_v13 = vpop.permute.xlu2 %2684 }
 0x57f   : > { %v2693_v49 = vpop.permute.xlu1 %2692 }
 0x580   : > { %v2701_v31 = vsel %vm2696_vm2, %v2693_v49, %v2695_v38  ;;  %v5675_v38 = vld [vmem:[%s7902_s6 + $0x18] sm:$0xff]  ;;  %v5673_v49 = vld [vmem:[%s7902_s6 + $0x8] sm:$0xff] }
 0x581   : > { %v2733_v47 = vsel %vm990_vm3, %v2701_v31, 0  ;;  %2909 = vmatpush.bf16.msra.mxu3 %v5675_v38  ;;  %v5680_v31 = vld [vmem:[%s7902_s6 + $0x40] sm:$0xff]  ;;  %vm2898_vm3 = vcmask 121856   ;;  %v5742_v38 = vld [vmem:[#allocation5 + $0x1e8] sm:$0xff] }
 0x582   : > { %2755 = vmatpush.bf16.msrb.mxu1 %v2733_v47  ;;  %v2903_v47 = vand.u32 %v5680_v31, %v7545_v11  ;;  %v5686_v11 = vld [vmem:[#allocation5 + $0x28] sm:$0xff]  ;;  %v5724_v31 = vld [vmem:[#allocation5 + $0x158] sm:$0xff] }
 0x584   : > { %2926 = vmatpush.bf16.msra.mxu2 %v2903_v47  ;;  %v5741_v47 = vld [vmem:[#allocation5 + $0x1e0] sm:$0xff] }
 0x585   : > { %2910 = vmatpush.bf16.msra.mxu3 %v5674_v28  ;;  %v5717_v28 = vld [vmem:[#allocation5 + $0x120] sm:$0xff] }
 0x587   : > { %v2691_v37 = vpop.permute.xlu1 %2690  ;;  %v2683_v25 = vpop.permute.xlu2 %2682 }
 0x588   : > { %v2689_v24 = vpop.permute.xlu0 %2688  ;;  %2784 = vmatpush.bf16.msrb.mxu0 %v2691_v37 }
 0x589   : > { %v2700_v63 = vsel %vm2696_vm2, %v2689_v24, %v2691_v37  ;;  %2911 = vmatpush.bf16.msra.mxu3 %v5673_v49  ;;  %v5672_v37 = vld [vmem:[%s7902_s6] sm:$0xff]  ;;  %v5688_v24 = vld [vmem:[#allocation5 + $0x38] sm:$0xff] }
 0x58a   : > { %2756 = vmatpush.bf16.msrb.mxu1 %v2700_v63  ;;  %v5696_v63 = vld [vmem:[#allocation5 + $0x78] sm:$0xff]  ;;  %v5733_v49 = vld [vmem:[#allocation5 + $0x1a0] sm:$0xff] }
 0x58d   : > { %2912 = vmatpush.bf16.msra.mxu3 %v5672_v37  ;;  %v5716_v37 = vld [vmem:[#allocation5 + $0x118] sm:$0xff] }
 0x590   : > { %v2687_v0 = vpop.permute.xlu0 %2686 }
 0x591   : > { %2785 = vmatpush.bf16.msrb.mxu0 %v2687_v0  ;;  %v2699_v39 = vsel %vm2696_vm2, %v2685_v13, %v2687_v0  ;;  %v5704_v13 = vld [vmem:[#allocation5 + $0xb8] sm:$0xff]  ;;  %v5687_v0 = vld [vmem:[#allocation5 + $0x30] sm:$0xff]  ;;  %3245 = vmatpush.bf16.msrb.mxu3 %v5712_v6 }
 0x592   : > { %2757 = vmatpush.bf16.msrb.mxu1 %v2699_v39  ;;  %v5695_v39 = vld [vmem:[#allocation5 + $0x70] sm:$0xff]  ;;  %3164 = vmatpush.bf16.msrb.mxu2 %v5704_v13  ;;  %v5722_v13 = vld [vmem:[#allocation5 + $0x148] sm:$0xff]  ;;  %v5740_v6 = vld [vmem:[#allocation5 + $0x1d8] sm:$0xff] }
 0x595   : > { %2786 = vmatpush.bf16.msrb.mxu0 %v2683_v25 }
 0x5a0   : > { %v2681_v14 = vpop.permute.xlu1 %2680  ;;  %v2677_v1 = vpop.permute.xlu0 %2676 }
 0x5a1   : > { %v2698_v7 = vsel %vm2696_vm2, %v2681_v14, %v2683_v25  ;;  %v5703_v25 = vld [vmem:[#allocation5 + $0xb0] sm:$0xff] }
 0x5a2   : > { %2758 = vmatpush.bf16.msrb.mxu1 %v2698_v7  ;;  %v5711_v14 = vld [vmem:[#allocation5 + $0xf0] sm:$0xff]  ;;  %v5694_v7 = vld [vmem:[#allocation5 + $0x68] sm:$0xff]  ;;  %3165 = vmatpush.bf16.msrb.mxu2 %v5703_v25  ;;  %v5721_v25 = vld [vmem:[#allocation5 + $0x140] sm:$0xff] }
 0x5a3   : > { %3246 = vmatpush.bf16.msrb.mxu3 %v5711_v14  ;;  %v5739_v14 = vld [vmem:[#allocation5 + $0x1d0] sm:$0xff] }
 0x5a6   : > { %3166 = vmatpush.bf16.msrb.mxu2 %v5702_v52  ;;  %v5738_v52 = vld [vmem:[#allocation5 + $0x1c8] sm:$0xff] }
 0x5a7   : > { %3247 = vmatpush.bf16.msrb.mxu3 %v5710_v9  ;;  %v5713_v9 = vld [vmem:[#allocation5 + $0x100] sm:$0xff] }
 0x5a8   : > { %v2679_v27 = vpop.permute.xlu1 %2678  ;;  %v2718_v12 = vpop.permute.xlu0 %2717 }
 0x5a9   : > { %2787 = vmatpush.bf16.msrb.mxu0 %v2679_v27  ;;  %v2697_v59 = vsel %vm2696_vm2, %v2677_v1, %v2679_v27  ;;  %v5685_v1 = vld [vmem:[#allocation5 + $0x20] sm:$0xff] }
 0x5aa   : > { %2759 = vmatpush.bf16.msrb.mxu1 %v2697_v59  ;;  %v5693_v27 = vld [vmem:[#allocation5 + $0x60] sm:$0xff] }
 0x5ab   : > { %v5709_v59 = vld [vmem:[#allocation5 + $0xe0] sm:$0xff] }
 0x5ac   : > { %4946 = vmatmul.msk.bf16.vlgmr.msrb.gmra.mxu0 %vm1468_vm6, %v4944_v58  ;;  %3248 = vmatpush.bf16.msrb.mxu3 %v5709_v59 }
 0x5ad   : > { %4945 = vmatmul.msk.bf16.vlgmr.msrb.gmra.mxu1 %vm1468_vm6, %v4944_v58  ;;  %3023 = vmatpush.bf16.msra.mxu0 %v5696_v63  ;;  %v5701_v58 = vld [vmem:[#allocation5 + $0xa0] sm:$0xff]  ;;  %v5723_v63 = vld [vmem:[#allocation5 + $0x150] sm:$0xff] }
 0x5ae   : > { %3084 = vmatpush.bf16.msra.mxu1 %v5688_v24  ;;  %3167 = vmatpush.bf16.msrb.mxu2 %v5701_v58  ;;  %v5732_v24 = vld [vmem:[#allocation5 + $0x198] sm:$0xff] }
 0x5b1   : > { %3024 = vmatpush.bf16.msra.mxu0 %v5695_v39  ;;  %v5731_v39 = vld [vmem:[#allocation5 + $0x190] sm:$0xff] }
 0x5b2   : > { %3085 = vmatpush.bf16.msra.mxu1 %v5687_v0  ;;  %v5715_v0 = vld [vmem:[#allocation5 + $0x110] sm:$0xff] }
 0x5b5   : > { %3025 = vmatpush.bf16.msra.mxu0 %v5694_v7  ;;  %v5730_v7 = vld [vmem:[#allocation5 + $0x188] sm:$0xff] }
 0x5b6   : > { %3086 = vmatpush.bf16.msra.mxu1 %v5686_v11  ;;  %v5714_v11 = vld [vmem:[#allocation5 + $0x108] sm:$0xff] }
 0x5b8   : > { %v2713_v44 = vpop.permute.xlu2 %2712 }
 0x5b9   : > { %3026 = vmatpush.bf16.msra.mxu0 %v5693_v27  ;;  %v5737_v27 = vld [vmem:[#allocation5 + $0x1c0] sm:$0xff] }
 0x5ba   : > { %3087 = vmatpush.bf16.msra.mxu1 %v5685_v1  ;;  %v5729_v1 = vld [vmem:[#allocation5 + $0x180] sm:$0xff] }
 0x5eb   : > { %v2775_v19 = vpop.f32.mrf.mxu2 }
 0x5ec   : > { %v2747_v29 = vpop.f32.mrf.mxu3  ;;  %v2776_v35 = vadd.f32 %v2775_v19, %v2713_v44  ;;  %v5684_v19 = vld [vmem:[#allocation5 + $0x18] sm:$0xff] }
 0x5ed   : > { %v2748_v17 = vadd.f32 %v2747_v29, %v2713_v44  ;;  %v5692_v44 = vld [vmem:[#allocation5 + $0x58] sm:$0xff]  ;;  %3088 = vmatpush.bf16.msra.mxu1 %v5684_v19 }
 0x5ee   : > { %v5700_v29 = vld [vmem:[#allocation5 + $0x98] sm:$0xff]  ;;  %3027 = vmatpush.bf16.msra.mxu0 %v5692_v44 }
 0x5ef   : > { %3168 = vmatpush.bf16.msrb.mxu2 %v5700_v29  ;;  %v5760_v44 = vld [vmem:[#allocation5 + $0x278] sm:$0xff] }
 0x5f3   : > { %v2777_v26 = vpop.f32.mrf.mxu2 }
 0x5f4   : > { %v2749_v61 = vpop.f32.mrf.mxu3  ;;  %v2778_v34 = vadd.f32 %v2777_v26, %v2718_v12 }
 0x5f5   : > { %v2750_v53 = vadd.f32 %v2749_v61, %v2718_v12  ;;  %v5690_v61 = vld [vmem:[#allocation5 + $0x48] sm:$0xff] }
 0x5f6   : > { %v5698_v12 = vld [vmem:[#allocation5 + $0x88] sm:$0xff] }
 0x629   : > { %v2789_v62 = vpop.f32.mrf.mxu0 }
 0x62a   : > { %v2790_v42 = vadd.f32 %v2789_v62, %v2776_v35  ;;  %v2761_v3 = vpop.f32.mrf.mxu1  ;;  %v5708_v35 = vld [vmem:[#allocation5 + $0xd8] sm:$0xff]  ;;  %v5683_v62 = vld [vmem:[#allocation5 + $0x10] sm:$0xff] }
 0x62b   : > { %v2762_v8 = vadd.f32 %v2761_v3, %v2748_v17  ;;  %3249 = vmatpush.bf16.msrb.mxu3 %v5708_v35  ;;  %v5699_v3 = vld [vmem:[#allocation5 + $0x90] sm:$0xff]  ;;  %3089 = vmatpush.bf16.msra.mxu1 %v5683_v62 }
 0x62c   : > { %v2795_v40 = vmax.f32 %v2790_v42, 0.0  ;;  %v5691_v42 = vld [vmem:[#allocation5 + $0x50] sm:$0xff]  ;;  %3169 = vmatpush.bf16.msrb.mxu2 %v5699_v3  ;;  %v5768_v3 = vld [vmem:[#allocation5 + $0x2b8] sm:$0xff] }
 0x62d   : > { %v2794_v15 = vmax.f32 %v2762_v8, 0.0  ;;  %v5707_v8 = vld [vmem:[#allocation5 + $0xd0] sm:$0xff]  ;;  %3028 = vmatpush.bf16.msra.mxu0 %v5691_v42  ;;  %v5752_v42 = vld [vmem:[#allocation5 + $0x238] sm:$0xff] }
 0x62f   : > { %v5944_v18 = vpack.i.bf16 %v2795_v40, %v2794_v15  ;;  %3250 = vmatpush.bf16.msrb.mxu3 %v5707_v8 }
 0x630   : > { %3170 = vmatpush.bf16.msrb.mxu2 %v5698_v12  ;;  %v5751_v12 = vld [vmem:[#allocation5 + $0x230] sm:$0xff] }
 0x631   : > { %v2791_v46 = vpop.f32.mrf.mxu0  ;;  %5945 = vrot.lane.b32.xlu1 %v5944_v18, %s6109_s22  ;;  %v5706_v18 = vld [vmem:[#allocation5 + $0xc8] sm:$0xff]  ;;  %3029 = vmatpush.bf16.msra.mxu0 %v5690_v61 }
 0x632   : > { %v2792_v33 = vadd.f32 %v2791_v46, %v2778_v34  ;;  %v2763_v10 = vpop.f32.mrf.mxu1 }
 0x633   : > { %v2764_v36 = vadd.f32 %v2763_v10, %v2750_v53  ;;  %v5681_v10 = vld [vmem:[#allocation5] sm:$0xff]  ;;  %3251 = vmatpush.bf16.msrb.mxu3 %v5706_v18  ;;  %v5767_v18 = vld [vmem:[#allocation5 + $0x2b0] sm:$0xff] }
 0x634   : > { %v2797_v5 = vmax.f32 %v2792_v33, 0.0 }
 0x635   : > { %v2796_v16 = vmax.f32 %v2764_v36, 0.0  ;;  %v5689_v36 = vld [vmem:[#allocation5 + $0x40] sm:$0xff] }
 0x636   : > { %3030 = vmatpush.bf16.msra.mxu0 %v5689_v36  ;;  %v5766_v36 = vld [vmem:[#allocation5 + $0x2a8] sm:$0xff] }
 0x637   : > { %v5949_v48 = vpack.i.bf16 %v2797_v5, %v2796_v16 }
 0x639   : > { %5950 = vrot.lane.b32.xlu2 %v5949_v48, %s6109_s22 }
 0x693   : > { %v5951_v43 = vpop.permute.xlu2 %5950 }
 0x694   : > { %v5953_v21 = vunpack.i.h.bf16 %v5951_v43  ;;  %v5952_v30 = vunpack.i.l.bf16 %v5951_v43 }
 0x696   : > { %v7751_v32 = vmax.f32 %v2797_v5, %v5953_v21  ;;  %v2811_v50 = vsel %vm646_vm11, %v5952_v30, %v5953_v21  ;;  %v5697_v21 = vld [vmem:[#allocation5 + $0x80] sm:$0xff] }
 0x697   : > { %v7754_v2 = vmax.f32 %v2796_v16, %v2811_v50  ;;  %v5720_v50 = vld [vmem:[#allocation5 + $0x138] sm:$0xff]  ;;  %3171 = vmatpush.bf16.msrb.mxu2 %v5697_v21  ;;  %v5755_v21 = vld [vmem:[#allocation5 + $0x250] sm:$0xff] }
 0x698   : > { %3326 = vmatpush.bf16.msrb.mxu0 %v5720_v50 }
 0x699   : > { %v5959_v22 = vpack.i.bf16 %v7751_v32, %v7754_v2 }
 0x69b   : > { %5960 = vrot.lane.b32.xlu1 %v5959_v22, %s6124_s23  ;;  %v5736_v22 = vld [vmem:[#allocation5 + $0x1b8] sm:$0xff] }
 0x6a3   : > { %v5946_v60 = vpop.permute.xlu1 %5945 }
 0x6a4   : > { %v5948_v51 = vunpack.i.h.bf16 %v5946_v60  ;;  %v5947_v56 = vunpack.i.l.bf16 %v5946_v60 }
 0x6a6   : > { %v7759_v20 = vmax.f32 %v2795_v40, %v5948_v51  ;;  %v2810_v57 = vsel %vm646_vm11, %v5947_v56, %v5948_v51  ;;  %v5727_v51 = vld [vmem:[#allocation5 + $0x170] sm:$0xff]  ;;  %v5744_v56 = vld [vmem:[#allocation5 + $0x1f8] sm:$0xff] }
 0x6a7   : > { %v7762_v4 = vmax.f32 %v2794_v15, %v2810_v57  ;;  %v5682_v15 = vld [vmem:[#allocation5 + $0x8] sm:$0xff] }
 0x6a8   : > { %3090 = vmatpush.bf16.msra.mxu1 %v5682_v15  ;;  %v5726_v57 = vld [vmem:[#allocation5 + $0x168] sm:$0xff]  ;;  %v5776_v15 = vld [vmem:[#allocation5 + $0x2f8] sm:$0xff] }
 0x6a9   : > { %v5954_v45 = vpack.i.bf16 %v7759_v20, %v7762_v4 }
 0x6ab   : > { %5955 = vrot.lane.b32.xlu0 %v5954_v45, %s6124_s23  ;;  %v5718_v45 = vld [vmem:[#allocation5 + $0x128] sm:$0xff]  ;;  %s6038_s23 = sshra.s32 %s4411_s24, 4  ;;  %s6039_s23 = int_to_ptr.hbm [resolvable:$true] %s6038_s23 }
 0x6ac   : > { %3091 = vmatpush.bf16.msra.mxu1 %v5681_v10  ;;  %v5750_v10 = vld [vmem:[#allocation5 + $0x228] sm:$0xff]  ;;  %s6040_s30 = scalar_lea.hbm %s6039_s23, 1  ;;  %p6045_p3 = scmp.lt.s32.totalorder %s6039_s23, %s7909_s13 }
 0x6ad   : > { %p6041_p0 = scmp.ne.s32.totalorder %s6039_s23, %s6040_s30  ;;  %p6046_p4 = scmp.lt.s32.totalorder %s6044_s15, %s6040_s30 }
 0x6af   : > { %p6042_p1 = pnand %p6041_p0, %p6237_p5  ;;  %p6047_p7 = por %p6046_p4, %p6045_p3 }
 0x6b0   : > { %3407 = vmatpush.bf16.msrb.mxu1 %v5728_v54 }
 0x6b1   : > { %p6043_p2 = pneg %p6042_p1 }
 0x6b3   : > { %p6048_p8 = pnand %p6047_p7, %p6043_p2 }
 0x6b4   : > { %3408 = vmatpush.bf16.msrb.mxu1 %v5727_v51 }
 0x6b8   : > { %3409 = vmatpush.bf16.msrb.mxu1 %v5726_v57 }
 0x6bc   : > { %3410 = vmatpush.bf16.msrb.mxu1 %v5725_v55  ;;  %v5771_v55 = vld [vmem:[#allocation5 + $0x2d0] sm:$0xff] }
 0x6c0   : > { %3411 = vmatpush.bf16.msrb.mxu1 %v5724_v31  ;;  %v5762_v31 = vld [vmem:[#allocation5 + $0x288] sm:$0xff] }
 0x6c4   : > { %3412 = vmatpush.bf16.msrb.mxu1 %v5723_v63  ;;  %v5745_v63 = vld [vmem:[#allocation5 + $0x200] sm:$0xff] }
 0x6c8   : > { %3413 = vmatpush.bf16.msrb.mxu1 %v5722_v13  ;;  %v5761_v13 = vld [vmem:[#allocation5 + $0x280] sm:$0xff] }
 0x6cc   : > { %3414 = vmatpush.bf16.msrb.mxu1 %v5721_v25  ;;  %v5790_v25 = vld [vmem:[#allocation5 + $0x368] sm:$0xff] }
 0x70d   : > { %v5961_v17 = vpop.permute.xlu1 %5960 }
 0x70e   : > { %v5963_v40 = vunpack.i.h.bf16 %v5961_v17  ;;  %v5962_v26 = vunpack.i.l.bf16 %v5961_v17  ;;  %v5759_v17 = vld [vmem:[#allocation5 + $0x270] sm:$0xff] }
 0x710   : > { %v2834_v53 = vsel %vm2537_vm0, %v5962_v26, %v5963_v40  ;;  %v2842_v5 = vmax.f32 %v7751_v32, %v5963_v40  ;;  %v5705_v32 = vld [vmem:[#allocation5 + $0xc0] sm:$0xff]  ;;  %v5758_v26 = vld [vmem:[#allocation5 + $0x268] sm:$0xff] }
 0x711   : > { %v2841_v41 = vmax.f32 %v7754_v2, %v2834_v53  ;;  %v5719_v2 = vld [vmem:[#allocation5 + $0x130] sm:$0xff]  ;;  %3252 = vmatpush.bf16.msrb.mxu3 %v5705_v32 }
 0x712   : > { %3327 = vmatpush.bf16.msrb.mxu0 %v5719_v2  ;;  %v5775_v53 = vld [vmem:[#allocation5 + $0x2f0] sm:$0xff]  ;;  %v5772_v2 = vld [vmem:[#allocation5 + $0x2d8] sm:$0xff] }
 0x716   : > { %3328 = vmatpush.bf16.msrb.mxu0 %v5718_v45  ;;  %v5763_v45 = vld [vmem:[#allocation5 + $0x290] sm:$0xff] }
 0x71a   : > { %3329 = vmatpush.bf16.msrb.mxu0 %v5717_v28  ;;  %v5792_v28 = vld [vmem:[#allocation5 + $0x378] sm:$0xff] }
 0x71d   : > { %v5956_v34 = vpop.permute.xlu0 %5955 }
 0x71e   : > { %v5958_v46 = vunpack.i.h.bf16 %v5956_v34  ;;  %v5957_v33 = vunpack.i.l.bf16 %v5956_v34  ;;  %3330 = vmatpush.bf16.msrb.mxu0 %v5716_v37  ;;  %v5757_v34 = vld [vmem:[#allocation5 + $0x260] sm:$0xff] }
 0x720   : > { %v2840_v16 = vmax.f32 %v7759_v20, %v5958_v46  ;;  %v2833_v48 = vsel %vm2537_vm0, %v5957_v33, %v5958_v46  ;;  %v5735_v20 = vld [vmem:[#allocation5 + $0x1b0] sm:$0xff] }
 0x721   : > { %v2839_v43 = vmax.f32 %v7762_v4, %v2833_v48  ;;  %v5743_v4 = vld [vmem:[#allocation5 + $0x1f0] sm:$0xff] }
 0x722   : > { %v2844_v30 = vpack.c.bf16 %v2842_v5, %v2840_v16  ;;  %3331 = vmatpush.bf16.msrb.mxu0 %v5715_v0  ;;  %v5756_v5 = vld [vmem:[#allocation5 + $0x258] sm:$0xff]  ;;  %v5774_v16 = vld [vmem:[#allocation5 + $0x2e8] sm:$0xff] }
 0x723   : > { %v2843_v60 = vpack.c.bf16 %v2841_v41, %v2839_v43  ;;  %v5749_v41 = vld [vmem:[#allocation5 + $0x220] sm:$0xff]  ;;  %v5800_v0 = vld [vmem:[#allocation5 + $0x3b8] sm:$0xff] }
 0x724   : > { %4983 = vmatmul.msk.bf16.vlgmr.msra.gmra.mxu2 %vm2898_vm3, %v2844_v30  ;;  %v5765_v43 = vld [vmem:[#allocation5 + $0x2a0] sm:$0xff] }
 0x725   : > { %2913 = vmatmul.bf16.vlgmr.msra.gmra.mxu3 %v2843_v60  ;;  %3488 = vmatpush.bf16.msra.mxu2 %v5736_v22  ;;  %v5773_v30 = vld [vmem:[#allocation5 + $0x2e0] sm:$0xff]  ;;  %v5748_v22 = vld [vmem:[#allocation5 + $0x218] sm:$0xff] }
 0x726   : > { %3569 = vmatpush.bf16.msra.mxu3 %v5744_v56  ;;  %3332 = vmatpush.bf16.msrb.mxu0 %v5714_v11  ;;  %v5764_v60 = vld [vmem:[#allocation5 + $0x298] sm:$0xff]  ;;  %v5754_v56 = vld [vmem:[#allocation5 + $0x248] sm:$0xff]  ;;  %v5783_v11 = vld [vmem:[#allocation5 + $0x330] sm:$0xff] }
 0x729   : > { %3489 = vmatpush.bf16.msra.mxu2 %v5735_v20 }
 0x72a   : > { %3570 = vmatpush.bf16.msra.mxu3 %v5743_v4  ;;  %3333 = vmatpush.bf16.msrb.mxu0 %v5713_v9  ;;  %v5747_v4 = vld [vmem:[#allocation5 + $0x210] sm:$0xff]  ;;  %v5789_v9 = vld [vmem:[#allocation5 + $0x360] sm:$0xff] }
 0x72d   : > { %3490 = vmatpush.bf16.msra.mxu2 %v5734_v23  ;;  %v5753_v23 = vld [vmem:[#allocation5 + $0x240] sm:$0xff] }
 0x72e   : > { %3571 = vmatpush.bf16.msra.mxu3 %v5742_v38 }
 0x731   : > { %3491 = vmatpush.bf16.msra.mxu2 %v5733_v49  ;;  %v5746_v49 = vld [vmem:[#allocation5 + $0x208] sm:$0xff] }
 0x732   : > { %3572 = vmatpush.bf16.msra.mxu3 %v5741_v47  ;;  %v5770_v47 = vld [vmem:[#allocation5 + $0x2c8] sm:$0xff] }
 0x735   : > { %3492 = vmatpush.bf16.msra.mxu2 %v5732_v24  ;;  %v5791_v24 = vld [vmem:[#allocation5 + $0x370] sm:$0xff] }
 0x736   : > { %3573 = vmatpush.bf16.msra.mxu3 %v5740_v6  ;;  %v5784_v6 = vld [vmem:[#allocation5 + $0x338] sm:$0xff] }
 0x739   : > { %3493 = vmatpush.bf16.msra.mxu2 %v5731_v39  ;;  %v5769_v39 = vld [vmem:[#allocation5 + $0x2c0] sm:$0xff] }
 0x73a   : > { %3574 = vmatpush.bf16.msra.mxu3 %v5739_v14  ;;  %v5808_v14 = vld [vmem:[#allocation5 + $0x3f8] sm:$0xff] }
 0x73d   : > { %3494 = vmatpush.bf16.msra.mxu2 %v5730_v7  ;;  %v5799_v7 = vld [vmem:[#allocation5 + $0x3b0] sm:$0xff] }
 0x73e   : > { %3575 = vmatpush.bf16.msra.mxu3 %v5738_v52 }
 0x741   : > { %3495 = vmatpush.bf16.msra.mxu2 %v5729_v1  ;;  %v5807_v1 = vld [vmem:[#allocation5 + $0x3f0] sm:$0xff] }
 0x742   : > { %3576 = vmatpush.bf16.msra.mxu3 %v5737_v27 }
 0x7a7   : > { %v2928_v58 = vpop.f32.mrf.mxu2 }
 0x7a8   : > { %v2914_v59 = vpop.f32.mrf.mxu3 }
 0x7a9   : > { %v2929_v19 = vadd.f32 %v2928_v58, %v2914_v59  ;;  %v5782_v58 = vld [vmem:[#allocation5 + $0x328] sm:$0xff] }
 0x7aa   : > { %v5798_v59 = vld [vmem:[#allocation5 + $0x3a8] sm:$0xff] }
 0x7ab   : > { %v2933_v29 = vpack.c.bf16 %v2929_v19, %v2929_v19  ;;  %v5788_v19 = vld [vmem:[#allocation5 + $0x358] sm:$0xff] }
 0x7ad   : > { %v2969_v35 = vunpack.c.l.b16 %v2933_v29  ;;  %3092 = vmatmul.bf16.vlgmr.msra.gmra.mxu1 %v2933_v29  ;;  %v5781_v29 = vld [vmem:[#allocation5 + $0x320] sm:$0xff] }
 0x7ae   : > { %3734 = vmatpush.bf16.msra.mxu1 %v5760_v44  ;;  %v5806_v44 = vld [vmem:[#allocation5 + $0x3e8] sm:$0xff] }
 0x7af   : > { %v2970_v62 = vpack.c.b16 %v2969_v35, %v2969_v35  ;;  %v2930_v46 = vpop.f32.mrf.mxu2  ;;  %v5797_v35 = vld [vmem:[#allocation5 + $0x3a0] sm:$0xff] }
 0x7b0   : > { %v2916_v33 = vpop.f32.mrf.mxu3 }
 0x7b1   : > { %v2972_v8 = vshrl.u32 %v2970_v62, 16  ;;  %v3114_v40 = vrot.slane %v2970_v62, 1  ;;  %v2931_v48 = vadd.f32 %v2930_v46, %v2916_v33  ;;  %v3276_v32 = vrot.slane %v2970_v62, 2  ;;  %v5777_v33 = vld [vmem:[#allocation5 + $0x300] sm:$0xff] }
 0x7b2   : > { %3735 = vmatpush.bf16.msra.mxu1 %v5759_v17  ;;  %v3438_v51 = vrot.slane %v2970_v62, 3  ;;  %v5787_v17 = vld [vmem:[#allocation5 + $0x350] sm:$0xff]  ;;  %v5805_v62 = vld [vmem:[#allocation5 + $0x3e0] sm:$0xff] }
 0x7b3   : > { %3031 = vmatmul.bf16.vlgmr.msra.gmra.mxu0 %v2972_v8  ;;  %3172 = vmatmul.bf16.vlgmr.msrb.gmra.mxu2 %v3114_v40  ;;  %v3195_v61 = vrot.slane %v2972_v8, 1  ;;  %v3357_v54 = vrot.slane %v2972_v8, 2  ;;  %v2934_v50 = vpack.c.bf16 %v2931_v48, %v2931_v48  ;;  %v3519_v57 = vrot.slane %v2972_v8, 3  ;;  %v5786_v8 = vld [vmem:[#allocation5 + $0x348] sm:$0xff]  ;;  %v5804_v40 = vld [vmem:[#allocation5 + $0x3d8] sm:$0xff] }
 0x7b4   : > { %3648 = vmatpush.bf16.msra.mxu0 %v5752_v42  ;;  %3815 = vmatpush.bf16.msrb.mxu2 %v5768_v3  ;;  %v5780_v42 = vld [vmem:[#allocation5 + $0x318] sm:$0xff] }
 0x7b5   : > { %3253 = vmatmul.bf16.vlgmr.msrb.gmra.mxu3 %v3195_v61  ;;  %v3680_v20 = vunpack.c.l.b16 %v2934_v50  ;;  %v5796_v3 = vld [vmem:[#allocation5 + $0x398] sm:$0xff]  ;;  %v5785_v61 = vld [vmem:[#allocation5 + $0x340] sm:$0xff] }
 0x7b6   : > { %3736 = vmatpush.bf16.msra.mxu1 %v5758_v26  ;;  %3896 = vmatpush.bf16.msrb.mxu3 %v5776_v15  ;;  %v5779_v26 = vld [vmem:[#allocation5 + $0x310] sm:$0xff] }
 0x7b7   : > { %v7795_v38 = vpack.c.b16 %v3680_v20, %v3680_v20  ;;  %v5795_v15 = vld [vmem:[#allocation5 + $0x390] sm:$0xff] }
 0x7b8   : > { %3649 = vmatpush.bf16.msra.mxu0 %v5751_v12  ;;  %3816 = vmatpush.bf16.msrb.mxu2 %v5767_v18  ;;  %v5803_v12 = vld [vmem:[#allocation5 + $0x3d0] sm:$0xff]  ;;  %v5778_v18 = vld [vmem:[#allocation5 + $0x308] sm:$0xff] }
 0x7b9   : > { %v7798_v37 = vshrl.u32 %v7795_v38, 16  ;;  %v3765_v52 = vrot.slane %v7795_v38, 1 }
 0x7ba   : > { %3737 = vmatpush.bf16.msra.mxu1 %v5757_v34  ;;  %3897 = vmatpush.bf16.msrb.mxu3 %v5775_v53  ;;  %v5794_v34 = vld [vmem:[#allocation5 + $0x388] sm:$0xff] }
 0x7bb   : > { %v3846_v27 = vrot.slane %v7798_v37, 1  ;;  %v5802_v53 = vld [vmem:[#allocation5 + $0x3c8] sm:$0xff]  ;;  %v4008_v46 = vrot.slane %v7798_v37, 2  ;;  %v4170_v48 = vrot.slane %v7798_v37, 3 }
 0x7bc   : > { %3650 = vmatpush.bf16.msra.mxu0 %v5750_v10  ;;  %3817 = vmatpush.bf16.msrb.mxu2 %v5766_v36  ;;  %v5793_v10 = vld [vmem:[#allocation5 + $0x380] sm:$0xff] }
 0x7bd   : > { %3415 = vmatmul.bf16.vlgmr.msrb.gmra.mxu1 %v3357_v54  ;;  %v5801_v36 = vld [vmem:[#allocation5 + $0x3c0] sm:$0xff] }
 0x7be   : > { %3738 = vmatpush.bf16.msra.mxu1 %v5756_v5  ;;  %3898 = vmatpush.bf16.msrb.mxu3 %v5774_v16  ;;  %v4089_v5 = vrot.slane %v7795_v38, 3  ;;  %v3927_v16 = vrot.slane %v7795_v38, 2 }
 0x7c0   : > { %3651 = vmatpush.bf16.msra.mxu0 %v5749_v41  ;;  %3818 = vmatpush.bf16.msrb.mxu2 %v5765_v43 }
 0x7c2   : > { %3739 = vmatpush.bf16.msra.mxu1 %v5755_v21  ;;  %3899 = vmatpush.bf16.msrb.mxu3 %v5773_v30 }
 0x7c3   : > { %3334 = vmatmul.bf16.vlgmr.msrb.gmra.mxu0 %v3276_v32  ;;  %3496 = vmatmul.bf16.vlgmr.msra.gmra.mxu2 %v3438_v51 }
 0x7c4   : > { %3652 = vmatpush.bf16.msra.mxu0 %v5748_v22  ;;  %3819 = vmatpush.bf16.msrb.mxu2 %v5764_v60  ;;  %v5816_v60 = vld [vmem:[%s7905_s9 + $0x38] sm:$0xff] }
 0x7c5   : > { %3577 = vmatmul.bf16.vlgmr.msra.gmra.mxu3 %v3519_v57  ;;  %v5814_v57 = vld [vmem:[%s7905_s9 + $0x28] sm:$0xff] }
 0x7c6   : > { %3740 = vmatpush.bf16.msra.mxu1 %v5754_v56  ;;  %3900 = vmatpush.bf16.msrb.mxu3 %v5772_v2  ;;  %v5815_v2 = vld [vmem:[%s7905_s9 + $0x30] sm:$0xff] }
 0x7c8   : > { %3653 = vmatpush.bf16.msra.mxu0 %v5747_v4  ;;  %3820 = vmatpush.bf16.msrb.mxu2 %v5763_v45  ;;  %v5813_v45 = vld [vmem:[%s7905_s9 + $0x20] sm:$0xff] }
 0x7ca   : > { %3741 = vmatpush.bf16.msra.mxu1 %v5753_v23  ;;  %3901 = vmatpush.bf16.msrb.mxu3 %v5771_v55 }
 0x7cc   : > { %3654 = vmatpush.bf16.msra.mxu0 %v5746_v49  ;;  %3821 = vmatpush.bf16.msrb.mxu2 %v5762_v31 }
 0x7cd   : > { %3742 = vmatmul.bf16.vlgmr.msra.gmra.mxu1 %v7798_v37 }
 0x7ce   : > { %4058 = vmatpush.bf16.msrb.mxu1 %v5792_v28  ;;  %3902 = vmatpush.bf16.msrb.mxu3 %v5770_v47  ;;  %v5812_v28 = vld [vmem:[%s7905_s9 + $0x18] sm:$0xff] }
 0x7d0   : > { %3655 = vmatpush.bf16.msra.mxu0 %v5745_v63  ;;  %3822 = vmatpush.bf16.msrb.mxu2 %v5761_v13  ;;  %v5811_v63 = vld [vmem:[%s7905_s9 + $0x10] sm:$0xff] }
 0x7d2   : > { %4059 = vmatpush.bf16.msrb.mxu1 %v5791_v24  ;;  %3903 = vmatpush.bf16.msrb.mxu3 %v5769_v39 }
 0x7d3   : > { %3656 = vmatmul.bf16.vlgmr.msra.gmra.mxu0 %v2934_v50  ;;  %3823 = vmatmul.bf16.vlgmr.msrb.gmra.mxu2 %v3765_v52 }
 0x7d4   : > { %3977 = vmatpush.bf16.msrb.mxu0 %v5784_v6  ;;  %4139 = vmatpush.bf16.msra.mxu2 %v5800_v0  ;;  %v5810_v0 = vld [vmem:[%s7905_s9 + $0x8] sm:$0xff] }
 0x7d5   : > { %3904 = vmatmul.bf16.vlgmr.msrb.gmra.mxu3 %v3846_v27 }
 0x7d6   : > { %4060 = vmatpush.bf16.msrb.mxu1 %v5790_v25  ;;  %4220 = vmatpush.bf16.msra.mxu3 %v5808_v14 }
 0x7d8   : > { %3978 = vmatpush.bf16.msrb.mxu0 %v5783_v11  ;;  %4140 = vmatpush.bf16.msra.mxu2 %v5799_v7  ;;  %v5809_v7 = vld [vmem:[%s7905_s9] sm:$0xff] }
 0x7da   : > { %4061 = vmatpush.bf16.msrb.mxu1 %v5789_v9  ;;  %4221 = vmatpush.bf16.msra.mxu3 %v5807_v1  ;;  %v5824_v1 = vld [vmem:[%s7907_s11 + $0x38] sm:$0xff] }
 0x7dc   : > { %3979 = vmatpush.bf16.msrb.mxu0 %v5782_v58  ;;  %4141 = vmatpush.bf16.msra.mxu2 %v5798_v59  ;;  %v5823_v59 = vld [vmem:[%s7907_s11 + $0x30] sm:$0xff] }
 0x7de   : > { %4062 = vmatpush.bf16.msrb.mxu1 %v5788_v19  ;;  %4222 = vmatpush.bf16.msra.mxu3 %v5806_v44 }
 0x7e0   : > { %3980 = vmatpush.bf16.msrb.mxu0 %v5781_v29  ;;  %4142 = vmatpush.bf16.msra.mxu2 %v5797_v35  ;;  %v5822_v29 = vld [vmem:[%s7907_s11 + $0x28] sm:$0xff] }
 0x7e2   : > { %4063 = vmatpush.bf16.msrb.mxu1 %v5787_v17  ;;  %4223 = vmatpush.bf16.msra.mxu3 %v5805_v62 }
 0x7e4   : > { %3981 = vmatpush.bf16.msrb.mxu0 %v5780_v42  ;;  %4143 = vmatpush.bf16.msra.mxu2 %v5796_v3  ;;  %v5821_v42 = vld [vmem:[%s7907_s11 + $0x20] sm:$0xff] }
 0x7e6   : > { %4064 = vmatpush.bf16.msrb.mxu1 %v5786_v8  ;;  %4224 = vmatpush.bf16.msra.mxu3 %v5804_v40  ;;  %v5820_v8 = vld [vmem:[%s7907_s11 + $0x18] sm:$0xff] }
 0x7e8   : > { %3982 = vmatpush.bf16.msrb.mxu0 %v5779_v26  ;;  %4144 = vmatpush.bf16.msra.mxu2 %v5795_v15 }
 0x7ea   : > { %4065 = vmatpush.bf16.msrb.mxu1 %v5785_v61  ;;  %4225 = vmatpush.bf16.msra.mxu3 %v5803_v12  ;;  %v5819_v61 = vld [vmem:[%s7907_s11 + $0x10] sm:$0xff] }
 0x7ec   : > { %3983 = vmatpush.bf16.msrb.mxu0 %v5778_v18  ;;  %4145 = vmatpush.bf16.msra.mxu2 %v5794_v34 }
 0x7ed   : > { %4066 = vmatmul.bf16.vlgmr.msrb.gmra.mxu1 %v4008_v46 }
 0x7ee   : > { %4226 = vmatpush.bf16.msra.mxu3 %v5802_v53  ;;  %4383 = vmatpush.bf16.msra.mxu1 %v5824_v1 }
 0x7f0   : > { %3984 = vmatpush.bf16.msrb.mxu0 %v5777_v33  ;;  %4146 = vmatpush.bf16.msra.mxu2 %v5793_v10  ;;  %v4234_v33 = vld [vmem:[%s7904_s8] sm:$0x1] }
 0x7f2   : > { %4227 = vmatpush.bf16.msra.mxu3 %v5801_v36  ;;  %4384 = vmatpush.bf16.msra.mxu1 %v5823_v59 }
 0x7f3   : > { %3985 = vmatmul.bf16.vlgmr.msrb.gmra.mxu0 %v3927_v16  ;;  %4147 = vmatmul.bf16.vlgmr.msra.gmra.mxu2 %v4089_v5 }
 0x7f4   : > { %4303 = vmatpush.bf16.msra.mxu0 %v5816_v60 }
 0x7f5   : > { %4228 = vmatmul.bf16.vlgmr.msra.gmra.mxu3 %v4170_v48 }
 0x7f6   : > { %4385 = vmatpush.bf16.msra.mxu1 %v5822_v29 }
 0x7f8   : > { %4304 = vmatpush.bf16.msra.mxu0 %v5815_v2 }
 0x7fa   : > { %4386 = vmatpush.bf16.msra.mxu1 %v5821_v42 }
 0x7fc   : > { %4305 = vmatpush.bf16.msra.mxu0 %v5814_v57 }
 0x7fe   : > { %4387 = vmatpush.bf16.msra.mxu1 %v5820_v8 }
 0x800   : > { %4306 = vmatpush.bf16.msra.mxu0 %v5813_v45 }
 0x802   : > { %4388 = vmatpush.bf16.msra.mxu1 %v5819_v61 }
 0x804   : > { %4307 = vmatpush.bf16.msra.mxu0 %v5812_v28 }
 0x808   : > { %4308 = vmatpush.bf16.msra.mxu0 %v5811_v63 }
 0x80c   : > { %4309 = vmatpush.bf16.msra.mxu0 %v5810_v0 }
 0x810   : > { %4310 = vmatpush.bf16.msra.mxu0 %v5809_v7 }
 0x82a   : > { %v3093_v54 = vpop.f32.mrf.mxu1 }
 0x830   : > { %v3032_v41 = vpop.f32.mrf.mxu0 }
 0x831   : > { %v3094_v49 = vadd.f32 %v3093_v54, %v3032_v41  ;;  %v5818_v41 = vld [vmem:[%s7907_s11 + $0x8] sm:$0xff] }
 0x832   : > { %v3095_v43 = vpop.f32.mrf.mxu1  ;;  %4389 = vmatpush.bf16.msra.mxu1 %v5818_v41 }
 0x833   : > { %v5817_v43 = vld [vmem:[%s7907_s11] sm:$0xff] }
 0x836   : > { %v3173_v21 = vpop.f32.mrf.mxu2  ;;  %4390 = vmatpush.bf16.msra.mxu1 %v5817_v43 }
 0x837   : > { %v3177_v47 = vadd.f32 %v3173_v21, %v3094_v49  ;;  %v4254_v21 = vld [vmem:[%s7906_s10] sm:$0x1] }
 0x838   : > { %v3034_v30 = vpop.f32.mrf.mxu0  ;;  %v3254_v50 = vpop.f32.mrf.mxu3 }
 0x839   : > { %v3258_v6 = vadd.f32 %v3254_v50, %v3177_v47 }
 0x83a   : > { %v3416_v22 = vpop.f32.mrf.mxu1 }
 0x83e   : > { %v3175_v32 = vpop.f32.mrf.mxu2 }
 0x840   : > { %v3256_v51 = vpop.f32.mrf.mxu3  ;;  %v3335_v56 = vpop.f32.mrf.mxu0 }
 0x841   : > { %v3339_v39 = vadd.f32 %v3335_v56, %v3258_v6  ;;  %v4334_v51 = vld [vmem:[%s7908_s12] sm:$0x1] }
 0x842   : > { %v3418_v20 = vpop.f32.mrf.mxu1 }
 0x843   : > { %v3420_v52 = vadd.f32 %v3416_v22, %v3339_v39 }
 0x846   : > { %v3497_v4 = vpop.f32.mrf.mxu2 }
 0x847   : > { %v3501_v9 = vadd.f32 %v3497_v4, %v3420_v52 }
 0x848   : > { %v3337_v23 = vpop.f32.mrf.mxu0  ;;  %v3578_v55 = vpop.f32.mrf.mxu3 }
 0x849   : > { %v3582_v58 = vadd.f32 %v3578_v55, %v3501_v9 }
 0x84a   : > { %v3743_v38 = vpop.f32.mrf.mxu1 }
 0x84e   : > { %v3499_v31 = vpop.f32.mrf.mxu2 }
 0x850   : > { %v3580_v37 = vpop.f32.mrf.mxu3  ;;  %v3657_v24 = vpop.f32.mrf.mxu0 }
 0x851   : > { %v3661_v44 = vadd.f32 %v3657_v24, %v3582_v58 }
 0x852   : > { %v3745_v13 = vpop.f32.mrf.mxu1 }
 0x853   : > { %v3747_v35 = vadd.f32 %v3743_v38, %v3661_v44 }
 0x856   : > { %v3824_v25 = vpop.f32.mrf.mxu2 }
 0x857   : > { %v3828_v62 = vadd.f32 %v3824_v25, %v3747_v35 }
 0x858   : > { %v3659_v14 = vpop.f32.mrf.mxu0  ;;  %v3905_v11 = vpop.f32.mrf.mxu3 }
 0x859   : > { %v3909_v3 = vadd.f32 %v3905_v11, %v3828_v62 }
 0x85e   : > { %v3826_v27 = vpop.f32.mrf.mxu2 }
 0x860   : > { %v3907_v19 = vpop.f32.mrf.mxu3 }
 0x86a   : > { %v4067_v17 = vpop.f32.mrf.mxu1 }
 0x870   : > { %v3986_v40 = vpop.f32.mrf.mxu0 }
 0x871   : > { %v3990_v26 = vadd.f32 %v3986_v40, %v3909_v3 }
 0x872   : > { %v4069_v15 = vpop.f32.mrf.mxu1 }
 0x873   : > { %v4071_v12 = vadd.f32 %v4067_v17, %v3990_v26 }
 0x876   : > { %v4148_v18 = vpop.f32.mrf.mxu2 }
 0x877   : > { %v4152_v34 = vadd.f32 %v4148_v18, %v4071_v12 }
 0x878   : > { %v3988_v53 = vpop.f32.mrf.mxu0  ;;  %v4229_v46 = vpop.f32.mrf.mxu3 }
 0x879   : > { %v4233_v10 = vadd.f32 %v4229_v46, %v4152_v34 }
 0x87b   : > { %v4235_v36 = vadd.f32 %v4234_v33, %v4233_v10 }
 0x87d   : > { %v4236_v5 = vmax.f32 %v4235_v36, 0.0 }
 0x87e   : > { %v4150_v16 = vpop.f32.mrf.mxu2 }
 0x87f   : > { %v4237_v48 = vpack.c.bf16 %v4236_v5, %v4236_v5 }
 0x880   : > { %v4231_v54 = vpop.f32.mrf.mxu3 }
 0x881   : > { %4311 = vmatmul.bf16.vlgmr.msra.gmra.mxu0 %v4237_v48 }
 0x8fe   : > { %v4312_v30 = vpop.f32.mrf.mxu0 }
 0x8ff   : > { %v4313_v50 = vadd.f32 %v4312_v30, %v4254_v21 }
 0x901   : > { %v4316_v22 = vmax.f32 %v4313_v50, 0.0 }
 0x903   : > { %v4317_v60 = vpack.c.bf16 %v4316_v22, %v4316_v22 }
 0x905   : > { %4391 = vmatmul.bf16.vlgmr.msra.gmra.mxu1 %v4317_v60 }
 0x906   : > { %v4314_v32 = vpop.f32.mrf.mxu0 }
 0x982   : > { %v4392_v56 = vpop.f32.mrf.mxu1 }
 0x983   : > { %v4393_v2 = vadd.f32 %v4392_v56, %v4334_v51 }
 0x985   : > { %4396 = vst [vmem:[%s466_s17] sm:$0x1] %v4393_v2 }
 0x986   : > { %6051 = shalt.err (!%p6048_p8)
}
 0x987   : > { %5834 = dma.vmem_to_hbm [thread:$0]  (%p6237_p5), %s4409_s14, 16, %s4411_s24, %s4398_s20  }
 0x98a   : > { %v4394_v20 = vpop.f32.mrf.mxu1 }
 0x98b PF: > { %p5851_p9 = scmp.ge.s32.totalorder %s6094_s28, 2  ;;  %s4422_s21 = sand.u32 1, %s6082_s25  }
 0x98c   : > { %s4423_s27 = scalar_lea.sflag [#allocation4], %s4422_s21 }
 0x98d   : > { %p5844_p10 = pnand %p5851_p9, %p6241_p6 }
 0x98f   : > { %p5845_p11 = pneg %p5844_p10 }
 0x991   : > { %6077 = dma.done.wait (%p5845_p11), %s4423_s27, 16  }
 0x992   : > { %6079 = vsyncadd (%p5845_p11), %s4423_s27, 4294967280  ;;  %s8024_s28 = sld [smem:[#allocation12_spill]]  ;;  %s8027_s25 = smov %s6086_s26 }
 0x993   : > { %s8025_s17 = sld [smem:[#allocation11_spill]] }
 0x994   : > { %s8026_s27 = sld [smem:[#allocation13_spill]] }
 0x998   : > { %p25_p12 = scmp.ge.s32.totalorder %s8024_s28, 4  }
 0x999   : > { %s8028_s26 = smov %s8025_s17 }
 0x99a   :  { %27 = sbr.rel (!%p25_p12) target bundleno = 7 (0x7), region = 131 }
 0x99f   :  { %4428 = vsyncpa [#allocation3], 1 }
 0x9a0   :  { %4430 = vsyncpa [#allocation3 + $0x1], 1 }
 0x9a1   :  { %4431 = vsyncpa [#allocation6], 1 }
 0x9a2   :  { %4432 = vsyncpa [#allocation4], 1 }
 0x9a3   :  { %4434 = vsyncpa [#allocation4 + $0x1], 1 }

</bundles_post_ra>
